<compile_context>
chip_gen: v5e
topology: v5e:2x2
jax: 0.10.0
libtpu: 0.0.40
codegen_flags: <defaults>
</compile_context>

<pallas_src>
import functools
import math

import jax
import jax.numpy as jnp
from jax.experimental import pallas as pl
from jax.experimental.pallas import tpu as pltpu


# ------------------------------ small helpers -------------------------------

def _round_up(x, m):
    return (x + m - 1) // m * m


def _gelu_exact(x):
    """torch nn.GELU() default (exact, erf-based) GELU.

    erf is evaluated with the Abramowitz & Stegun 7.1.26 polynomial
    (|err| <= 1.5e-7) so only exp / mul / add / select are needed inside the
    Mosaic kernel (no reliance on a lax.erf lowering).
    """
    z = x * 0.7071067811865476
    az = jnp.abs(z)
    t = 1.0 / (1.0 + 0.3275911 * az)
    poly = ((((1.061405429 * t - 1.453152027) * t + 1.421413741) * t
             - 0.284496736) * t + 0.254829592) * t
    erf_abs = 1.0 - poly * jnp.exp(-az * az)
    erf = jnp.where(z < 0, -erf_abs, erf_abs)
    return 0.5 * x * (1.0 + erf)


# ----------------------------- the fused kernel ------------------------------

def _vit_fused_kernel(xp_ref, conv_w_ref, pospb_ref,
                      ln1_g_ref, ln1_b_ref, wqkv_ref, bqkv_ref, wo_ref, bo_ref,
                      ln2_g_ref, ln2_b_ref, w1_ref, b1_ref, w2_ref, b2_ref,
                      lnf_g_ref, lnf_b_ref, head_w_ref, head_b_ref,
                      o_ref, *, heads, eps):
    """Whole ViT forward for one batch element; everything VMEM-resident."""
    num_layers = wqkv_ref.shape[0]
    D = conv_w_ref.shape[1]
    head_dim = D // heads
    scale = 1.0 / math.sqrt(head_dim)

    def mm(a, w):
        # bf16 MXU operands, f32 accumulation
        return jnp.dot(a.astype(jnp.bfloat16), w.astype(jnp.bfloat16),
                       preferred_element_type=jnp.float32)

    def ln(v, g, b):
        mu = jnp.mean(v, axis=-1, keepdims=True)
        var = jnp.mean(jnp.square(v - mu), axis=-1, keepdims=True)
        return (v - mu) * jax.lax.rsqrt(var + eps) * g + b

    # ---- patch embedding; cls token + conv bias + pos folded into pospb ----
    # xp row 0 is a zero row (class-token slot), rows 1.. are flattened patches.
    x = mm(xp_ref[0], conv_w_ref[...]) + pospb_ref[...]            # (S, D) f32

    for l in range(num_layers):                                    # static unroll
        # ---------- attention block: LN1 -> QKV -> SDPA -> Wo (+res) ----------
        h = ln(x, ln1_g_ref[l], ln1_b_ref[l])
        qkv = mm(h, wqkv_ref[l]) + bqkv_ref[l]                     # (S, 3D)
        # lane-aligned 128-wide slab slices; scale/cast applied once, not per head
        q_all = (qkv[:, :D] * scale).astype(jnp.bfloat16)
        k_all = qkv[:, D:2 * D].astype(jnp.bfloat16)
        v_all = qkv[:, 2 * D:].astype(jnp.bfloat16)
        # residual + out-proj bias start the accumulator; the head concat is
        # folded into per-head (Dh, D) slices of Wo (pre-split in the wrapper).
        acc = x + bo_ref[l]                                        # (S, D) f32
        for hh in range(heads):                                    # static unroll
            lo = hh * head_dim
            q = q_all[:, lo:lo + head_dim]
            k = k_all[:, lo:lo + head_dim]
            v = v_all[:, lo:lo + head_dim]
            s = jax.lax.dot_general(q, k, (((1,), (1,)), ((), ())),
                                    preferred_element_type=jnp.float32)  # (S, S)
            p = jnp.exp(s - jnp.max(s, axis=-1, keepdims=True))
            p = p / jnp.sum(p, axis=-1, keepdims=True)             # exact softmax
            o_h = jnp.dot(p.astype(jnp.bfloat16), v,
                          preferred_element_type=jnp.float32)      # (S, Dh)
            acc = acc + jnp.dot(o_h.astype(jnp.bfloat16), wo_ref[l, hh],
                                preferred_element_type=jnp.float32)  # (S, D)
        x = acc

        # ---------- MLP block: LN2 -> W1 -> exact GELU -> W2 (+res) ----------
        h2 = ln(x, ln2_g_ref[l], ln2_b_ref[l])
        mid = _gelu_exact(mm(h2, w1_ref[l]) + b1_ref[l])           # (S, MLP)
        x = mm(mid, w2_ref[l]) + b2_ref[l] + x                     # (S, D)

    # ---------- final LN + classification head on the class token ----------
    c = ln(x[0:1, :], lnf_g_ref[...], lnf_b_ref[...])              # (1, D)
    logits = mm(c, head_w_ref[...]) + head_b_ref[...]              # (1, NCp)
    o_ref[0] = logits.astype(o_ref.dtype)


# --------------------------- parameter construction -------------------------

def init_params(key, *, hidden, mlp_dim, num_layers, patch, channels,
                num_classes, seq):
    ks = iter(jax.random.split(key, 32))

    def nrm(shape, std=0.02, dtype=jnp.float32):
        return (jax.random.normal(next(ks), shape, jnp.float32) * std).astype(dtype)

    bf = jnp.bfloat16   # matmul weights stored bf16 (f32 accumulate in-kernel)
    L, D, M = num_layers, hidden, mlp_dim
    return {
        # conv_proj (Conv2d C->D, kernel=stride=patch) as a (C*p*p, D) matmul
        "conv_w": nrm((channels * patch * patch, D), dtype=bf),
        "conv_b": nrm((D,)),
        "cls": nrm((1, 1, D)),
        "pos": nrm((1, seq, D)),
        # encoder layers, stacked along a leading layer axis
        "ln1_g": jnp.ones((L, D), jnp.float32),
        "ln1_b": jnp.zeros((L, D), jnp.float32),
        "wqkv": nrm((L, D, 3 * D), dtype=bf),       # packed q|k|v (in, out)
        "bqkv": nrm((L, 3 * D)),
        "wo": nrm((L, D, D), dtype=bf),
        "bo": nrm((L, D)),
        "ln2_g": jnp.ones((L, D), jnp.float32),
        "ln2_b": jnp.zeros((L, D), jnp.float32),
        "w1": nrm((L, D, M), dtype=bf),
        "b1": nrm((L, M)),
        "w2": nrm((L, M, D), dtype=bf),
        "b2": nrm((L, D)),
        # final LN + custom classification head (torch nn.Linear(768, n))
        "ln_f_g": jnp.ones((D,), jnp.float32),
        "ln_f_b": jnp.zeros((D,), jnp.float32),
        "head_w": nrm((D, num_classes), dtype=bf),
        "head_b": jnp.zeros((num_classes,), jnp.float32),
    }


# --------------------------------- forward ----------------------------------

def vit_forward(params, x, *, patch, heads):
    """NCHW image -> logits, fully fused Pallas forward."""
    B, C, H, W = x.shape
    D = params["conv_w"].shape[1]
    gh, gw = H // patch, W // patch
    Np = gh * gw
    Cpp = C * patch * patch
    S = Np + 1
    L = params["wqkv"].shape[0]
    three_d = params["wqkv"].shape[2]
    mlp = params["w1"].shape[2]
    head_dim = D // heads
    nc = params["head_w"].shape[1]
    ncp = _round_up(max(nc, 128), 128)             # lane-dense (>=128) head output

    # ---- im2col: conv(k=s=patch) == flatten patches + matmul ----
    # TODO(synk): at ViT-B/224 scale fold this im2col into the kernel's input
    # BlockSpec (pl.Element-indexed gather) instead of materializing it in HBM.
    xp = (x.reshape(B, C, gh, patch, gw, patch)
            .transpose(0, 2, 4, 1, 3, 5)
            .reshape(B, Np, Cpp))
    # row 0 of each batch is a zero row standing in for the class token; its
    # embedding (cls + pos[0]) and the patch rows' conv bias are folded into
    # the single additive table `pospb` so the kernel needs no concatenate.
    xp_full = jnp.concatenate([jnp.zeros((B, 1, Cpp), xp.dtype), xp], axis=1)

    pos = params["pos"].reshape(S, D)
    pospb = jnp.concatenate(
        [params["cls"].reshape(1, D) + pos[0:1],
         pos[1:] + params["conv_b"].reshape(1, D)], axis=0)        # (S, D)

    # out-projection pre-split per head so the kernel folds the head concat
    # into the Wo accumulation (no lane concat inside the kernel).
    wo_h = params["wo"].reshape(L, heads, head_dim, D)

    head_w = jnp.pad(params["head_w"], ((0, 0), (0, ncp - nc)))
    head_b = jnp.pad(params["head_b"], (0, ncp - nc)).reshape(1, ncp)

    consts = [
        params["conv_w"], pospb,
        params["ln1_g"].reshape(L, 1, D), params["ln1_b"].reshape(L, 1, D),
        params["wqkv"], params["bqkv"].reshape(L, 1, three_d),
        wo_h, params["bo"].reshape(L, 1, D),
        params["ln2_g"].reshape(L, 1, D), params["ln2_b"].reshape(L, 1, D),
        params["w1"], params["b1"].reshape(L, 1, mlp),
        params["w2"], params["b2"].reshape(L, 1, D),
        params["ln_f_g"].reshape(1, D), params["ln_f_b"].reshape(1, D),
        head_w, head_b,
    ]

    def const_spec(a):
        nd = a.ndim
        return pl.BlockSpec(a.shape, lambda b, _nd=nd: (0,) * _nd)

    out = pl.pallas_call(
        functools.partial(_vit_fused_kernel, heads=heads, eps=1e-6),
        out_shape=jax.ShapeDtypeStruct((B, 1, ncp), jnp.float32),
        grid=(B,),
        in_specs=[pl.BlockSpec((1, S, Cpp), lambda b: (b, 0, 0))]
                 + [const_spec(a) for a in consts],
        out_specs=pl.BlockSpec((1, 1, ncp), lambda b: (b, 0, 0)),
        compiler_params=pltpu.CompilerParams(
            dimension_semantics=("parallel",)),
    )(xp_full, *consts)
    return out.reshape(B, ncp)[:, :nc]


# --------------------------- pure-JAX reference ------------------------------

def vit_reference(params, x, *, patch, heads):
    """f32 XLA forward (bf16 weights upcast) used only as a sanity check."""
    B, C, H, W = x.shape
    D = params["conv_w"].shape[1]
    gh, gw = H // patch, W // patch
    Np = gh * gw
    S = Np + 1
    L = params["wqkv"].shape[0]
    hd = D // heads
    f32 = lambda a: a.astype(jnp.float32)

    def ln(v, g, b, eps=1e-6):
        mu = v.mean(-1, keepdims=True)
        var = ((v - mu) ** 2).mean(-1, keepdims=True)
        return (v - mu) * jax.lax.rsqrt(var + eps) * g + b

    xp = (x.reshape(B, C, gh, patch, gw, patch)
            .transpose(0, 2, 4, 1, 3, 5)
            .reshape(B, Np, C * patch * patch))
    tok = xp @ f32(params["conv_w"]) + params["conv_b"]
    cls = jnp.broadcast_to(params["cls"], (B, 1, D))
    z = jnp.concatenate([cls, tok], axis=1) + params["pos"]
    for l in range(L):
        h = ln(z, params["ln1_g"][l], params["ln1_b"][l])
        qkv = h @ f32(params["wqkv"][l]) + params["bqkv"][l]
        q, k, v = jnp.split(qkv, 3, axis=-1)
        q = q.reshape(B, S, heads, hd).transpose(0, 2, 1, 3)
        k = k.reshape(B, S, heads, hd).transpose(0, 2, 1, 3)
        v = v.reshape(B, S, heads, hd).transpose(0, 2, 1, 3)
        s = (q @ k.transpose(0, 1, 3, 2)) / math.sqrt(hd)
        p = jax.nn.softmax(s, axis=-1)
        o = (p @ v).transpose(0, 2, 1, 3).reshape(B, S, D)
        z = z + o @ f32(params["wo"][l]) + params["bo"][l]
        h = ln(z, params["ln2_g"][l], params["ln2_b"][l])
        m = jax.nn.gelu(h @ f32(params["w1"][l]) + params["b1"][l],
                        approximate=False)
        z = z + m @ f32(params["w2"][l]) + params["b2"][l]
    c = ln(z[:, 0], params["ln_f_g"], params["ln_f_b"])
    return c @ f32(params["head_w"]) + params["head_b"]


# ----------------------------------- main ------------------------------------

if __name__ == "__main__":
    # small ViT config (ViT-B/16 structure, scaled-down sizes)
    BATCH, CHANNELS, IMG = 2, 3, 32
    PATCH = 16
    HIDDEN, HEADS, MLP_DIM, NUM_LAYERS = 128, 4, 256, 2
    NUM_CLASSES = 10
    SEQ = (IMG // PATCH) ** 2 + 1                                  # 4 patches + cls

    key = jax.random.PRNGKey(0)
    k_params, k_x = jax.random.split(key)
    params = init_params(k_params, hidden=HIDDEN, mlp_dim=MLP_DIM,
                         num_layers=NUM_LAYERS, patch=PATCH,
                         channels=CHANNELS, num_classes=NUM_CLASSES, seq=SEQ)
    x = jax.random.normal(k_x, (BATCH, CHANNELS, IMG, IMG), jnp.float32)

    fwd = jax.jit(functools.partial(vit_forward, patch=PATCH, heads=HEADS))
    logits = fwd(params, x)
    jax.block_until_ready(logits)

    assert logits.shape == (BATCH, NUM_CLASSES)
    assert bool(jnp.all(jnp.isfinite(logits)))

    # sanity check against a plain-XLA reference (bf16 MXU operands in the
    # kernel -> small, expected deviation from the f32 reference)
    ref = jax.jit(functools.partial(vit_reference, patch=PATCH, heads=HEADS))(params, x)
    err = float(jnp.max(jnp.abs(logits - ref)))
    assert err < 5e-2, f"kernel/reference mismatch: max abs err {err}"

    print("KERNEL_OK")
</pallas_src>

<mosaic_0001>
module attributes {stable_mosaic.version = 11 : i64} {
  func.func @_vit_fused_kernel(%arg0: i32, %arg1: memref<1x5x768xf32, #tpu.memory_space<vmem>>, %arg2: memref<768x128xbf16, #tpu.memory_space<vmem>>, %arg3: memref<5x128xf32, #tpu.memory_space<vmem>>, %arg4: memref<2x1x128xf32, #tpu.memory_space<vmem>>, %arg5: memref<2x1x128xf32, #tpu.memory_space<vmem>>, %arg6: memref<2x128x384xbf16, #tpu.memory_space<vmem>>, %arg7: memref<2x1x384xf32, #tpu.memory_space<vmem>>, %arg8: memref<2x4x32x128xbf16, #tpu.memory_space<vmem>>, %arg9: memref<2x1x128xf32, #tpu.memory_space<vmem>>, %arg10: memref<2x1x128xf32, #tpu.memory_space<vmem>>, %arg11: memref<2x1x128xf32, #tpu.memory_space<vmem>>, %arg12: memref<2x128x256xbf16, #tpu.memory_space<vmem>>, %arg13: memref<2x1x256xf32, #tpu.memory_space<vmem>>, %arg14: memref<2x256x128xbf16, #tpu.memory_space<vmem>>, %arg15: memref<2x1x128xf32, #tpu.memory_space<vmem>>, %arg16: memref<1x128xf32, #tpu.memory_space<vmem>>, %arg17: memref<1x128xf32, #tpu.memory_space<vmem>>, %arg18: memref<128x128xbf16, #tpu.memory_space<vmem>>, %arg19: memref<1x128xf32, #tpu.memory_space<vmem>>, %arg20: memref<1x1x128xf32, #tpu.memory_space<vmem>>) attributes {dimension_semantics = [#tpu.dimension_semantics<parallel>], iteration_bounds = array<i64: 2>, scalar_prefetch = 0 : i64, scratch_operands = 0 : i64, tpu.core_type = #tpu.core_type<tc>, window_params = [{transform_indices = @transform_0, window_bounds = array<i64: 1, 5, 768>}, {pipeline_mode = #tpu.pipeline_mode<synchronous>, transform_indices = @transform_1, window_bounds = array<i64: 768, 128>}, {pipeline_mode = #tpu.pipeline_mode<synchronous>, transform_indices = @transform_2, window_bounds = array<i64: 5, 128>}, {pipeline_mode = #tpu.pipeline_mode<synchronous>, transform_indices = @transform_3, window_bounds = array<i64: 2, 1, 128>}, {pipeline_mode = #tpu.pipeline_mode<synchronous>, transform_indices = @transform_4, window_bounds = array<i64: 2, 1, 128>}, {pipeline_mode = #tpu.pipeline_mode<synchronous>, transform_indices = @transform_5, window_bounds = array<i64: 2, 128, 384>}, {pipeline_mode = #tpu.pipeline_mode<synchronous>, transform_indices = @transform_6, window_bounds = array<i64: 2, 1, 384>}, {pipeline_mode = #tpu.pipeline_mode<synchronous>, transform_indices = @transform_7, window_bounds = array<i64: 2, 4, 32, 128>}, {pipeline_mode = #tpu.pipeline_mode<synchronous>, transform_indices = @transform_8, window_bounds = array<i64: 2, 1, 128>}, {pipeline_mode = #tpu.pipeline_mode<synchronous>, transform_indices = @transform_9, window_bounds = array<i64: 2, 1, 128>}, {pipeline_mode = #tpu.pipeline_mode<synchronous>, transform_indices = @transform_10, window_bounds = array<i64: 2, 1, 128>}, {pipeline_mode = #tpu.pipeline_mode<synchronous>, transform_indices = @transform_11, window_bounds = array<i64: 2, 128, 256>}, {pipeline_mode = #tpu.pipeline_mode<synchronous>, transform_indices = @transform_12, window_bounds = array<i64: 2, 1, 256>}, {pipeline_mode = #tpu.pipeline_mode<synchronous>, transform_indices = @transform_13, window_bounds = array<i64: 2, 256, 128>}, {pipeline_mode = #tpu.pipeline_mode<synchronous>, transform_indices = @transform_14, window_bounds = array<i64: 2, 1, 128>}, {pipeline_mode = #tpu.pipeline_mode<synchronous>, transform_indices = @transform_15, window_bounds = array<i64: 1, 128>}, {pipeline_mode = #tpu.pipeline_mode<synchronous>, transform_indices = @transform_16, window_bounds = array<i64: 1, 128>}, {pipeline_mode = #tpu.pipeline_mode<synchronous>, transform_indices = @transform_17, window_bounds = array<i64: 128, 128>}, {pipeline_mode = #tpu.pipeline_mode<synchronous>, transform_indices = @transform_18, window_bounds = array<i64: 1, 128>}, {transform_indices = @transform_19, window_bounds = array<i64: 1, 1, 128>}]} {
    %c0 = arith.constant 0 : index
    %c0_0 = arith.constant 0 : index
    %c0_1 = arith.constant 0 : index
    %0 = vector.load %arg1[%c0, %c0_0, %c0_1] : memref<1x5x768xf32, #tpu.memory_space<vmem>>, vector<1x5x768xf32>
    %1 = vector.shape_cast %0 : vector<1x5x768xf32> to vector<5x768xf32>
    %c0_2 = arith.constant 0 : index
    %c0_3 = arith.constant 0 : index
    %2 = vector.load %arg2[%c0_2, %c0_3] : memref<768x128xbf16, #tpu.memory_space<vmem>>, vector<768x128xbf16>
    %3 = arith.truncf %1 : vector<5x768xf32> to vector<5x768xbf16>
    %cst = arith.constant dense<0.000000e+00> : vector<5x128xf32>
    %4 = tpu.matmul %3, %2, %cst {dimension_numbers = #tpu.dot_dimension_numbers<[1], [0], [0], [1], [0, 0, 1, 1], [], []>} : vector<5x768xbf16>, vector<768x128xbf16>, vector<5x128xf32> -> vector<5x128xf32>
    %c0_4 = arith.constant 0 : index
    %c0_5 = arith.constant 0 : index
    %5 = vector.load %arg3[%c0_4, %c0_5] : memref<5x128xf32, #tpu.memory_space<vmem>>, vector<5x128xf32>
    %6 = arith.addf %4, %5 : vector<5x128xf32>
    %c0_6 = arith.constant 0 : index
    %c0_7 = arith.constant 0 : index
    %c0_8 = arith.constant 0 : index
    %7 = vector.load %arg4[%c0_6, %c0_7, %c0_8] : memref<2x1x128xf32, #tpu.memory_space<vmem>>, vector<1x1x128xf32>
    %8 = vector.shape_cast %7 : vector<1x1x128xf32> to vector<1x128xf32>
    %c0_9 = arith.constant 0 : index
    %c0_10 = arith.constant 0 : index
    %c0_11 = arith.constant 0 : index
    %9 = vector.load %arg5[%c0_9, %c0_10, %c0_11] : memref<2x1x128xf32, #tpu.memory_space<vmem>>, vector<1x1x128xf32>
    %10 = vector.shape_cast %9 : vector<1x1x128xf32> to vector<1x128xf32>
    %cst_12 = arith.constant dense<0.000000e+00> : vector<5xf32>
    %11 = vector.multi_reduction <add>, %6, %cst_12 [1] : vector<5x128xf32> to vector<5xf32>
    %12 = vector.shape_cast %11 : vector<5xf32> to vector<5x1xf32>
    %cst_13 = arith.constant 1.280000e+02 : f32
    %13 = vector.broadcast %cst_13 : f32 to vector<5x1xf32>
    %14 = arith.divf %12, %13 : vector<5x1xf32>
    %15 = vector.broadcast %14 : vector<5x1xf32> to vector<5x128xf32>
    %16 = arith.subf %6, %15 : vector<5x128xf32>
    %17 = arith.mulf %16, %16 : vector<5x128xf32>
    %cst_14 = arith.constant dense<0.000000e+00> : vector<5xf32>
    %18 = vector.multi_reduction <add>, %17, %cst_14 [1] : vector<5x128xf32> to vector<5xf32>
    %19 = vector.shape_cast %18 : vector<5xf32> to vector<5x1xf32>
    %cst_15 = arith.constant 1.280000e+02 : f32
    %20 = vector.broadcast %cst_15 : f32 to vector<5x1xf32>
    %21 = arith.divf %19, %20 : vector<5x1xf32>
    %22 = vector.broadcast %14 : vector<5x1xf32> to vector<5x128xf32>
    %23 = arith.subf %6, %22 : vector<5x128xf32>
    %cst_16 = arith.constant 9.99999997E-7 : f32
    %24 = vector.broadcast %cst_16 : f32 to vector<5x1xf32>
    %25 = arith.addf %21, %24 : vector<5x1xf32>
    %26 = math.rsqrt %25 : vector<5x1xf32>
    %27 = vector.broadcast %26 : vector<5x1xf32> to vector<5x128xf32>
    %28 = arith.mulf %23, %27 : vector<5x128xf32>
    %29 = vector.broadcast %8 : vector<1x128xf32> to vector<5x128xf32>
    %30 = arith.mulf %28, %29 : vector<5x128xf32>
    %31 = vector.broadcast %10 : vector<1x128xf32> to vector<5x128xf32>
    %32 = arith.addf %30, %31 : vector<5x128xf32>
    %c0_17 = arith.constant 0 : index
    %c0_18 = arith.constant 0 : index
    %c0_19 = arith.constant 0 : index
    %33 = vector.load %arg6[%c0_17, %c0_18, %c0_19] : memref<2x128x384xbf16, #tpu.memory_space<vmem>>, vector<1x128x384xbf16>
    %34 = vector.shape_cast %33 : vector<1x128x384xbf16> to vector<128x384xbf16>
    %35 = arith.truncf %32 : vector<5x128xf32> to vector<5x128xbf16>
    %cst_20 = arith.constant dense<0.000000e+00> : vector<5x384xf32>
    %36 = tpu.matmul %35, %34, %cst_20 {dimension_numbers = #tpu.dot_dimension_numbers<[1], [0], [0], [1], [0, 0, 1, 1], [], []>} : vector<5x128xbf16>, vector<128x384xbf16>, vector<5x384xf32> -> vector<5x384xf32>
    %c0_21 = arith.constant 0 : index
    %c0_22 = arith.constant 0 : index
    %c0_23 = arith.constant 0 : index
    %37 = vector.load %arg7[%c0_21, %c0_22, %c0_23] : memref<2x1x384xf32, #tpu.memory_space<vmem>>, vector<1x1x384xf32>
    %38 = vector.shape_cast %37 : vector<1x1x384xf32> to vector<1x384xf32>
    %39 = vector.broadcast %38 : vector<1x384xf32> to vector<5x384xf32>
    %40 = arith.addf %36, %39 : vector<5x384xf32>
    %41 = vector.extract_strided_slice %40 {offsets = [0, 0], sizes = [5, 128], strides = [1, 1]} : vector<5x384xf32> to vector<5x128xf32>
    %cst_24 = arith.constant 0.176776692 : f32
    %42 = vector.broadcast %cst_24 : f32 to vector<5x128xf32>
    %43 = arith.mulf %41, %42 : vector<5x128xf32>
    %44 = arith.truncf %43 : vector<5x128xf32> to vector<5x128xbf16>
    %45 = vector.extract_strided_slice %40 {offsets = [0, 128], sizes = [5, 128], strides = [1, 1]} : vector<5x384xf32> to vector<5x128xf32>
    %46 = arith.truncf %45 : vector<5x128xf32> to vector<5x128xbf16>
    %47 = vector.extract_strided_slice %40 {offsets = [0, 256], sizes = [5, 128], strides = [1, 1]} : vector<5x384xf32> to vector<5x128xf32>
    %48 = arith.truncf %47 : vector<5x128xf32> to vector<5x128xbf16>
    %c0_25 = arith.constant 0 : index
    %c0_26 = arith.constant 0 : index
    %c0_27 = arith.constant 0 : index
    %49 = vector.load %arg9[%c0_25, %c0_26, %c0_27] : memref<2x1x128xf32, #tpu.memory_space<vmem>>, vector<1x1x128xf32>
    %50 = vector.shape_cast %49 : vector<1x1x128xf32> to vector<1x128xf32>
    %51 = vector.broadcast %50 : vector<1x128xf32> to vector<5x128xf32>
    %52 = arith.addf %6, %51 : vector<5x128xf32>
    %53 = vector.extract_strided_slice %44 {offsets = [0, 0], sizes = [5, 32], strides = [1, 1]} : vector<5x128xbf16> to vector<5x32xbf16>
    %54 = vector.extract_strided_slice %46 {offsets = [0, 0], sizes = [5, 32], strides = [1, 1]} : vector<5x128xbf16> to vector<5x32xbf16>
    %55 = vector.extract_strided_slice %48 {offsets = [0, 0], sizes = [5, 32], strides = [1, 1]} : vector<5x128xbf16> to vector<5x32xbf16>
    %cst_28 = arith.constant dense<0.000000e+00> : vector<5x5xf32>
    %56 = tpu.matmul %53, %54, %cst_28 {dimension_numbers = #tpu.dot_dimension_numbers<[1], [1], [0], [0], [0, 0, 1, 0], [], []>} : vector<5x32xbf16>, vector<5x32xbf16>, vector<5x5xf32> -> vector<5x5xf32>
    %cst_29 = arith.constant dense<0xFF800000> : vector<5xf32>
    %57 = vector.multi_reduction <maximumf>, %56, %cst_29 [1] : vector<5x5xf32> to vector<5xf32>
    %58 = vector.shape_cast %57 : vector<5xf32> to vector<5x1xf32>
    %59 = vector.broadcast %58 : vector<5x1xf32> to vector<5x5xf32>
    %60 = arith.subf %56, %59 : vector<5x5xf32>
    %61 = math.exp %60 : vector<5x5xf32>
    %cst_30 = arith.constant dense<0.000000e+00> : vector<5xf32>
    %62 = vector.multi_reduction <add>, %61, %cst_30 [1] : vector<5x5xf32> to vector<5xf32>
    %63 = vector.shape_cast %62 : vector<5xf32> to vector<5x1xf32>
    %64 = vector.broadcast %63 : vector<5x1xf32> to vector<5x5xf32>
    %65 = arith.divf %61, %64 : vector<5x5xf32>
    %66 = arith.truncf %65 : vector<5x5xf32> to vector<5x5xbf16>
    %cst_31 = arith.constant dense<0.000000e+00> : vector<5x32xf32>
    %67 = tpu.matmul %66, %55, %cst_31 {dimension_numbers = #tpu.dot_dimension_numbers<[1], [0], [0], [1], [0, 0, 1, 1], [], []>} : vector<5x5xbf16>, vector<5x32xbf16>, vector<5x32xf32> -> vector<5x32xf32>
    %68 = arith.truncf %67 : vector<5x32xf32> to vector<5x32xbf16>
    %c0_32 = arith.constant 0 : index
    %c0_33 = arith.constant 0 : index
    %c0_34 = arith.constant 0 : index
    %c0_35 = arith.constant 0 : index
    %69 = vector.load %arg8[%c0_32, %c0_33, %c0_34, %c0_35] : memref<2x4x32x128xbf16, #tpu.memory_space<vmem>>, vector<1x1x32x128xbf16>
    %70 = vector.shape_cast %69 : vector<1x1x32x128xbf16> to vector<32x128xbf16>
    %cst_36 = arith.constant dense<0.000000e+00> : vector<5x128xf32>
    %71 = tpu.matmul %68, %70, %cst_36 {dimension_numbers = #tpu.dot_dimension_numbers<[1], [0], [0], [1], [0, 0, 1, 1], [], []>} : vector<5x32xbf16>, vector<32x128xbf16>, vector<5x128xf32> -> vector<5x128xf32>
    %72 = arith.addf %52, %71 : vector<5x128xf32>
    %73 = vector.extract_strided_slice %44 {offsets = [0, 32], sizes = [5, 32], strides = [1, 1]} : vector<5x128xbf16> to vector<5x32xbf16>
    %74 = vector.extract_strided_slice %46 {offsets = [0, 32], sizes = [5, 32], strides = [1, 1]} : vector<5x128xbf16> to vector<5x32xbf16>
    %75 = vector.extract_strided_slice %48 {offsets = [0, 32], sizes = [5, 32], strides = [1, 1]} : vector<5x128xbf16> to vector<5x32xbf16>
    %cst_37 = arith.constant dense<0.000000e+00> : vector<5x5xf32>
    %76 = tpu.matmul %73, %74, %cst_37 {dimension_numbers = #tpu.dot_dimension_numbers<[1], [1], [0], [0], [0, 0, 1, 0], [], []>} : vector<5x32xbf16>, vector<5x32xbf16>, vector<5x5xf32> -> vector<5x5xf32>
    %cst_38 = arith.constant dense<0xFF800000> : vector<5xf32>
    %77 = vector.multi_reduction <maximumf>, %76, %cst_38 [1] : vector<5x5xf32> to vector<5xf32>
    %78 = vector.shape_cast %77 : vector<5xf32> to vector<5x1xf32>
    %79 = vector.broadcast %78 : vector<5x1xf32> to vector<5x5xf32>
    %80 = arith.subf %76, %79 : vector<5x5xf32>
    %81 = math.exp %80 : vector<5x5xf32>
    %cst_39 = arith.constant dense<0.000000e+00> : vector<5xf32>
    %82 = vector.multi_reduction <add>, %81, %cst_39 [1] : vector<5x5xf32> to vector<5xf32>
    %83 = vector.shape_cast %82 : vector<5xf32> to vector<5x1xf32>
    %84 = vector.broadcast %83 : vector<5x1xf32> to vector<5x5xf32>
    %85 = arith.divf %81, %84 : vector<5x5xf32>
    %86 = arith.truncf %85 : vector<5x5xf32> to vector<5x5xbf16>
    %cst_40 = arith.constant dense<0.000000e+00> : vector<5x32xf32>
    %87 = tpu.matmul %86, %75, %cst_40 {dimension_numbers = #tpu.dot_dimension_numbers<[1], [0], [0], [1], [0, 0, 1, 1], [], []>} : vector<5x5xbf16>, vector<5x32xbf16>, vector<5x32xf32> -> vector<5x32xf32>
    %88 = arith.truncf %87 : vector<5x32xf32> to vector<5x32xbf16>
    %c0_41 = arith.constant 0 : index
    %c1 = arith.constant 1 : index
    %c0_42 = arith.constant 0 : index
    %c0_43 = arith.constant 0 : index
    %89 = vector.load %arg8[%c0_41, %c1, %c0_42, %c0_43] : memref<2x4x32x128xbf16, #tpu.memory_space<vmem>>, vector<1x1x32x128xbf16>
    %90 = vector.shape_cast %89 : vector<1x1x32x128xbf16> to vector<32x128xbf16>
    %cst_44 = arith.constant dense<0.000000e+00> : vector<5x128xf32>
    %91 = tpu.matmul %88, %90, %cst_44 {dimension_numbers = #tpu.dot_dimension_numbers<[1], [0], [0], [1], [0, 0, 1, 1], [], []>} : vector<5x32xbf16>, vector<32x128xbf16>, vector<5x128xf32> -> vector<5x128xf32>
    %92 = arith.addf %72, %91 : vector<5x128xf32>
    %93 = vector.extract_strided_slice %44 {offsets = [0, 64], sizes = [5, 32], strides = [1, 1]} : vector<5x128xbf16> to vector<5x32xbf16>
    %94 = vector.extract_strided_slice %46 {offsets = [0, 64], sizes = [5, 32], strides = [1, 1]} : vector<5x128xbf16> to vector<5x32xbf16>
    %95 = vector.extract_strided_slice %48 {offsets = [0, 64], sizes = [5, 32], strides = [1, 1]} : vector<5x128xbf16> to vector<5x32xbf16>
    %cst_45 = arith.constant dense<0.000000e+00> : vector<5x5xf32>
    %96 = tpu.matmul %93, %94, %cst_45 {dimension_numbers = #tpu.dot_dimension_numbers<[1], [1], [0], [0], [0, 0, 1, 0], [], []>} : vector<5x32xbf16>, vector<5x32xbf16>, vector<5x5xf32> -> vector<5x5xf32>
    %cst_46 = arith.constant dense<0xFF800000> : vector<5xf32>
    %97 = vector.multi_reduction <maximumf>, %96, %cst_46 [1] : vector<5x5xf32> to vector<5xf32>
    %98 = vector.shape_cast %97 : vector<5xf32> to vector<5x1xf32>
    %99 = vector.broadcast %98 : vector<5x1xf32> to vector<5x5xf32>
    %100 = arith.subf %96, %99 : vector<5x5xf32>
    %101 = math.exp %100 : vector<5x5xf32>
    %cst_47 = arith.constant dense<0.000000e+00> : vector<5xf32>
    %102 = vector.multi_reduction <add>, %101, %cst_47 [1] : vector<5x5xf32> to vector<5xf32>
    %103 = vector.shape_cast %102 : vector<5xf32> to vector<5x1xf32>
    %104 = vector.broadcast %103 : vector<5x1xf32> to vector<5x5xf32>
    %105 = arith.divf %101, %104 : vector<5x5xf32>
    %106 = arith.truncf %105 : vector<5x5xf32> to vector<5x5xbf16>
    %cst_48 = arith.constant dense<0.000000e+00> : vector<5x32xf32>
    %107 = tpu.matmul %106, %95, %cst_48 {dimension_numbers = #tpu.dot_dimension_numbers<[1], [0], [0], [1], [0, 0, 1, 1], [], []>} : vector<5x5xbf16>, vector<5x32xbf16>, vector<5x32xf32> -> vector<5x32xf32>
    %108 = arith.truncf %107 : vector<5x32xf32> to vector<5x32xbf16>
    %c0_49 = arith.constant 0 : index
    %c2 = arith.constant 2 : index
    %c0_50 = arith.constant 0 : index
    %c0_51 = arith.constant 0 : index
    %109 = vector.load %arg8[%c0_49, %c2, %c0_50, %c0_51] : memref<2x4x32x128xbf16, #tpu.memory_space<vmem>>, vector<1x1x32x128xbf16>
    %110 = vector.shape_cast %109 : vector<1x1x32x128xbf16> to vector<32x128xbf16>
    %cst_52 = arith.constant dense<0.000000e+00> : vector<5x128xf32>
    %111 = tpu.matmul %108, %110, %cst_52 {dimension_numbers = #tpu.dot_dimension_numbers<[1], [0], [0], [1], [0, 0, 1, 1], [], []>} : vector<5x32xbf16>, vector<32x128xbf16>, vector<5x128xf32> -> vector<5x128xf32>
    %112 = arith.addf %92, %111 : vector<5x128xf32>
    %113 = vector.extract_strided_slice %44 {offsets = [0, 96], sizes = [5, 32], strides = [1, 1]} : vector<5x128xbf16> to vector<5x32xbf16>
    %114 = vector.extract_strided_slice %46 {offsets = [0, 96], sizes = [5, 32], strides = [1, 1]} : vector<5x128xbf16> to vector<5x32xbf16>
    %115 = vector.extract_strided_slice %48 {offsets = [0, 96], sizes = [5, 32], strides = [1, 1]} : vector<5x128xbf16> to vector<5x32xbf16>
    %cst_53 = arith.constant dense<0.000000e+00> : vector<5x5xf32>
    %116 = tpu.matmul %113, %114, %cst_53 {dimension_numbers = #tpu.dot_dimension_numbers<[1], [1], [0], [0], [0, 0, 1, 0], [], []>} : vector<5x32xbf16>, vector<5x32xbf16>, vector<5x5xf32> -> vector<5x5xf32>
    %cst_54 = arith.constant dense<0xFF800000> : vector<5xf32>
    %117 = vector.multi_reduction <maximumf>, %116, %cst_54 [1] : vector<5x5xf32> to vector<5xf32>
    %118 = vector.shape_cast %117 : vector<5xf32> to vector<5x1xf32>
    %119 = vector.broadcast %118 : vector<5x1xf32> to vector<5x5xf32>
    %120 = arith.subf %116, %119 : vector<5x5xf32>
    %121 = math.exp %120 : vector<5x5xf32>
    %cst_55 = arith.constant dense<0.000000e+00> : vector<5xf32>
    %122 = vector.multi_reduction <add>, %121, %cst_55 [1] : vector<5x5xf32> to vector<5xf32>
    %123 = vector.shape_cast %122 : vector<5xf32> to vector<5x1xf32>
    %124 = vector.broadcast %123 : vector<5x1xf32> to vector<5x5xf32>
    %125 = arith.divf %121, %124 : vector<5x5xf32>
    %126 = arith.truncf %125 : vector<5x5xf32> to vector<5x5xbf16>
    %cst_56 = arith.constant dense<0.000000e+00> : vector<5x32xf32>
    %127 = tpu.matmul %126, %115, %cst_56 {dimension_numbers = #tpu.dot_dimension_numbers<[1], [0], [0], [1], [0, 0, 1, 1], [], []>} : vector<5x5xbf16>, vector<5x32xbf16>, vector<5x32xf32> -> vector<5x32xf32>
    %128 = arith.truncf %127 : vector<5x32xf32> to vector<5x32xbf16>
    %c0_57 = arith.constant 0 : index
    %c3 = arith.constant 3 : index
    %c0_58 = arith.constant 0 : index
    %c0_59 = arith.constant 0 : index
    %129 = vector.load %arg8[%c0_57, %c3, %c0_58, %c0_59] : memref<2x4x32x128xbf16, #tpu.memory_space<vmem>>, vector<1x1x32x128xbf16>
    %130 = vector.shape_cast %129 : vector<1x1x32x128xbf16> to vector<32x128xbf16>
    %cst_60 = arith.constant dense<0.000000e+00> : vector<5x128xf32>
    %131 = tpu.matmul %128, %130, %cst_60 {dimension_numbers = #tpu.dot_dimension_numbers<[1], [0], [0], [1], [0, 0, 1, 1], [], []>} : vector<5x32xbf16>, vector<32x128xbf16>, vector<5x128xf32> -> vector<5x128xf32>
    %132 = arith.addf %112, %131 : vector<5x128xf32>
    %c0_61 = arith.constant 0 : index
    %c0_62 = arith.constant 0 : index
    %c0_63 = arith.constant 0 : index
    %133 = vector.load %arg10[%c0_61, %c0_62, %c0_63] : memref<2x1x128xf32, #tpu.memory_space<vmem>>, vector<1x1x128xf32>
    %134 = vector.shape_cast %133 : vector<1x1x128xf32> to vector<1x128xf32>
    %c0_64 = arith.constant 0 : index
    %c0_65 = arith.constant 0 : index
    %c0_66 = arith.constant 0 : index
    %135 = vector.load %arg11[%c0_64, %c0_65, %c0_66] : memref<2x1x128xf32, #tpu.memory_space<vmem>>, vector<1x1x128xf32>
    %136 = vector.shape_cast %135 : vector<1x1x128xf32> to vector<1x128xf32>
    %cst_67 = arith.constant dense<0.000000e+00> : vector<5xf32>
    %137 = vector.multi_reduction <add>, %132, %cst_67 [1] : vector<5x128xf32> to vector<5xf32>
    %138 = vector.shape_cast %137 : vector<5xf32> to vector<5x1xf32>
    %cst_68 = arith.constant 1.280000e+02 : f32
    %139 = vector.broadcast %cst_68 : f32 to vector<5x1xf32>
    %140 = arith.divf %138, %139 : vector<5x1xf32>
    %141 = vector.broadcast %140 : vector<5x1xf32> to vector<5x128xf32>
    %142 = arith.subf %132, %141 : vector<5x128xf32>
    %143 = arith.mulf %142, %142 : vector<5x128xf32>
    %cst_69 = arith.constant dense<0.000000e+00> : vector<5xf32>
    %144 = vector.multi_reduction <add>, %143, %cst_69 [1] : vector<5x128xf32> to vector<5xf32>
    %145 = vector.shape_cast %144 : vector<5xf32> to vector<5x1xf32>
    %cst_70 = arith.constant 1.280000e+02 : f32
    %146 = vector.broadcast %cst_70 : f32 to vector<5x1xf32>
    %147 = arith.divf %145, %146 : vector<5x1xf32>
    %148 = vector.broadcast %140 : vector<5x1xf32> to vector<5x128xf32>
    %149 = arith.subf %132, %148 : vector<5x128xf32>
    %cst_71 = arith.constant 9.99999997E-7 : f32
    %150 = vector.broadcast %cst_71 : f32 to vector<5x1xf32>
    %151 = arith.addf %147, %150 : vector<5x1xf32>
    %152 = math.rsqrt %151 : vector<5x1xf32>
    %153 = vector.broadcast %152 : vector<5x1xf32> to vector<5x128xf32>
    %154 = arith.mulf %149, %153 : vector<5x128xf32>
    %155 = vector.broadcast %134 : vector<1x128xf32> to vector<5x128xf32>
    %156 = arith.mulf %154, %155 : vector<5x128xf32>
    %157 = vector.broadcast %136 : vector<1x128xf32> to vector<5x128xf32>
    %158 = arith.addf %156, %157 : vector<5x128xf32>
    %c0_72 = arith.constant 0 : index
    %c0_73 = arith.constant 0 : index
    %c0_74 = arith.constant 0 : index
    %159 = vector.load %arg12[%c0_72, %c0_73, %c0_74] : memref<2x128x256xbf16, #tpu.memory_space<vmem>>, vector<1x128x256xbf16>
    %160 = vector.shape_cast %159 : vector<1x128x256xbf16> to vector<128x256xbf16>
    %161 = arith.truncf %158 : vector<5x128xf32> to vector<5x128xbf16>
    %cst_75 = arith.constant dense<0.000000e+00> : vector<5x256xf32>
    %162 = tpu.matmul %161, %160, %cst_75 {dimension_numbers = #tpu.dot_dimension_numbers<[1], [0], [0], [1], [0, 0, 1, 1], [], []>} : vector<5x128xbf16>, vector<128x256xbf16>, vector<5x256xf32> -> vector<5x256xf32>
    %c0_76 = arith.constant 0 : index
    %c0_77 = arith.constant 0 : index
    %c0_78 = arith.constant 0 : index
    %163 = vector.load %arg13[%c0_76, %c0_77, %c0_78] : memref<2x1x256xf32, #tpu.memory_space<vmem>>, vector<1x1x256xf32>
    %164 = vector.shape_cast %163 : vector<1x1x256xf32> to vector<1x256xf32>
    %165 = vector.broadcast %164 : vector<1x256xf32> to vector<5x256xf32>
    %166 = arith.addf %162, %165 : vector<5x256xf32>
    %cst_79 = arith.constant 0.707106769 : f32
    %167 = vector.broadcast %cst_79 : f32 to vector<5x256xf32>
    %168 = arith.mulf %166, %167 : vector<5x256xf32>
    %169 = math.absf %168 : vector<5x256xf32>
    %cst_80 = arith.constant 0.327591091 : f32
    %170 = vector.broadcast %cst_80 : f32 to vector<5x256xf32>
    %171 = arith.mulf %170, %169 : vector<5x256xf32>
    %cst_81 = arith.constant 1.000000e+00 : f32
    %172 = vector.broadcast %cst_81 : f32 to vector<5x256xf32>
    %173 = arith.addf %172, %171 : vector<5x256xf32>
    %cst_82 = arith.constant 1.000000e+00 : f32
    %174 = vector.broadcast %cst_82 : f32 to vector<5x256xf32>
    %175 = arith.divf %174, %173 : vector<5x256xf32>
    %cst_83 = arith.constant 1.06140542 : f32
    %176 = vector.broadcast %cst_83 : f32 to vector<5x256xf32>
    %177 = arith.mulf %176, %175 : vector<5x256xf32>
    %cst_84 = arith.constant 1.45315206 : f32
    %178 = vector.broadcast %cst_84 : f32 to vector<5x256xf32>
    %179 = arith.subf %177, %178 : vector<5x256xf32>
    %180 = arith.mulf %179, %175 : vector<5x256xf32>
    %cst_85 = arith.constant 1.42141378 : f32
    %181 = vector.broadcast %cst_85 : f32 to vector<5x256xf32>
    %182 = arith.addf %180, %181 : vector<5x256xf32>
    %183 = arith.mulf %182, %175 : vector<5x256xf32>
    %cst_86 = arith.constant 0.284496725 : f32
    %184 = vector.broadcast %cst_86 : f32 to vector<5x256xf32>
    %185 = arith.subf %183, %184 : vector<5x256xf32>
    %186 = arith.mulf %185, %175 : vector<5x256xf32>
    %cst_87 = arith.constant 0.254829586 : f32
    %187 = vector.broadcast %cst_87 : f32 to vector<5x256xf32>
    %188 = arith.addf %186, %187 : vector<5x256xf32>
    %189 = arith.mulf %188, %175 : vector<5x256xf32>
    %cst_88 = arith.constant 0.000000e+00 : f32
    %190 = vector.broadcast %cst_88 : f32 to vector<5x256xf32>
    %191 = arith.subf %190, %169 : vector<5x256xf32>
    %192 = arith.mulf %191, %169 : vector<5x256xf32>
    %193 = math.exp %192 : vector<5x256xf32>
    %194 = arith.mulf %189, %193 : vector<5x256xf32>
    %cst_89 = arith.constant 1.000000e+00 : f32
    %195 = vector.broadcast %cst_89 : f32 to vector<5x256xf32>
    %196 = arith.subf %195, %194 : vector<5x256xf32>
    %cst_90 = arith.constant 0.000000e+00 : f32
    %197 = vector.broadcast %cst_90 : f32 to vector<5x256xf32>
    %198 = arith.cmpf olt, %168, %197 : vector<5x256xf32>
    %cst_91 = arith.constant 0.000000e+00 : f32
    %199 = vector.broadcast %cst_91 : f32 to vector<5x256xf32>
    %200 = arith.subf %199, %196 : vector<5x256xf32>
    %201 = arith.select %198, %200, %196 : vector<5x256xi1>, vector<5x256xf32>
    %cst_92 = arith.constant 5.000000e-01 : f32
    %202 = vector.broadcast %cst_92 : f32 to vector<5x256xf32>
    %203 = arith.mulf %202, %166 : vector<5x256xf32>
    %cst_93 = arith.constant 1.000000e+00 : f32
    %204 = vector.broadcast %cst_93 : f32 to vector<5x256xf32>
    %205 = arith.addf %204, %201 : vector<5x256xf32>
    %206 = arith.mulf %203, %205 : vector<5x256xf32>
    %c0_94 = arith.constant 0 : index
    %c0_95 = arith.constant 0 : index
    %c0_96 = arith.constant 0 : index
    %207 = vector.load %arg14[%c0_94, %c0_95, %c0_96] : memref<2x256x128xbf16, #tpu.memory_space<vmem>>, vector<1x256x128xbf16>
    %208 = vector.shape_cast %207 : vector<1x256x128xbf16> to vector<256x128xbf16>
    %209 = arith.truncf %206 : vector<5x256xf32> to vector<5x256xbf16>
    %cst_97 = arith.constant dense<0.000000e+00> : vector<5x128xf32>
    %210 = tpu.matmul %209, %208, %cst_97 {dimension_numbers = #tpu.dot_dimension_numbers<[1], [0], [0], [1], [0, 0, 1, 1], [], []>} : vector<5x256xbf16>, vector<256x128xbf16>, vector<5x128xf32> -> vector<5x128xf32>
    %c0_98 = arith.constant 0 : index
    %c0_99 = arith.constant 0 : index
    %c0_100 = arith.constant 0 : index
    %211 = vector.load %arg15[%c0_98, %c0_99, %c0_100] : memref<2x1x128xf32, #tpu.memory_space<vmem>>, vector<1x1x128xf32>
    %212 = vector.shape_cast %211 : vector<1x1x128xf32> to vector<1x128xf32>
    %213 = vector.broadcast %212 : vector<1x128xf32> to vector<5x128xf32>
    %214 = arith.addf %210, %213 : vector<5x128xf32>
    %215 = arith.addf %214, %132 : vector<5x128xf32>
    %c1_101 = arith.constant 1 : index
    %c0_102 = arith.constant 0 : index
    %c0_103 = arith.constant 0 : index
    %216 = vector.load %arg4[%c1_101, %c0_102, %c0_103] : memref<2x1x128xf32, #tpu.memory_space<vmem>>, vector<1x1x128xf32>
    %217 = vector.shape_cast %216 : vector<1x1x128xf32> to vector<1x128xf32>
    %c1_104 = arith.constant 1 : index
    %c0_105 = arith.constant 0 : index
    %c0_106 = arith.constant 0 : index
    %218 = vector.load %arg5[%c1_104, %c0_105, %c0_106] : memref<2x1x128xf32, #tpu.memory_space<vmem>>, vector<1x1x128xf32>
    %219 = vector.shape_cast %218 : vector<1x1x128xf32> to vector<1x128xf32>
    %cst_107 = arith.constant dense<0.000000e+00> : vector<5xf32>
    %220 = vector.multi_reduction <add>, %215, %cst_107 [1] : vector<5x128xf32> to vector<5xf32>
    %221 = vector.shape_cast %220 : vector<5xf32> to vector<5x1xf32>
    %cst_108 = arith.constant 1.280000e+02 : f32
    %222 = vector.broadcast %cst_108 : f32 to vector<5x1xf32>
    %223 = arith.divf %221, %222 : vector<5x1xf32>
    %224 = vector.broadcast %223 : vector<5x1xf32> to vector<5x128xf32>
    %225 = arith.subf %215, %224 : vector<5x128xf32>
    %226 = arith.mulf %225, %225 : vector<5x128xf32>
    %cst_109 = arith.constant dense<0.000000e+00> : vector<5xf32>
    %227 = vector.multi_reduction <add>, %226, %cst_109 [1] : vector<5x128xf32> to vector<5xf32>
    %228 = vector.shape_cast %227 : vector<5xf32> to vector<5x1xf32>
    %cst_110 = arith.constant 1.280000e+02 : f32
    %229 = vector.broadcast %cst_110 : f32 to vector<5x1xf32>
    %230 = arith.divf %228, %229 : vector<5x1xf32>
    %231 = vector.broadcast %223 : vector<5x1xf32> to vector<5x128xf32>
    %232 = arith.subf %215, %231 : vector<5x128xf32>
    %cst_111 = arith.constant 9.99999997E-7 : f32
    %233 = vector.broadcast %cst_111 : f32 to vector<5x1xf32>
    %234 = arith.addf %230, %233 : vector<5x1xf32>
    %235 = math.rsqrt %234 : vector<5x1xf32>
    %236 = vector.broadcast %235 : vector<5x1xf32> to vector<5x128xf32>
    %237 = arith.mulf %232, %236 : vector<5x128xf32>
    %238 = vector.broadcast %217 : vector<1x128xf32> to vector<5x128xf32>
    %239 = arith.mulf %237, %238 : vector<5x128xf32>
    %240 = vector.broadcast %219 : vector<1x128xf32> to vector<5x128xf32>
    %241 = arith.addf %239, %240 : vector<5x128xf32>
    %c1_112 = arith.constant 1 : index
    %c0_113 = arith.constant 0 : index
    %c0_114 = arith.constant 0 : index
    %242 = vector.load %arg6[%c1_112, %c0_113, %c0_114] : memref<2x128x384xbf16, #tpu.memory_space<vmem>>, vector<1x128x384xbf16>
    %243 = vector.shape_cast %242 : vector<1x128x384xbf16> to vector<128x384xbf16>
    %244 = arith.truncf %241 : vector<5x128xf32> to vector<5x128xbf16>
    %cst_115 = arith.constant dense<0.000000e+00> : vector<5x384xf32>
    %245 = tpu.matmul %244, %243, %cst_115 {dimension_numbers = #tpu.dot_dimension_numbers<[1], [0], [0], [1], [0, 0, 1, 1], [], []>} : vector<5x128xbf16>, vector<128x384xbf16>, vector<5x384xf32> -> vector<5x384xf32>
    %c1_116 = arith.constant 1 : index
    %c0_117 = arith.constant 0 : index
    %c0_118 = arith.constant 0 : index
    %246 = vector.load %arg7[%c1_116, %c0_117, %c0_118] : memref<2x1x384xf32, #tpu.memory_space<vmem>>, vector<1x1x384xf32>
    %247 = vector.shape_cast %246 : vector<1x1x384xf32> to vector<1x384xf32>
    %248 = vector.broadcast %247 : vector<1x384xf32> to vector<5x384xf32>
    %249 = arith.addf %245, %248 : vector<5x384xf32>
    %250 = vector.extract_strided_slice %249 {offsets = [0, 0], sizes = [5, 128], strides = [1, 1]} : vector<5x384xf32> to vector<5x128xf32>
    %cst_119 = arith.constant 0.176776692 : f32
    %251 = vector.broadcast %cst_119 : f32 to vector<5x128xf32>
    %252 = arith.mulf %250, %251 : vector<5x128xf32>
    %253 = arith.truncf %252 : vector<5x128xf32> to vector<5x128xbf16>
    %254 = vector.extract_strided_slice %249 {offsets = [0, 128], sizes = [5, 128], strides = [1, 1]} : vector<5x384xf32> to vector<5x128xf32>
    %255 = arith.truncf %254 : vector<5x128xf32> to vector<5x128xbf16>
    %256 = vector.extract_strided_slice %249 {offsets = [0, 256], sizes = [5, 128], strides = [1, 1]} : vector<5x384xf32> to vector<5x128xf32>
    %257 = arith.truncf %256 : vector<5x128xf32> to vector<5x128xbf16>
    %c1_120 = arith.constant 1 : index
    %c0_121 = arith.constant 0 : index
    %c0_122 = arith.constant 0 : index
    %258 = vector.load %arg9[%c1_120, %c0_121, %c0_122] : memref<2x1x128xf32, #tpu.memory_space<vmem>>, vector<1x1x128xf32>
    %259 = vector.shape_cast %258 : vector<1x1x128xf32> to vector<1x128xf32>
    %260 = vector.broadcast %259 : vector<1x128xf32> to vector<5x128xf32>
    %261 = arith.addf %215, %260 : vector<5x128xf32>
    %262 = vector.extract_strided_slice %253 {offsets = [0, 0], sizes = [5, 32], strides = [1, 1]} : vector<5x128xbf16> to vector<5x32xbf16>
    %263 = vector.extract_strided_slice %255 {offsets = [0, 0], sizes = [5, 32], strides = [1, 1]} : vector<5x128xbf16> to vector<5x32xbf16>
    %264 = vector.extract_strided_slice %257 {offsets = [0, 0], sizes = [5, 32], strides = [1, 1]} : vector<5x128xbf16> to vector<5x32xbf16>
    %cst_123 = arith.constant dense<0.000000e+00> : vector<5x5xf32>
    %265 = tpu.matmul %262, %263, %cst_123 {dimension_numbers = #tpu.dot_dimension_numbers<[1], [1], [0], [0], [0, 0, 1, 0], [], []>} : vector<5x32xbf16>, vector<5x32xbf16>, vector<5x5xf32> -> vector<5x5xf32>
    %cst_124 = arith.constant dense<0xFF800000> : vector<5xf32>
    %266 = vector.multi_reduction <maximumf>, %265, %cst_124 [1] : vector<5x5xf32> to vector<5xf32>
    %267 = vector.shape_cast %266 : vector<5xf32> to vector<5x1xf32>
    %268 = vector.broadcast %267 : vector<5x1xf32> to vector<5x5xf32>
    %269 = arith.subf %265, %268 : vector<5x5xf32>
    %270 = math.exp %269 : vector<5x5xf32>
    %cst_125 = arith.constant dense<0.000000e+00> : vector<5xf32>
    %271 = vector.multi_reduction <add>, %270, %cst_125 [1] : vector<5x5xf32> to vector<5xf32>
    %272 = vector.shape_cast %271 : vector<5xf32> to vector<5x1xf32>
    %273 = vector.broadcast %272 : vector<5x1xf32> to vector<5x5xf32>
    %274 = arith.divf %270, %273 : vector<5x5xf32>
    %275 = arith.truncf %274 : vector<5x5xf32> to vector<5x5xbf16>
    %cst_126 = arith.constant dense<0.000000e+00> : vector<5x32xf32>
    %276 = tpu.matmul %275, %264, %cst_126 {dimension_numbers = #tpu.dot_dimension_numbers<[1], [0], [0], [1], [0, 0, 1, 1], [], []>} : vector<5x5xbf16>, vector<5x32xbf16>, vector<5x32xf32> -> vector<5x32xf32>
    %277 = arith.truncf %276 : vector<5x32xf32> to vector<5x32xbf16>
    %c1_127 = arith.constant 1 : index
    %c0_128 = arith.constant 0 : index
    %c0_129 = arith.constant 0 : index
    %c0_130 = arith.constant 0 : index
    %278 = vector.load %arg8[%c1_127, %c0_128, %c0_129, %c0_130] : memref<2x4x32x128xbf16, #tpu.memory_space<vmem>>, vector<1x1x32x128xbf16>
    %279 = vector.shape_cast %278 : vector<1x1x32x128xbf16> to vector<32x128xbf16>
    %cst_131 = arith.constant dense<0.000000e+00> : vector<5x128xf32>
    %280 = tpu.matmul %277, %279, %cst_131 {dimension_numbers = #tpu.dot_dimension_numbers<[1], [0], [0], [1], [0, 0, 1, 1], [], []>} : vector<5x32xbf16>, vector<32x128xbf16>, vector<5x128xf32> -> vector<5x128xf32>
    %281 = arith.addf %261, %280 : vector<5x128xf32>
    %282 = vector.extract_strided_slice %253 {offsets = [0, 32], sizes = [5, 32], strides = [1, 1]} : vector<5x128xbf16> to vector<5x32xbf16>
    %283 = vector.extract_strided_slice %255 {offsets = [0, 32], sizes = [5, 32], strides = [1, 1]} : vector<5x128xbf16> to vector<5x32xbf16>
    %284 = vector.extract_strided_slice %257 {offsets = [0, 32], sizes = [5, 32], strides = [1, 1]} : vector<5x128xbf16> to vector<5x32xbf16>
    %cst_132 = arith.constant dense<0.000000e+00> : vector<5x5xf32>
    %285 = tpu.matmul %282, %283, %cst_132 {dimension_numbers = #tpu.dot_dimension_numbers<[1], [1], [0], [0], [0, 0, 1, 0], [], []>} : vector<5x32xbf16>, vector<5x32xbf16>, vector<5x5xf32> -> vector<5x5xf32>
    %cst_133 = arith.constant dense<0xFF800000> : vector<5xf32>
    %286 = vector.multi_reduction <maximumf>, %285, %cst_133 [1] : vector<5x5xf32> to vector<5xf32>
    %287 = vector.shape_cast %286 : vector<5xf32> to vector<5x1xf32>
    %288 = vector.broadcast %287 : vector<5x1xf32> to vector<5x5xf32>
    %289 = arith.subf %285, %288 : vector<5x5xf32>
    %290 = math.exp %289 : vector<5x5xf32>
    %cst_134 = arith.constant dense<0.000000e+00> : vector<5xf32>
    %291 = vector.multi_reduction <add>, %290, %cst_134 [1] : vector<5x5xf32> to vector<5xf32>
    %292 = vector.shape_cast %291 : vector<5xf32> to vector<5x1xf32>
    %293 = vector.broadcast %292 : vector<5x1xf32> to vector<5x5xf32>
    %294 = arith.divf %290, %293 : vector<5x5xf32>
    %295 = arith.truncf %294 : vector<5x5xf32> to vector<5x5xbf16>
    %cst_135 = arith.constant dense<0.000000e+00> : vector<5x32xf32>
    %296 = tpu.matmul %295, %284, %cst_135 {dimension_numbers = #tpu.dot_dimension_numbers<[1], [0], [0], [1], [0, 0, 1, 1], [], []>} : vector<5x5xbf16>, vector<5x32xbf16>, vector<5x32xf32> -> vector<5x32xf32>
    %297 = arith.truncf %296 : vector<5x32xf32> to vector<5x32xbf16>
    %c1_136 = arith.constant 1 : index
    %c1_137 = arith.constant 1 : index
    %c0_138 = arith.constant 0 : index
    %c0_139 = arith.constant 0 : index
    %298 = vector.load %arg8[%c1_136, %c1_137, %c0_138, %c0_139] : memref<2x4x32x128xbf16, #tpu.memory_space<vmem>>, vector<1x1x32x128xbf16>
    %299 = vector.shape_cast %298 : vector<1x1x32x128xbf16> to vector<32x128xbf16>
    %cst_140 = arith.constant dense<0.000000e+00> : vector<5x128xf32>
    %300 = tpu.matmul %297, %299, %cst_140 {dimension_numbers = #tpu.dot_dimension_numbers<[1], [0], [0], [1], [0, 0, 1, 1], [], []>} : vector<5x32xbf16>, vector<32x128xbf16>, vector<5x128xf32> -> vector<5x128xf32>
    %301 = arith.addf %281, %300 : vector<5x128xf32>
    %302 = vector.extract_strided_slice %253 {offsets = [0, 64], sizes = [5, 32], strides = [1, 1]} : vector<5x128xbf16> to vector<5x32xbf16>
    %303 = vector.extract_strided_slice %255 {offsets = [0, 64], sizes = [5, 32], strides = [1, 1]} : vector<5x128xbf16> to vector<5x32xbf16>
    %304 = vector.extract_strided_slice %257 {offsets = [0, 64], sizes = [5, 32], strides = [1, 1]} : vector<5x128xbf16> to vector<5x32xbf16>
    %cst_141 = arith.constant dense<0.000000e+00> : vector<5x5xf32>
    %305 = tpu.matmul %302, %303, %cst_141 {dimension_numbers = #tpu.dot_dimension_numbers<[1], [1], [0], [0], [0, 0, 1, 0], [], []>} : vector<5x32xbf16>, vector<5x32xbf16>, vector<5x5xf32> -> vector<5x5xf32>
    %cst_142 = arith.constant dense<0xFF800000> : vector<5xf32>
    %306 = vector.multi_reduction <maximumf>, %305, %cst_142 [1] : vector<5x5xf32> to vector<5xf32>
    %307 = vector.shape_cast %306 : vector<5xf32> to vector<5x1xf32>
    %308 = vector.broadcast %307 : vector<5x1xf32> to vector<5x5xf32>
    %309 = arith.subf %305, %308 : vector<5x5xf32>
    %310 = math.exp %309 : vector<5x5xf32>
    %cst_143 = arith.constant dense<0.000000e+00> : vector<5xf32>
    %311 = vector.multi_reduction <add>, %310, %cst_143 [1] : vector<5x5xf32> to vector<5xf32>
    %312 = vector.shape_cast %311 : vector<5xf32> to vector<5x1xf32>
    %313 = vector.broadcast %312 : vector<5x1xf32> to vector<5x5xf32>
    %314 = arith.divf %310, %313 : vector<5x5xf32>
    %315 = arith.truncf %314 : vector<5x5xf32> to vector<5x5xbf16>
    %cst_144 = arith.constant dense<0.000000e+00> : vector<5x32xf32>
    %316 = tpu.matmul %315, %304, %cst_144 {dimension_numbers = #tpu.dot_dimension_numbers<[1], [0], [0], [1], [0, 0, 1, 1], [], []>} : vector<5x5xbf16>, vector<5x32xbf16>, vector<5x32xf32> -> vector<5x32xf32>
    %317 = arith.truncf %316 : vector<5x32xf32> to vector<5x32xbf16>
    %c1_145 = arith.constant 1 : index
    %c2_146 = arith.constant 2 : index
    %c0_147 = arith.constant 0 : index
    %c0_148 = arith.constant 0 : index
    %318 = vector.load %arg8[%c1_145, %c2_146, %c0_147, %c0_148] : memref<2x4x32x128xbf16, #tpu.memory_space<vmem>>, vector<1x1x32x128xbf16>
    %319 = vector.shape_cast %318 : vector<1x1x32x128xbf16> to vector<32x128xbf16>
    %cst_149 = arith.constant dense<0.000000e+00> : vector<5x128xf32>
    %320 = tpu.matmul %317, %319, %cst_149 {dimension_numbers = #tpu.dot_dimension_numbers<[1], [0], [0], [1], [0, 0, 1, 1], [], []>} : vector<5x32xbf16>, vector<32x128xbf16>, vector<5x128xf32> -> vector<5x128xf32>
    %321 = arith.addf %301, %320 : vector<5x128xf32>
    %322 = vector.extract_strided_slice %253 {offsets = [0, 96], sizes = [5, 32], strides = [1, 1]} : vector<5x128xbf16> to vector<5x32xbf16>
    %323 = vector.extract_strided_slice %255 {offsets = [0, 96], sizes = [5, 32], strides = [1, 1]} : vector<5x128xbf16> to vector<5x32xbf16>
    %324 = vector.extract_strided_slice %257 {offsets = [0, 96], sizes = [5, 32], strides = [1, 1]} : vector<5x128xbf16> to vector<5x32xbf16>
    %cst_150 = arith.constant dense<0.000000e+00> : vector<5x5xf32>
    %325 = tpu.matmul %322, %323, %cst_150 {dimension_numbers = #tpu.dot_dimension_numbers<[1], [1], [0], [0], [0, 0, 1, 0], [], []>} : vector<5x32xbf16>, vector<5x32xbf16>, vector<5x5xf32> -> vector<5x5xf32>
    %cst_151 = arith.constant dense<0xFF800000> : vector<5xf32>
    %326 = vector.multi_reduction <maximumf>, %325, %cst_151 [1] : vector<5x5xf32> to vector<5xf32>
    %327 = vector.shape_cast %326 : vector<5xf32> to vector<5x1xf32>
    %328 = vector.broadcast %327 : vector<5x1xf32> to vector<5x5xf32>
    %329 = arith.subf %325, %328 : vector<5x5xf32>
    %330 = math.exp %329 : vector<5x5xf32>
    %cst_152 = arith.constant dense<0.000000e+00> : vector<5xf32>
    %331 = vector.multi_reduction <add>, %330, %cst_152 [1] : vector<5x5xf32> to vector<5xf32>
    %332 = vector.shape_cast %331 : vector<5xf32> to vector<5x1xf32>
    %333 = vector.broadcast %332 : vector<5x1xf32> to vector<5x5xf32>
    %334 = arith.divf %330, %333 : vector<5x5xf32>
    %335 = arith.truncf %334 : vector<5x5xf32> to vector<5x5xbf16>
    %cst_153 = arith.constant dense<0.000000e+00> : vector<5x32xf32>
    %336 = tpu.matmul %335, %324, %cst_153 {dimension_numbers = #tpu.dot_dimension_numbers<[1], [0], [0], [1], [0, 0, 1, 1], [], []>} : vector<5x5xbf16>, vector<5x32xbf16>, vector<5x32xf32> -> vector<5x32xf32>
    %337 = arith.truncf %336 : vector<5x32xf32> to vector<5x32xbf16>
    %c1_154 = arith.constant 1 : index
    %c3_155 = arith.constant 3 : index
    %c0_156 = arith.constant 0 : index
    %c0_157 = arith.constant 0 : index
    %338 = vector.load %arg8[%c1_154, %c3_155, %c0_156, %c0_157] : memref<2x4x32x128xbf16, #tpu.memory_space<vmem>>, vector<1x1x32x128xbf16>
    %339 = vector.shape_cast %338 : vector<1x1x32x128xbf16> to vector<32x128xbf16>
    %cst_158 = arith.constant dense<0.000000e+00> : vector<5x128xf32>
    %340 = tpu.matmul %337, %339, %cst_158 {dimension_numbers = #tpu.dot_dimension_numbers<[1], [0], [0], [1], [0, 0, 1, 1], [], []>} : vector<5x32xbf16>, vector<32x128xbf16>, vector<5x128xf32> -> vector<5x128xf32>
    %341 = arith.addf %321, %340 : vector<5x128xf32>
    %c1_159 = arith.constant 1 : index
    %c0_160 = arith.constant 0 : index
    %c0_161 = arith.constant 0 : index
    %342 = vector.load %arg10[%c1_159, %c0_160, %c0_161] : memref<2x1x128xf32, #tpu.memory_space<vmem>>, vector<1x1x128xf32>
    %343 = vector.shape_cast %342 : vector<1x1x128xf32> to vector<1x128xf32>
    %c1_162 = arith.constant 1 : index
    %c0_163 = arith.constant 0 : index
    %c0_164 = arith.constant 0 : index
    %344 = vector.load %arg11[%c1_162, %c0_163, %c0_164] : memref<2x1x128xf32, #tpu.memory_space<vmem>>, vector<1x1x128xf32>
    %345 = vector.shape_cast %344 : vector<1x1x128xf32> to vector<1x128xf32>
    %cst_165 = arith.constant dense<0.000000e+00> : vector<5xf32>
    %346 = vector.multi_reduction <add>, %341, %cst_165 [1] : vector<5x128xf32> to vector<5xf32>
    %347 = vector.shape_cast %346 : vector<5xf32> to vector<5x1xf32>
    %cst_166 = arith.constant 1.280000e+02 : f32
    %348 = vector.broadcast %cst_166 : f32 to vector<5x1xf32>
    %349 = arith.divf %347, %348 : vector<5x1xf32>
    %350 = vector.broadcast %349 : vector<5x1xf32> to vector<5x128xf32>
    %351 = arith.subf %341, %350 : vector<5x128xf32>
    %352 = arith.mulf %351, %351 : vector<5x128xf32>
    %cst_167 = arith.constant dense<0.000000e+00> : vector<5xf32>
    %353 = vector.multi_reduction <add>, %352, %cst_167 [1] : vector<5x128xf32> to vector<5xf32>
    %354 = vector.shape_cast %353 : vector<5xf32> to vector<5x1xf32>
    %cst_168 = arith.constant 1.280000e+02 : f32
    %355 = vector.broadcast %cst_168 : f32 to vector<5x1xf32>
    %356 = arith.divf %354, %355 : vector<5x1xf32>
    %357 = vector.broadcast %349 : vector<5x1xf32> to vector<5x128xf32>
    %358 = arith.subf %341, %357 : vector<5x128xf32>
    %cst_169 = arith.constant 9.99999997E-7 : f32
    %359 = vector.broadcast %cst_169 : f32 to vector<5x1xf32>
    %360 = arith.addf %356, %359 : vector<5x1xf32>
    %361 = math.rsqrt %360 : vector<5x1xf32>
    %362 = vector.broadcast %361 : vector<5x1xf32> to vector<5x128xf32>
    %363 = arith.mulf %358, %362 : vector<5x128xf32>
    %364 = vector.broadcast %343 : vector<1x128xf32> to vector<5x128xf32>
    %365 = arith.mulf %363, %364 : vector<5x128xf32>
    %366 = vector.broadcast %345 : vector<1x128xf32> to vector<5x128xf32>
    %367 = arith.addf %365, %366 : vector<5x128xf32>
    %c1_170 = arith.constant 1 : index
    %c0_171 = arith.constant 0 : index
    %c0_172 = arith.constant 0 : index
    %368 = vector.load %arg12[%c1_170, %c0_171, %c0_172] : memref<2x128x256xbf16, #tpu.memory_space<vmem>>, vector<1x128x256xbf16>
    %369 = vector.shape_cast %368 : vector<1x128x256xbf16> to vector<128x256xbf16>
    %370 = arith.truncf %367 : vector<5x128xf32> to vector<5x128xbf16>
    %cst_173 = arith.constant dense<0.000000e+00> : vector<5x256xf32>
    %371 = tpu.matmul %370, %369, %cst_173 {dimension_numbers = #tpu.dot_dimension_numbers<[1], [0], [0], [1], [0, 0, 1, 1], [], []>} : vector<5x128xbf16>, vector<128x256xbf16>, vector<5x256xf32> -> vector<5x256xf32>
    %c1_174 = arith.constant 1 : index
    %c0_175 = arith.constant 0 : index
    %c0_176 = arith.constant 0 : index
    %372 = vector.load %arg13[%c1_174, %c0_175, %c0_176] : memref<2x1x256xf32, #tpu.memory_space<vmem>>, vector<1x1x256xf32>
    %373 = vector.shape_cast %372 : vector<1x1x256xf32> to vector<1x256xf32>
    %374 = vector.broadcast %373 : vector<1x256xf32> to vector<5x256xf32>
    %375 = arith.addf %371, %374 : vector<5x256xf32>
    %cst_177 = arith.constant 0.707106769 : f32
    %376 = vector.broadcast %cst_177 : f32 to vector<5x256xf32>
    %377 = arith.mulf %375, %376 : vector<5x256xf32>
    %378 = math.absf %377 : vector<5x256xf32>
    %cst_178 = arith.constant 0.327591091 : f32
    %379 = vector.broadcast %cst_178 : f32 to vector<5x256xf32>
    %380 = arith.mulf %379, %378 : vector<5x256xf32>
    %cst_179 = arith.constant 1.000000e+00 : f32
    %381 = vector.broadcast %cst_179 : f32 to vector<5x256xf32>
    %382 = arith.addf %381, %380 : vector<5x256xf32>
    %cst_180 = arith.constant 1.000000e+00 : f32
    %383 = vector.broadcast %cst_180 : f32 to vector<5x256xf32>
    %384 = arith.divf %383, %382 : vector<5x256xf32>
    %cst_181 = arith.constant 1.06140542 : f32
    %385 = vector.broadcast %cst_181 : f32 to vector<5x256xf32>
    %386 = arith.mulf %385, %384 : vector<5x256xf32>
    %cst_182 = arith.constant 1.45315206 : f32
    %387 = vector.broadcast %cst_182 : f32 to vector<5x256xf32>
    %388 = arith.subf %386, %387 : vector<5x256xf32>
    %389 = arith.mulf %388, %384 : vector<5x256xf32>
    %cst_183 = arith.constant 1.42141378 : f32
    %390 = vector.broadcast %cst_183 : f32 to vector<5x256xf32>
    %391 = arith.addf %389, %390 : vector<5x256xf32>
    %392 = arith.mulf %391, %384 : vector<5x256xf32>
    %cst_184 = arith.constant 0.284496725 : f32
    %393 = vector.broadcast %cst_184 : f32 to vector<5x256xf32>
    %394 = arith.subf %392, %393 : vector<5x256xf32>
    %395 = arith.mulf %394, %384 : vector<5x256xf32>
    %cst_185 = arith.constant 0.254829586 : f32
    %396 = vector.broadcast %cst_185 : f32 to vector<5x256xf32>
    %397 = arith.addf %395, %396 : vector<5x256xf32>
    %398 = arith.mulf %397, %384 : vector<5x256xf32>
    %cst_186 = arith.constant 0.000000e+00 : f32
    %399 = vector.broadcast %cst_186 : f32 to vector<5x256xf32>
    %400 = arith.subf %399, %378 : vector<5x256xf32>
    %401 = arith.mulf %400, %378 : vector<5x256xf32>
    %402 = math.exp %401 : vector<5x256xf32>
    %403 = arith.mulf %398, %402 : vector<5x256xf32>
    %cst_187 = arith.constant 1.000000e+00 : f32
    %404 = vector.broadcast %cst_187 : f32 to vector<5x256xf32>
    %405 = arith.subf %404, %403 : vector<5x256xf32>
    %cst_188 = arith.constant 0.000000e+00 : f32
    %406 = vector.broadcast %cst_188 : f32 to vector<5x256xf32>
    %407 = arith.cmpf olt, %377, %406 : vector<5x256xf32>
    %cst_189 = arith.constant 0.000000e+00 : f32
    %408 = vector.broadcast %cst_189 : f32 to vector<5x256xf32>
    %409 = arith.subf %408, %405 : vector<5x256xf32>
    %410 = arith.select %407, %409, %405 : vector<5x256xi1>, vector<5x256xf32>
    %cst_190 = arith.constant 5.000000e-01 : f32
    %411 = vector.broadcast %cst_190 : f32 to vector<5x256xf32>
    %412 = arith.mulf %411, %375 : vector<5x256xf32>
    %cst_191 = arith.constant 1.000000e+00 : f32
    %413 = vector.broadcast %cst_191 : f32 to vector<5x256xf32>
    %414 = arith.addf %413, %410 : vector<5x256xf32>
    %415 = arith.mulf %412, %414 : vector<5x256xf32>
    %c1_192 = arith.constant 1 : index
    %c0_193 = arith.constant 0 : index
    %c0_194 = arith.constant 0 : index
    %416 = vector.load %arg14[%c1_192, %c0_193, %c0_194] : memref<2x256x128xbf16, #tpu.memory_space<vmem>>, vector<1x256x128xbf16>
    %417 = vector.shape_cast %416 : vector<1x256x128xbf16> to vector<256x128xbf16>
    %418 = arith.truncf %415 : vector<5x256xf32> to vector<5x256xbf16>
    %cst_195 = arith.constant dense<0.000000e+00> : vector<5x128xf32>
    %419 = tpu.matmul %418, %417, %cst_195 {dimension_numbers = #tpu.dot_dimension_numbers<[1], [0], [0], [1], [0, 0, 1, 1], [], []>} : vector<5x256xbf16>, vector<256x128xbf16>, vector<5x128xf32> -> vector<5x128xf32>
    %c1_196 = arith.constant 1 : index
    %c0_197 = arith.constant 0 : index
    %c0_198 = arith.constant 0 : index
    %420 = vector.load %arg15[%c1_196, %c0_197, %c0_198] : memref<2x1x128xf32, #tpu.memory_space<vmem>>, vector<1x1x128xf32>
    %421 = vector.shape_cast %420 : vector<1x1x128xf32> to vector<1x128xf32>
    %422 = vector.broadcast %421 : vector<1x128xf32> to vector<5x128xf32>
    %423 = arith.addf %419, %422 : vector<5x128xf32>
    %424 = arith.addf %423, %341 : vector<5x128xf32>
    %425 = vector.extract_strided_slice %424 {offsets = [0, 0], sizes = [1, 128], strides = [1, 1]} : vector<5x128xf32> to vector<1x128xf32>
    %c0_199 = arith.constant 0 : index
    %c0_200 = arith.constant 0 : index
    %426 = vector.load %arg16[%c0_199, %c0_200] : memref<1x128xf32, #tpu.memory_space<vmem>>, vector<1x128xf32>
    %c0_201 = arith.constant 0 : index
    %c0_202 = arith.constant 0 : index
    %427 = vector.load %arg17[%c0_201, %c0_202] : memref<1x128xf32, #tpu.memory_space<vmem>>, vector<1x128xf32>
    %cst_203 = arith.constant dense<0.000000e+00> : vector<1xf32>
    %428 = vector.multi_reduction <add>, %425, %cst_203 [1] : vector<1x128xf32> to vector<1xf32>
    %429 = vector.shape_cast %428 : vector<1xf32> to vector<1x1xf32>
    %cst_204 = arith.constant 1.280000e+02 : f32
    %430 = vector.broadcast %cst_204 : f32 to vector<1x1xf32>
    %431 = arith.divf %429, %430 : vector<1x1xf32>
    %432 = vector.broadcast %431 : vector<1x1xf32> to vector<1x128xf32>
    %433 = arith.subf %425, %432 : vector<1x128xf32>
    %434 = arith.mulf %433, %433 : vector<1x128xf32>
    %cst_205 = arith.constant dense<0.000000e+00> : vector<1xf32>
    %435 = vector.multi_reduction <add>, %434, %cst_205 [1] : vector<1x128xf32> to vector<1xf32>
    %436 = vector.shape_cast %435 : vector<1xf32> to vector<1x1xf32>
    %cst_206 = arith.constant 1.280000e+02 : f32
    %437 = vector.broadcast %cst_206 : f32 to vector<1x1xf32>
    %438 = arith.divf %436, %437 : vector<1x1xf32>
    %439 = vector.broadcast %431 : vector<1x1xf32> to vector<1x128xf32>
    %440 = arith.subf %425, %439 : vector<1x128xf32>
    %cst_207 = arith.constant 9.99999997E-7 : f32
    %441 = vector.broadcast %cst_207 : f32 to vector<1x1xf32>
    %442 = arith.addf %438, %441 : vector<1x1xf32>
    %443 = math.rsqrt %442 : vector<1x1xf32>
    %444 = vector.broadcast %443 : vector<1x1xf32> to vector<1x128xf32>
    %445 = arith.mulf %440, %444 : vector<1x128xf32>
    %446 = arith.mulf %445, %426 : vector<1x128xf32>
    %447 = arith.addf %446, %427 : vector<1x128xf32>
    %c0_208 = arith.constant 0 : index
    %c0_209 = arith.constant 0 : index
    %448 = vector.load %arg18[%c0_208, %c0_209] : memref<128x128xbf16, #tpu.memory_space<vmem>>, vector<128x128xbf16>
    %449 = arith.truncf %447 : vector<1x128xf32> to vector<1x128xbf16>
    %cst_210 = arith.constant dense<0.000000e+00> : vector<1x128xf32>
    %450 = tpu.matmul %449, %448, %cst_210 {dimension_numbers = #tpu.dot_dimension_numbers<[1], [0], [0], [1], [0, 0, 1, 1], [], []>} : vector<1x128xbf16>, vector<128x128xbf16>, vector<1x128xf32> -> vector<1x128xf32>
    %c0_211 = arith.constant 0 : index
    %c0_212 = arith.constant 0 : index
    %451 = vector.load %arg19[%c0_211, %c0_212] : memref<1x128xf32, #tpu.memory_space<vmem>>, vector<1x128xf32>
    %452 = arith.addf %450, %451 : vector<1x128xf32>
    %c0_213 = arith.constant 0 : index
    %c0_214 = arith.constant 0 : index
    %c0_215 = arith.constant 0 : index
    %453 = vector.load %arg20[%c0_213, %c0_214, %c0_215] : memref<1x1x128xf32, #tpu.memory_space<vmem>>, vector<1x1x128xf32>
    %454 = vector.shape_cast %453 : vector<1x1x128xf32> to vector<1x128xf32>
    %455 = vector.shape_cast %452 : vector<1x128xf32> to vector<1x1x128xf32>
    tpu.vector_store %arg20[%c0_213, %c0_214, %c0_215], %455 {strides = array<i32>} : memref<1x1x128xf32, #tpu.memory_space<vmem>>, vector<1x1x128xf32>,
    return
  }
  func.func @transform_0(%arg0: i32) -> (i32, i32, i32) {
    %c0_i32 = arith.constant 0 : i32
    %c0_i32_0 = arith.constant 0 : i32
    %c0_i32_1 = arith.constant 0 : i32
    return %arg0, %c0_i32, %c0_i32_0 : i32, i32, i32
  }
  func.func @transform_1(%arg0: i32) -> (i32, i32) {
    %c0_i32 = arith.constant 0 : i32
    %c0_i32_0 = arith.constant 0 : i32
    %c0_i32_1 = arith.constant 0 : i32
    return %c0_i32, %c0_i32_0 : i32, i32
  }
  func.func @transform_2(%arg0: i32) -> (i32, i32) {
    %c0_i32 = arith.constant 0 : i32
    %c0_i32_0 = arith.constant 0 : i32
    %c0_i32_1 = arith.constant 0 : i32
    return %c0_i32, %c0_i32_0 : i32, i32
  }
  func.func @transform_3(%arg0: i32) -> (i32, i32, i32) {
    %c0_i32 = arith.constant 0 : i32
    %c0_i32_0 = arith.constant 0 : i32
    %c0_i32_1 = arith.constant 0 : i32
    %c0_i32_2 = arith.constant 0 : i32
    return %c0_i32, %c0_i32_0, %c0_i32_1 : i32, i32, i32
  }
  func.func @transform_4(%arg0: i32) -> (i32, i32, i32) {
    %c0_i32 = arith.constant 0 : i32
    %c0_i32_0 = arith.constant 0 : i32
    %c0_i32_1 = arith.constant 0 : i32
    %c0_i32_2 = arith.constant 0 : i32
    return %c0_i32, %c0_i32_0, %c0_i32_1 : i32, i32, i32
  }
  func.func @transform_5(%arg0: i32) -> (i32, i32, i32) {
    %c0_i32 = arith.constant 0 : i32
    %c0_i32_0 = arith.constant 0 : i32
    %c0_i32_1 = arith.constant 0 : i32
    %c0_i32_2 = arith.constant 0 : i32
    return %c0_i32, %c0_i32_0, %c0_i32_1 : i32, i32, i32
  }
  func.func @transform_6(%arg0: i32) -> (i32, i32, i32) {
    %c0_i32 = arith.constant 0 : i32
    %c0_i32_0 = arith.constant 0 : i32
    %c0_i32_1 = arith.constant 0 : i32
    %c0_i32_2 = arith.constant 0 : i32
    return %c0_i32, %c0_i32_0, %c0_i32_1 : i32, i32, i32
  }
  func.func @transform_7(%arg0: i32) -> (i32, i32, i32, i32) {
    %c0_i32 = arith.constant 0 : i32
    %c0_i32_0 = arith.constant 0 : i32
    %c0_i32_1 = arith.constant 0 : i32
    %c0_i32_2 = arith.constant 0 : i32
    %c0_i32_3 = arith.constant 0 : i32
    return %c0_i32, %c0_i32_0, %c0_i32_1, %c0_i32_2 : i32, i32, i32, i32
  }
  func.func @transform_8(%arg0: i32) -> (i32, i32, i32) {
    %c0_i32 = arith.constant 0 : i32
    %c0_i32_0 = arith.constant 0 : i32
    %c0_i32_1 = arith.constant 0 : i32
    %c0_i32_2 = arith.constant 0 : i32
    return %c0_i32, %c0_i32_0, %c0_i32_1 : i32, i32, i32
  }
  func.func @transform_9(%arg0: i32) -> (i32, i32, i32) {
    %c0_i32 = arith.constant 0 : i32
    %c0_i32_0 = arith.constant 0 : i32
    %c0_i32_1 = arith.constant 0 : i32
    %c0_i32_2 = arith.constant 0 : i32
    return %c0_i32, %c0_i32_0, %c0_i32_1 : i32, i32, i32
  }
  func.func @transform_10(%arg0: i32) -> (i32, i32, i32) {
    %c0_i32 = arith.constant 0 : i32
    %c0_i32_0 = arith.constant 0 : i32
    %c0_i32_1 = arith.constant 0 : i32
    %c0_i32_2 = arith.constant 0 : i32
    return %c0_i32, %c0_i32_0, %c0_i32_1 : i32, i32, i32
  }
  func.func @transform_11(%arg0: i32) -> (i32, i32, i32) {
    %c0_i32 = arith.constant 0 : i32
    %c0_i32_0 = arith.constant 0 : i32
    %c0_i32_1 = arith.constant 0 : i32
    %c0_i32_2 = arith.constant 0 : i32
    return %c0_i32, %c0_i32_0, %c0_i32_1 : i32, i32, i32
  }
  func.func @transform_12(%arg0: i32) -> (i32, i32, i32) {
    %c0_i32 = arith.constant 0 : i32
    %c0_i32_0 = arith.constant 0 : i32
    %c0_i32_1 = arith.constant 0 : i32
    %c0_i32_2 = arith.constant 0 : i32
    return %c0_i32, %c0_i32_0, %c0_i32_1 : i32, i32, i32
  }
  func.func @transform_13(%arg0: i32) -> (i32, i32, i32) {
    %c0_i32 = arith.constant 0 : i32
    %c0_i32_0 = arith.constant 0 : i32
    %c0_i32_1 = arith.constant 0 : i32
    %c0_i32_2 = arith.constant 0 : i32
    return %c0_i32, %c0_i32_0, %c0_i32_1 : i32, i32, i32
  }
  func.func @transform_14(%arg0: i32) -> (i32, i32, i32) {
    %c0_i32 = arith.constant 0 : i32
    %c0_i32_0 = arith.constant 0 : i32
    %c0_i32_1 = arith.constant 0 : i32
    %c0_i32_2 = arith.constant 0 : i32
    return %c0_i32, %c0_i32_0, %c0_i32_1 : i32, i32, i32
  }
  func.func @transform_15(%arg0: i32) -> (i32, i32) {
    %c0_i32 = arith.constant 0 : i32
    %c0_i32_0 = arith.constant 0 : i32
    %c0_i32_1 = arith.constant 0 : i32
    return %c0_i32, %c0_i32_0 : i32, i32
  }
  func.func @transform_16(%arg0: i32) -> (i32, i32) {
    %c0_i32 = arith.constant 0 : i32
    %c0_i32_0 = arith.constant 0 : i32
    %c0_i32_1 = arith.constant 0 : i32
    return %c0_i32, %c0_i32_0 : i32, i32
  }
  func.func @transform_17(%arg0: i32) -> (i32, i32) {
    %c0_i32 = arith.constant 0 : i32
    %c0_i32_0 = arith.constant 0 : i32
    %c0_i32_1 = arith.constant 0 : i32
    return %c0_i32, %c0_i32_0 : i32, i32
  }
  func.func @transform_18(%arg0: i32) -> (i32, i32) {
    %c0_i32 = arith.constant 0 : i32
    %c0_i32_0 = arith.constant 0 : i32
    %c0_i32_1 = arith.constant 0 : i32
    return %c0_i32, %c0_i32_0 : i32, i32
  }
  func.func @transform_19(%arg0: i32) -> (i32, i32, i32) {
    %c0_i32 = arith.constant 0 : i32
    %c0_i32_0 = arith.constant 0 : i32
    %c0_i32_1 = arith.constant 0 : i32
    return %arg0, %c0_i32, %c0_i32_0 : i32, i32, i32
  }
}

</mosaic_0001>

<bundles_post_ra>
// kernel: vit_forward.1
= control target key start
LH: loop header
LB: loop body
LE: loop exit
PB: predicated region body
PF: predicated region fallthrough
CT: control target
= control target key end

     0   :  { %s5939_s0 = inlined_call_operand.vmem [shape: f32[2,5,768], index: 0, kind: input, shape index: {}]   ;;  %s5940_s1 = inlined_call_operand.vmem [shape: bf16[768,128], index: 1, kind: input, shape index: {}]   ;;  %s5941_s2 = inlined_call_operand.vmem [shape: f32[5,128], index: 2, kind: input, shape index: {}]   ;;  %s5942_s3 = inlined_call_operand.vmem [shape: f32[2,1,128], index: 3, kind: input, shape index: {}]   ;;  %s5943_s4 = inlined_call_operand.vmem [shape: f32[2,1,128], index: 4, kind: input, shape index: {}]   ;;  %s5944_s5 = inlined_call_operand.vmem [shape: bf16[2,128,384], index: 5, kind: input, shape index: {}]   ;;  %s5945_s6 = inlined_call_operand.vmem [shape: f32[2,1,384], index: 6, kind: input, shape index: {}]   ;;  %s5946_s7 = inlined_call_operand.vmem [shape: bf16[2,4,32,128], index: 7, kind: input, shape index: {}]   ;;  %s5947_s8 = inlined_call_operand.vmem [shape: f32[2,1,128], index: 8, kind: input, shape index: {}]   ;;  %s5948_s9 = inlined_call_operand.vmem [shape: f32[2,1,128], index: 9, kind: input, shape index: {}]   ;;  %s5949_s10 = inlined_call_operand.vmem [shape: f32[2,1,128], index: 10, kind: input, shape index: {}]   ;;  %s5950_s11 = inlined_call_operand.vmem [shape: bf16[2,128,256], index: 11, kind: input, shape index: {}]   ;;  %s5951_s12 = inlined_call_operand.vmem [shape: f32[2,1,256], index: 12, kind: input, shape index: {}]   ;;  %s5952_s13 = inlined_call_operand.vmem [shape: bf16[2,256,128], index: 13, kind: input, shape index: {}]   ;;  %s5953_s14 = inlined_call_operand.vmem [shape: f32[2,1,128], index: 14, kind: input, shape index: {}]   ;;  %s5954_s15 = inlined_call_operand.vmem [shape: f32[1,128], index: 15, kind: input, shape index: {}]   ;;  %s5955_s16 = inlined_call_operand.vmem [shape: f32[1,128], index: 16, kind: input, shape index: {}]   ;;  %s5956_s17 = inlined_call_operand.vmem [shape: bf16[128,128], index: 17, kind: input, shape index: {}]   ;;  %s5957_s18 = inlined_call_operand.vmem [shape: f32[1,128], index: 18, kind: input, shape index: {}]   ;;  %s5958_s19 = inlined_call_operand.hbm [shape: f32[2,1,128], index: 19, kind: output, shape index: {}]  }
   0x1   :  { %5973 = sst [smem:[#allocation12_spill]] %s5939_s0 }
   0x2   :  { %5974 = sst [smem:[#allocation13_spill]] %s5940_s1 }
   0x3   :  { %5975 = sst [smem:[#allocation14_spill]] %s5941_s2 }
   0x4   :  { %5976 = sst [smem:[#allocation15_spill]] %s5942_s3 }
   0x5   :  { %5977 = sst [smem:[#allocation16_spill]] %s5943_s4 }
   0x6   :  { %5978 = sst [smem:[#allocation17_spill]] %s5944_s5 }
   0x7   :  { %5979 = sst [smem:[#allocation18_spill]] %s5957_s18 }
   0x8   :  { %24 = vsyncpa [#allocation3], 0 }
   0x9   :  { %26 = vsyncpa [#allocation3 + $0x1], 0  ;;  %s4777_s0 = smov 0   ;;  %s4779_s30 = smov 0  }
   0xa   :  { %s4781_s20 = smov 0   ;;  %s4783_s21 = smov 0  }
   0xb LB: > { %5980 = sst [smem:[#allocation5_spill]] %s4658_s0  ;;  %s4798_s1 = sadd.s32 4294967295, %s4670_s21   ;;  %s4670_s21 = sphi %s4783_s21, %s6002_s21   ;;  %s4666_s20 = sphi %s4781_s20, %s6004_s20   ;;  %s4662_s30 = sphi %s4779_s30, %s6006_s30   ;;  %s4658_s0 = sphi %s4777_s0, %s6005_s0  }
   0xc   : > { %5981 = sst [smem:[#allocation6_spill]] %s4666_s20  ;;  %s3416_s22 = sadd.s32 4294967294, %s4670_s21  }
   0xd   : > { %5982 = sst [smem:[#allocation7_spill]] %s4670_s21  ;;  %s4802_s2 = sadd.s32 1, %s4670_s21  }
   0xe   : > { %5983 = sst [smem:[#allocation8_spill]] %s4802_s2  ;;  %s443_s23 = sadd.s32 1, %s4666_s20 }
   0xf   : > { %s440_s24 = ssub.s32 %s4670_s21, %s4802_s2  ;;  %p453_p0 = scmp.ne.s32.totalorder %s4666_s20, %s4662_s30 }
  0x10   : > { %p441_p1 = scmp.eq.s32.totalorder %s440_s24, 0  ;;  %p454_p2 = scmp.eq.s32.totalorder %s4798_s1, 1 }
  0x11   : > { %p459_p3 = scmp.ne.s32.totalorder %s4662_s30, %s4658_s0  ;;  %p460_p4 = scmp.eq.s32.totalorder %s3416_s22, 1 }
  0x12   : > { %s4813_s25 = scalar_select %p441_p1, %s4666_s20, %s443_s23  }
  0x13   : > { %p4815_p5 = por %p454_p2, %p453_p0  ;;  %p4819_p6 = por %p460_p4, %p459_p3 }
  0x14   : > { %5984 = sst [smem:[#allocation9_spill]] %s4813_s25  ;;  %p3419_p7 = scmp.ge.s32.totalorder %s4670_s21, 1 }
  0x15   : > { %s5985_s3 = scalar_select %p4815_p5, 1, 0 }
  0x16   : > { %s5987_s26 = scalar_select %p4819_p6, 1, 0 }
  0x17   : > { %5986 = sst [smem:[#allocation10_spill]] %s5985_s3  ;;  %p540_p8 = scmp.lt.s32.totalorder %s4670_s21, 3 }
  0x18   : > { %5988 = sst [smem:[#allocation11_spill]] %s5987_s26 }
  0x19   : > { %p541_p9 = pnand %p3419_p7, %p540_p8 }
  0x1a   : > { %s5989_s29 = sld [smem:[#allocation13_spill]] (!%p541_p9)  ;;  %p595_p10 = scmp.lt.s32.totalorder (!%p541_p9), %s4798_s1, 1 }
  0x1b   : > { %544 = sbr.rel (%p541_p9) target bundleno = 5302 (0x14b6), region = 96  ;;  %s5990_s18 = sld [smem:[#allocation12_spill]] (!%p541_p9) }
  0x1c   : > { %s5991_s3 = sld [smem:[#allocation14_spill]] (!%p541_p9)  ;;  %s5995_s0 = smov (!%p541_p9), 64  }
  0x1d   : > { %s5992_s5 = sld [smem:[#allocation17_spill]] (!%p541_p9)  ;;  %s4628_s26 = scalar_lea.hbm (!%p541_p9), %s5958_s19, 2 }
  0x1e   : > { %s5993_s27 = sld [smem:[#allocation15_spill]] (!%p541_p9) }
  0x1f   : > { %s5994_s4 = sld [smem:[#allocation16_spill]] (!%p541_p9) }
  0x20   : > { %v4314_v0 = vld [vmem:[%s5989_s29 + $0x38] sm:$0xff]  ;;  %v4313_v2 = vld [vmem:[%s5989_s29 + $0x30] sm:$0xff]  ;;  %v4312_v8 = vld [vmem:[%s5989_s29 + $0x28] sm:$0xff]  ;;  %s596_s2 = scalar_select %p595_p10, %s4798_s1, 1  ;;  %vm1078_vm0 = vcmask 1044480   ;;  %vm1383_vm5 = vcmask 1041408  }
  0x21   : > { %v4322_v1 = vld [vmem:[%s5989_s29 + $0x78] sm:$0xff]  ;;  %998 = vmatpush.bf16.msra.mxu0 %v4314_v0  ;;  %v4321_v3 = vld [vmem:[%s5989_s29 + $0x70] sm:$0xff]  ;;  %v4320_v9 = vld [vmem:[%s5989_s29 + $0x68] sm:$0xff]  ;;  %vm1384_vm6 = vcmask 1042432   ;;  %vm1333_vm7 = vcmask 261120   ;;  %vm1353_vm8 = vcmask 36864  }
  0x22   : > { %1011 = vmatpush.bf16.msra.mxu1 %v4322_v1  ;;  %v4330_v4 = vld [vmem:[%s5989_s29 + $0xb8] sm:$0xff]  ;;  %v4329_v6 = vld [vmem:[%s5989_s29 + $0xb0] sm:$0xff]  ;;  %v4328_v10 = vld [vmem:[%s5989_s29 + $0xa8] sm:$0xff]  ;;  %s4491_s25 = smul.u32 48, %s596_s2  ;;  %s5969_s2 = smov 32   ;;  %vm1379_vm13 = vcmask 39936  }
  0x23   : > { %v4338_v5 = vld [vmem:[%s5989_s29 + $0xf8] sm:$0xff]  ;;  %1024 = vmatpush.bf16.msra.mxu2 %v4330_v4  ;;  %v4337_v7 = vld [vmem:[%s5989_s29 + $0xf0] sm:$0xff]  ;;  %v4336_v11 = vld [vmem:[%s5989_s29 + $0xe8] sm:$0xff]  ;;  %s5998_s24 = sld [smem:[#allocation18_spill]] }
  0x24   : > { %1037 = vmatpush.bf16.msra.mxu3 %v4338_v5  ;;  %v4311_v12 = vld [vmem:[%s5989_s29 + $0x20] sm:$0xff]  ;;  %v4310_v16 = vld [vmem:[%s5989_s29 + $0x18] sm:$0xff]  ;;  %v4309_v19 = vld [vmem:[%s5989_s29 + $0x10] sm:$0xff]  ;;  %s4908_s23 = scalar_lea.vmem %s5990_s18, %s4491_s25  ;;  %s3357_s25 = scalar_lea.hbm %s5958_s19, %s4798_s1 }
  0x25   : > { %999 = vmatpush.bf16.msra.mxu0 %v4313_v2  ;;  %v4319_v13 = vld [vmem:[%s5989_s29 + $0x60] sm:$0xff]  ;;  %v4318_v17 = vld [vmem:[%s5989_s29 + $0x58] sm:$0xff]  ;;  %v4317_v20 = vld [vmem:[%s5989_s29 + $0x50] sm:$0xff] }
  0x26   : > { %1012 = vmatpush.bf16.msra.mxu1 %v4321_v3  ;;  %v4327_v14 = vld [vmem:[%s5989_s29 + $0xa0] sm:$0xff]  ;;  %v4326_v18 = vld [vmem:[%s5989_s29 + $0x98] sm:$0xff]  ;;  %v4325_v22 = vld [vmem:[%s5989_s29 + $0x90] sm:$0xff] }
  0x27   : > { %1025 = vmatpush.bf16.msra.mxu2 %v4329_v6  ;;  %v4335_v15 = vld [vmem:[%s5989_s29 + $0xe0] sm:$0xff]  ;;  %v4334_v21 = vld [vmem:[%s5989_s29 + $0xd8] sm:$0xff]  ;;  %v4333_v23 = vld [vmem:[%s5989_s29 + $0xd0] sm:$0xff] }
  0x28   : > { %1038 = vmatpush.bf16.msra.mxu3 %v4337_v7  ;;  %v4308_v24 = vld [vmem:[%s5989_s29 + $0x8] sm:$0xff]  ;;  %v4307_v27 = vld [vmem:[%s5989_s29] sm:$0xff]  ;;  %v4346_v32 = vld [vmem:[%s5989_s29 + $0x138] sm:$0xff] }
  0x29   : > { %1000 = vmatpush.bf16.msra.mxu0 %v4312_v8  ;;  %v4316_v25 = vld [vmem:[%s5989_s29 + $0x48] sm:$0xff]  ;;  %v4315_v29 = vld [vmem:[%s5989_s29 + $0x40] sm:$0xff]  ;;  %v4354_v33 = vld [vmem:[%s5989_s29 + $0x178] sm:$0xff] }
  0x2a   : > { %1013 = vmatpush.bf16.msra.mxu1 %v4320_v9  ;;  %v4324_v26 = vld [vmem:[%s5989_s29 + $0x88] sm:$0xff]  ;;  %v601_v30 = vld [vmem:[%s4908_s23] sm:$0x1f]  ;;  %v603_v37 = vld [vmem:[%s4908_s23 + $0x10] sm:$0x1f] }
  0x2b   : > { %1026 = vmatpush.bf16.msra.mxu2 %v4328_v10  ;;  %v4332_v28 = vld [vmem:[%s5989_s29 + $0xc8] sm:$0xff]  ;;  %v4323_v34 = vld [vmem:[%s5989_s29 + $0x80] sm:$0xff]  ;;  %v703_v35 = vpack.c.bf16 %v601_v30, %v601_v30  ;;  %v604_v39 = vld [vmem:[%s4908_s23 + $0x18] sm:$0x1f]  ;;  %v705_v42 = vpack.c.bf16 %v603_v37, %v603_v37 }
  0x2c   : > { %1039 = vmatpush.bf16.msra.mxu3 %v4336_v11  ;;  %v602_v31 = vld [vmem:[%s4908_s23 + $0x8] sm:$0x1f]  ;;  %v4331_v38 = vld [vmem:[%s5989_s29 + $0xc0] sm:$0xff]  ;;  %v4345_v40 = vld [vmem:[%s5989_s29 + $0x130] sm:$0xff]  ;;  %v706_v43 = vpack.c.bf16 %v604_v39, %v604_v39 }
  0x2d   : > { %1001 = vmatpush.bf16.msra.mxu0 %v4311_v12  ;;  %v704_v36 = vpack.c.bf16 %v602_v31, %v602_v31  ;;  %v4353_v41 = vld [vmem:[%s5989_s29 + $0x170] sm:$0xff]  ;;  %v4344_v44 = vld [vmem:[%s5989_s29 + $0x128] sm:$0xff]  ;;  %v4343_v46 = vld [vmem:[%s5989_s29 + $0x120] sm:$0xff] }
  0x2e   : > { %1014 = vmatpush.bf16.msra.mxu1 %v4319_v13  ;;  %v4352_v45 = vld [vmem:[%s5989_s29 + $0x168] sm:$0xff]  ;;  %v4351_v47 = vld [vmem:[%s5989_s29 + $0x160] sm:$0xff]  ;;  %v4342_v48 = vld [vmem:[%s5989_s29 + $0x118] sm:$0xff] }
  0x2f   : > { %1027 = vmatpush.bf16.msra.mxu2 %v4327_v14  ;;  %v4350_v49 = vld [vmem:[%s5989_s29 + $0x158] sm:$0xff]  ;;  %v4341_v50 = vld [vmem:[%s5989_s29 + $0x110] sm:$0xff]  ;;  %v4340_v52 = vld [vmem:[%s5989_s29 + $0x108] sm:$0xff] }
  0x30   : > { %1040 = vmatpush.bf16.msra.mxu3 %v4335_v15  ;;  %v4349_v51 = vld [vmem:[%s5989_s29 + $0x150] sm:$0xff]  ;;  %v4348_v53 = vld [vmem:[%s5989_s29 + $0x148] sm:$0xff]  ;;  %v4339_v54 = vld [vmem:[%s5989_s29 + $0x100] sm:$0xff] }
  0x31   : > { %1002 = vmatpush.bf16.msra.mxu0 %v4310_v16  ;;  %v4347_v55 = vld [vmem:[%s5989_s29 + $0x140] sm:$0xff]  ;;  %v606_v57 = vld [vmem:[%s4908_s23 + $0x28] sm:$0x1f]  ;;  %v4672_v16 = vmov 128.0   ;;  %v3687_v37 = vld [vmem:[%s5992_s5 + $0x90] sm:$0xf] }
  0x32   : > { %1015 = vmatpush.bf16.msra.mxu1 %v4318_v17  ;;  %v605_v56 = vld [vmem:[%s4908_s23 + $0x20] sm:$0x1f]  ;;  %v708_v59 = vpack.c.bf16 %v606_v57, %v606_v57  ;;  %4548 = vrcp.f32 %v4672_v16  ;;  %v3699_v17 = vld [vmem:[%s5992_s5 + $0xa8] sm:$0xf]  ;;  %v4373_v39 = vld [vmem:[%s5992_s5 + $0x94] sm:$0xf] }
  0x33   : > { %1028 = vmatpush.bf16.msra.mxu2 %v4326_v18  ;;  %v707_v58 = vpack.c.bf16 %v605_v56, %v605_v56  ;;  %v709_v2 = vld [vmem:[%s5991_s3] sm:$0x1f]  ;;  %v4377_v18 = vld [vmem:[%s5992_s5 + $0xb0] sm:$0xf0]  ;;  %v4368_v56 = vld [vmem:[%s5992_s5 + $0x68] sm:$0xf0] }
  0x34   : > { %1041 = vmatpush.bf16.msra.mxu3 %v4334_v21  ;;  %v3701_v21 = vld [vmem:[%s5992_s5 + $0xb4] sm:$0xf0]  ;;  %v4367_v57 = vld [vmem:[%s5992_s5 + $0x64] sm:$0xf]  ;;  %s4674_s3 = smov 96   ;;  %s5971_s23 = smov 64  }
  0x35   : > { %1003 = vmatpush.bf16.msra.mxu0 %v4309_v19  ;;  %v4376_v19 = vld [vmem:[%s5992_s5 + $0xac] sm:$0xf]  ;;  %v4363_v16 = vld [vmem:[%s5992_s5 + $0x40] sm:$0xf0] }
  0x36   : > { %1016 = vmatpush.bf16.msra.mxu1 %v4317_v20  ;;  %v3700_v20 = vor.u32 %v4377_v18, %v3699_v17 }
  0x37   : > { %1029 = vmatpush.bf16.msra.mxu2 %v4325_v22  ;;  %v3707_v22 = vld [vmem:[%s5992_s5 + $0xb0] sm:$0xf] }
  0x38   : > { %1042 = vmatpush.bf16.msra.mxu3 %v4333_v23  ;;  %v4378_v23 = vld [vmem:[%s5992_s5 + $0xb8] sm:$0xf0] }
  0x39   : > { %1004 = vmatpush.bf16.msra.mxu0 %v4308_v24  ;;  %v3704_v24 = vor.u32 %v4376_v19, %v3701_v21  ;;  %v3627_v19 = vld [vmem:[%s5992_s5 + $0x18] sm:$0xf]  ;;  %v4358_v21 = vld [vmem:[%s5992_s5 + $0x1c] sm:$0xf] }
  0x3a   : > { %1017 = vmatpush.bf16.msra.mxu1 %v4316_v25  ;;  %v3708_v25 = vor.u32 %v4378_v23, %v3707_v22  ;;  %v3629_v23 = vld [vmem:[%s5992_s5 + $0x24] sm:$0xf0] }
  0x3b   : > { %1030 = vmatpush.bf16.msra.mxu2 %v4324_v26  ;;  %v4549_v26 = vpop.eup %4548 }
  0x3c   : > { %1043 = vmatpush.bf16.msra.mxu3 %v4332_v28  ;;  %vm1087_vm1 = vweird.f32 %v4549_v26 }
  0x3d   : > { %1005 = vmatpush.bf16.msra.mxu0 %v4307_v27  ;;  %v1083_v27 = vmul.f32 128.0, %v4549_v26 }
  0x3e   : > { %1018 = vmatpush.bf16.msra.mxu1 %v4315_v29 }
  0x3f   : > { %1031 = vmatpush.bf16.msra.mxu2 %v4323_v34  ;;  %v1084_v28 = vsub.f32 1.0, %v1083_v27 }
  0x40   : > { %1006 = vmatmul.bf16.vlgmr.msra.gmra.mxu0 %v703_v35  ;;  %1044 = vmatpush.bf16.msra.mxu3 %v4331_v38  ;;  %v4374_v38 = vld [vmem:[%s5992_s5 + $0x98] sm:$0xf0] }
  0x41   : > { %1050 = vmatpush.bf16.msrb.mxu0 %v4346_v32  ;;  %1019 = vmatmul.bf16.vlgmr.msra.gmra.mxu1 %v704_v36  ;;  %v1085_v29 = vmul.f32 %v4549_v26, %v1084_v28  ;;  %v3615_v28 = vld [vmem:[%s5992_s5] sm:$0xf] }
  0x42   : > { %1063 = vmatpush.bf16.msrb.mxu1 %v4354_v33  ;;  %1032 = vmatmul.bf16.vlgmr.msra.gmra.mxu2 %v705_v42  ;;  %v3695_v42 = vld [vmem:[%s5992_s5 + $0x98] sm:$0xf] }
  0x43   : > { %1045 = vmatmul.bf16.vlgmr.msra.gmra.mxu3 %v706_v43  ;;  %1285 = vmatpush.bf16.msrb.mxu2 %v3700_v20  ;;  %v1086_v30 = vadd.f32 %v4549_v26, %v1085_v29  ;;  %v4375_v43 = vld [vmem:[%s5992_s5 + $0xa0] sm:$0xf0]  ;;  %v4356_v29 = vld [vmem:[%s5992_s5 + $0x8] sm:$0xf0] }
  0x44   : > { %1298 = vmatpush.bf16.msrb.mxu3 %v3704_v24  ;;  %v4359_v20 = vld [vmem:[%s5992_s5 + $0x20] sm:$0xf0]  ;;  %v3635_v24 = vld [vmem:[%s5992_s5 + $0x20] sm:$0xf] }
  0x45   : > { %1051 = vmatpush.bf16.msrb.mxu0 %v4345_v40  ;;  %v5007_v31 = vsel %vm1087_vm1, %v4549_v26, %v1086_v30  ;;  %v3688_v40 = vor.u32 %v4374_v38, %v3687_v37  ;;  %v3628_v22 = vor.u32 %v4359_v20, %v3627_v19  ;;  %v3632_v26 = vor.u32 %v4358_v21, %v3629_v23  ;;  %v4355_v30 = vld [vmem:[%s5992_s5 + $0x4] sm:$0xf] }
  0x46   : > { %1064 = vmatpush.bf16.msrb.mxu1 %v4353_v41  ;;  %v3689_v41 = vld [vmem:[%s5992_s5 + $0x9c] sm:$0xf0] }
  0x47   : > { %1286 = vmatpush.bf16.msrb.mxu2 %v3688_v40 }
  0x49   : > { %1052 = vmatpush.bf16.msrb.mxu0 %v4344_v44  ;;  %v3692_v44 = vor.u32 %v4373_v39, %v3689_v41 }
  0x4a   : > { %1065 = vmatpush.bf16.msrb.mxu1 %v4352_v45  ;;  %v3696_v45 = vor.u32 %v4375_v43, %v3695_v42 }
  0x4b   : > { %1299 = vmatpush.bf16.msrb.mxu3 %v3692_v44 }
  0x4d   : > { %1053 = vmatpush.bf16.msrb.mxu0 %v4343_v46  ;;  %v3675_v46 = vld [vmem:[%s5992_s5 + $0x78] sm:$0xf] }
  0x4e   : > { %1066 = vmatpush.bf16.msrb.mxu1 %v4351_v47  ;;  %v4371_v47 = vld [vmem:[%s5992_s5 + $0x80] sm:$0xf0] }
  0x51   : > { %1054 = vmatpush.bf16.msrb.mxu0 %v4342_v48  ;;  %v4370_v48 = vld [vmem:[%s5992_s5 + $0x7c] sm:$0xf] }
  0x52   : > { %1067 = vmatpush.bf16.msrb.mxu1 %v4350_v49  ;;  %v3676_v49 = vor.u32 %v4371_v47, %v3675_v46 }
  0x54   : > { %1287 = vmatpush.bf16.msrb.mxu2 %v3676_v49 }
  0x55   : > { %1055 = vmatpush.bf16.msrb.mxu0 %v4341_v50  ;;  %v3677_v50 = vld [vmem:[%s5992_s5 + $0x84] sm:$0xf0] }
  0x56   : > { %1068 = vmatpush.bf16.msrb.mxu1 %v4349_v51  ;;  %v3683_v51 = vld [vmem:[%s5992_s5 + $0x80] sm:$0xf] }
  0x59   : > { %1056 = vmatpush.bf16.msrb.mxu0 %v4340_v52  ;;  %v4372_v52 = vld [vmem:[%s5992_s5 + $0x88] sm:$0xf0] }
  0x5a   : > { %1069 = vmatpush.bf16.msrb.mxu1 %v4348_v53  ;;  %v3680_v53 = vor.u32 %v4370_v48, %v3677_v50  ;;  %v4536_v48 = vld [vmem:[%s5993_s27] ss:$0 sm:$0xff] }
  0x5c   : > { %1300 = vmatpush.bf16.msrb.mxu3 %v3680_v53 }
  0x5d   : > { %1057 = vmatpush.bf16.msrb.mxu0 %v4339_v54  ;;  %v3684_v54 = vor.u32 %v4372_v52, %v3683_v51  ;;  %v4537_v51 = vld [vmem:[%s5994_s4] ss:$0 sm:$0xff] }
  0x5e   : > { %1070 = vmatpush.bf16.msrb.mxu1 %v4347_v55  ;;  %v3663_v55 = vld [vmem:[%s5992_s5 + $0x60] sm:$0xf] }
  0x60   : > { %1058 = vmatmul.bf16.vlgmr.msrb.gmra.mxu0 %v707_v58  ;;  %v3664_v58 = vor.u32 %v4368_v56, %v3663_v55  ;;  %v1149_v55 = vld [vmem:[%s5945_s6] sm:$0x7] }
  0x61   : > { %1071 = vmatmul.bf16.vlgmr.msrb.gmra.mxu1 %v708_v59  ;;  %1311 = vmatpush.bf16.msra.mxu0 %v3708_v25  ;;  %v3665_v59 = vld [vmem:[%s5992_s5 + $0x6c] sm:$0xf0]  ;;  %v4360_v25 = vld [vmem:[%s5992_s5 + $0x28] sm:$0xf0]  ;;  %v1153_v56 = vperm.slane %v1149_v55, 2 }
  0x62   : > { %1288 = vmatpush.bf16.msrb.mxu2 %v3664_v58  ;;  %v3636_v27 = vor.u32 %v4360_v25, %v3635_v24 }
  0x65   : > { %1312 = vmatpush.bf16.msra.mxu0 %v3696_v45 }
  0x69   : > { %1313 = vmatpush.bf16.msra.mxu0 %v3684_v54 }
  0xbd   : > { %v1007_v60 = vpop.f32.mrf.mxu0 }
  0xbe   : > { %v1020_v61 = vpop.f32.mrf.mxu1  ;;  %v1008_v3 = vadd.f32 %v1007_v60, %v709_v2  ;;  %v3671_v60 = vld [vmem:[%s5992_s5 + $0x68] sm:$0xf]  ;;  %v4364_v2 = vld [vmem:[%s5992_s5 + $0x4c] sm:$0xf] }
  0xc0   : > { %v1021_v6 = vadd.f32 %v1020_v61, %v1008_v3  ;;  %v4369_v61 = vld [vmem:[%s5992_s5 + $0x70] sm:$0xf0] }
  0xc5   : > { %v1009_v62 = vpop.f32.mrf.mxu0  ;;  %v1033_v0 = vpop.f32.mrf.mxu2 }
  0xc6   : > { %v1022_v63 = vpop.f32.mrf.mxu1  ;;  %v1046_v1 = vpop.f32.mrf.mxu3  ;;  %v1034_v7 = vadd.f32 %v1033_v0, %v1021_v6  ;;  %v3668_v62 = vor.u32 %v4367_v57, %v3665_v59  ;;  %v3651_v0 = vld [vmem:[%s5992_s5 + $0x48] sm:$0xf]  ;;  %v4366_v6 = vld [vmem:[%s5992_s5 + $0x58] sm:$0xf0]  ;;  %v4673_v57 = vmov 65535  }
  0xc7   : > { %v3672_v63 = vor.u32 %v4369_v61, %v3671_v60  ;;  %v1385_v58 = vsel %vm1383_vm5, 4294967295, %v4673_v57  ;;  %v1151_v61 = vperm.slane %v1149_v55, 0 }
  0xc8   : > { %v1047_v8 = vadd.f32 %v1046_v1, %v1034_v7  ;;  %1301 = vmatpush.bf16.msrb.mxu3 %v3668_v62  ;;  %v4365_v1 = vld [vmem:[%s5992_s5 + $0x50] sm:$0xf0]  ;;  %v5153_v60 = vsel %vm1384_vm6, %v1385_v58, 0  ;;  %v1152_v62 = vperm.slane %v1149_v55, 1  ;;  %v4380_v58 = vld [vmem:[%s5946_s7 + $0x8] sm:$0xff] }
  0xc9   : > { %1314 = vmatpush.bf16.msra.mxu0 %v3672_v63  ;;  %v3652_v3 = vor.u32 %v4365_v1, %v3651_v0 }
  0xcb   : > { %1289 = vmatpush.bf16.msrb.mxu2 %v3652_v3 }
  0xcd   : > { %v1035_v4 = vpop.f32.mrf.mxu2 }
  0xce   : > { %v1048_v5 = vpop.f32.mrf.mxu3  ;;  %v3653_v4 = vld [vmem:[%s5992_s5 + $0x54] sm:$0xf0] }
  0xcf   : > { %v3659_v5 = vld [vmem:[%s5992_s5 + $0x50] sm:$0xf]  ;;  %v3656_v7 = vor.u32 %v4364_v2, %v3653_v4 }
  0xd1   : > { %1302 = vmatpush.bf16.msrb.mxu3 %v3656_v7 }
  0xdd   : > { %v1059_v9 = vpop.f32.mrf.mxu0 }
  0xde   : > { %v1072_v10 = vpop.f32.mrf.mxu1  ;;  %v1060_v11 = vadd.f32 %v1059_v9, %v1047_v8  ;;  %v3660_v8 = vor.u32 %v4366_v6, %v3659_v5  ;;  %v3639_v9 = vld [vmem:[%s5992_s5 + $0x30] sm:$0xf] }
  0xe0   : > { %v4985_v12 = vadd.f32 %v1072_v10, %v1060_v11  ;;  %1315 = vmatpush.bf16.msra.mxu0 %v3660_v8  ;;  %v4362_v10 = vld [vmem:[%s5992_s5 + $0x38] sm:$0xf0]  ;;  %v4361_v11 = vld [vmem:[%s5992_s5 + $0x34] sm:$0xf] }
  0xe2   : > { %v1079_v13 = vsel %vm1078_vm0, %v4985_v12, 0.0 }
  0xe3   : > { %1080 = vadd.xlane.f32.xlu0 %v1079_v13  ;;  %v3640_v13 = vor.u32 %v4362_v10, %v3639_v9 }
  0xe5   : > { %v1061_v14 = vpop.f32.mrf.mxu0  ;;  %1290 = vmatpush.bf16.msrb.mxu2 %v3640_v13 }
  0xe6   : > { %v1074_v15 = vpop.f32.mrf.mxu1  ;;  %v3641_v14 = vld [vmem:[%s5992_s5 + $0x3c] sm:$0xf0] }
  0xe7   : > { %v3647_v15 = vld [vmem:[%s5992_s5 + $0x38] sm:$0xf]  ;;  %v3644_v17 = vor.u32 %v4361_v11, %v3641_v14 }
  0xe8   : > { %v3648_v18 = vor.u32 %v4363_v16, %v3647_v15 }
  0xe9   : > { %1303 = vmatpush.bf16.msrb.mxu3 %v3644_v17  ;;  %1291 = vmatpush.bf16.msrb.mxu2 %v3628_v22 }
  0xea   : > { %1316 = vmatpush.bf16.msra.mxu0 %v3648_v18 }
  0xed   : > { %1304 = vmatpush.bf16.msrb.mxu3 %v3632_v26 }
  0xee   : > { %1317 = vmatpush.bf16.msra.mxu0 %v3636_v27 }
 0x156   : > { %v1081_v32 = vpop.xlane.xlu0 %1080 }
 0x157   : > { %v1089_v33 = vmul.f32 %v5007_v31, %v1081_v32  ;;  %v3616_v32 = vor.u32 %v4356_v29, %v3615_v28 }
 0x159   : > { %v5011_v34 = vsub.f32 %v4985_v12, %v1089_v33  ;;  %v3617_v33 = vld [vmem:[%s5992_s5 + $0xc] sm:$0xf0]  ;;  %1292 = vmatpush.bf16.msrb.mxu2 %v3616_v32 }
 0x15a   : > { %v3620_v37 = vor.u32 %v4355_v30, %v3617_v33 }
 0x15b   : > { %v1091_v35 = vmul.f32 %v5011_v34, %v5011_v34 }
 0x15c   : > { %1305 = vmatpush.bf16.msrb.mxu3 %v3620_v37 }
 0x15d   : > { %v1092_v36 = vsel %vm1078_vm0, %v1091_v35, 0.0  ;;  %v3623_v35 = vld [vmem:[%s5992_s5 + $0x8] sm:$0xf] }
 0x15e   : > { %1093 = vadd.xlane.f32.xlu0 %v1092_v36  ;;  %v4357_v36 = vld [vmem:[%s5992_s5 + $0x10] sm:$0xf0] }
 0x15f   : > { %v3624_v38 = vor.u32 %v4357_v36, %v3623_v35 }
 0x160   : > { %1429 = vmatpush.bf16.msra.mxu3 %v4380_v58 }
 0x161   : > { %1318 = vmatpush.bf16.msra.mxu0 %v3624_v38 }
 0x1d1   : > { %v1094_v39 = vpop.xlane.xlu0 %1093 }
 0x1d2   : > { %v1095_v40 = vmul.f32 %v1094_v39, %v5007_v31 }
 0x1d4   : > { %v1096_v41 = vadd.f32 1e-06, %v1095_v40 }
 0x1d6   : > { %4550 = vrsqrt.f32 %v1096_v41  ;;  %vm1103_vm3 = vweird.f32 %v1096_v41 }
 0x1dc   : > { %v4551_v42 = vpop.eup %4550 }
 0x1dd   : > { %v1098_v43 = vmul.f32 %v4551_v42, %v1096_v41  ;;  %vm1104_vm2 = vweird.f32 %v4551_v42 }
 0x1de   : > { %vm1105_vm4 = vmor %vm1103_vm3, %vm1104_vm2 }
 0x1df   : > { %v1099_v44 = vmul.f32 %v4551_v42, %v1098_v43 }
 0x1e1   : > { %v1100_v45 = vmul.f32 0.5, %v1099_v44 }
 0x1e3   : > { %v1101_v46 = vsub.f32 1.5, %v1100_v45 }
 0x1e5   : > { %v1102_v47 = vmul.f32 %v4551_v42, %v1101_v46 }
 0x1e7   : > { %v1106_v49 = vsel %vm1105_vm4, %v4551_v42, %v1102_v47 }
 0x1e8   : > { %v1107_v50 = vmul.f32 %v1106_v49, %v5011_v34 }
 0x1ea   : > { %v1111_v52 = vmul.f32 %v4536_v48, %v1107_v50 }
 0x1ec   : > { %v1115_v53 = vadd.f32 %v4537_v51, %v1111_v52 }
 0x1ee   : > { %v1148_v54 = vpack.c.bf16 %v1115_v53, %v1115_v53 }
 0x1f0   : > { %1293 = vmatmul.bf16.vlgmr.msrb.gmra.mxu2 %v1148_v54  ;;  %1306 = vmatmul.bf16.vlgmr.msrb.gmra.mxu3 %v1148_v54 }
 0x1f1   : > { %1319 = vmatmul.bf16.vlgmr.msra.gmra.mxu0 %v1148_v54 }
 0x26e   : > { %v1320_v34 = vpop.f32.mrf.mxu0 }
 0x26f   : > { %v1321_v59 = vadd.f32 %v1320_v34, %v1153_v56  ;;  %v4379_v34 = vld [vmem:[%s5946_s7] sm:$0xff] }
 0x270   : > { %1430 = vmatpush.bf16.msra.mxu3 %v4379_v34 }
 0x271   : > { %v1327_v63 = vpack.c.bf16 %v1321_v59, %v1321_v59  ;;  %v4382_v59 = vld [vmem:[%s5946_s7 + $0x18] sm:$0xff] }
 0x273   : > { %v1388_v0 = vand.u32 %v5153_v60, %v1327_v63  ;;  %v1294_v1 = vpop.f32.mrf.mxu2  ;;  %v1307_v2 = vpop.f32.mrf.mxu3  ;;  %v1492_v32 = vunpack.c.l.b16 %v1327_v63 }
 0x274   : > { %v1295_v3 = vadd.f32 %v1294_v1, %v1151_v61  ;;  %v1308_v4 = vadd.f32 %v1307_v2, %v1152_v62  ;;  %1542 = vmatpush.bf16.msrb.mxu3 %v4382_v59  ;;  %v4381_v62 = vld [vmem:[%s5946_s7 + $0x10] sm:$0xff] }
 0x275   : > { %1397 = vmatpush.bf16.msra.mxu2 %v1388_v0  ;;  %v5165_v33 = vpack.c.b16 %v1492_v32, %v1492_v32 }
 0x276   : > { %v1324_v5 = vmul.f32 0.17677669, %v1295_v3  ;;  %v1326_v6 = vpack.c.bf16 %v1308_v4, %v1308_v4  ;;  %v1322_v7 = vpop.f32.mrf.mxu0 }
 0x278   : > { %v1338_v8 = vsel %vm1333_vm7, %v1326_v6, 0  ;;  %v1443_v9 = vunpack.c.l.b16 %v1326_v6  ;;  %v1325_v10 = vpack.c.bf16 %v1324_v5, %v1324_v5  ;;  %1543 = vmatpush.bf16.msrb.mxu3 %v4381_v62 }
 0x279   : > { %1347 = vmatpush.bf16.xpose.msra.mxu1 %v1338_v8 }
 0x27a   : > { %v1444_v11 = vpack.c.b16 %v1443_v9, %v1443_v9  ;;  %v1438_v15 = vunpack.c.l.b16 %v1325_v10 }
 0x27b   : > { %v1296_v13 = vpop.f32.mrf.mxu2  ;;  %v1309_v14 = vpop.f32.mrf.mxu3 }
 0x27c   : > { %1445 = vrot.lane.b32.xlu1 %v1444_v11, %s4674_s3  ;;  %v1439_v16 = vpack.c.b16 %v1438_v15, %v1438_v15 }
 0x280   : > { %3709 = vmatmul.msk.bf16.vlgmr.msra.gmra.mxu1 %vm1333_vm7, %v1325_v10 }
 0x284   : > { %1440 = vrot.lane.b32.xlu1 %v1439_v16, %s4674_s3 }
 0x2ee   : > { %v1446_v17 = vpop.permute.xlu1 %1445 }
 0x2ef   : > { %v1451_v18 = vsel %vm1333_vm7, %v1446_v17, 0 }
 0x2f0   : > { %1460 = vmatpush.bf16.xpose.msrb.mxu1 %v1451_v18 }
 0x2f6   : > { %v1441_v19 = vpop.permute.xlu1 %1440 }
 0x2f7   : > { %3720 = vmatmul.msk.bf16.vlgmr.msrb.gmra.mxu1 %vm1333_vm7, %v1441_v19 }
 0x2fd   : > { %v1349_v20 = vpop.f32.mrf.mxu1 }
 0x2fe   : > { %v1354_v21 = vsel %vm1353_vm8, %v1349_v20, -inf }
 0x2ff   : > { %1355 = vmax.xlane.f32.xlu2 %v1354_v21 }
 0x305   : > { %v1351_v22 = vpop.f32.mrf.mxu1 }
 0x372   : > { %v1356_v23 = vpop.xlane.xlu2 %1355 }
 0x373   : > { %v1357_v24 = vsub.f32 %v1349_v20, %v1356_v23 }
 0x374   : > { %v1462_v25 = vpop.f32.mrf.mxu1 }
 0x375   : > { %v1358_v26 = vmul.f32 1.442695, %v1357_v24  ;;  %v1466_v27 = vsel %vm1353_vm8, %v1462_v25, -inf }
 0x376   : > { %1467 = vmax.xlane.f32.xlu2 %v1466_v27 }
 0x377   : > { %4552 = vpow2.f32 %v1358_v26 }
 0x37c   : > { %v1464_v28 = vpop.f32.mrf.mxu1 }
 0x37d   : > { %v4553_v29 = vpop.eup %4552 }
 0x37e   : > { %v1360_v30 = vsel %vm1353_vm8, %v4553_v29, 0.0 }
 0x37f   : > { %1361 = vadd.xlane.f32.xlu0 %v1360_v30 }
 0x38e   : > { %1494 = vrot.lane.b32.xlu2 %v5165_v33, %s4674_s3 }
 0x393   : > { %1552 = vrot.lane.b32.xlu0 %v1444_v11, %s5971_s23 }
 0x396   : > { %1656 = vrot.lane.b32.xlu2 %v1444_v11, %s5969_s2 }
 0x39b   : > { %1550 = vrot.lane.b32.xlu0 %v1439_v16, %s5971_s23 }
 0x39e   : > { %1654 = vrot.lane.b32.xlu2 %v1439_v16, %s5969_s2 }
 0x3e9   : > { %v1468_v35 = vpop.xlane.xlu2 %1467 }
 0x3ea   : > { %v1469_v36 = vsub.f32 %v1462_v25, %v1468_v35 }
 0x3ec   : > { %v1470_v37 = vmul.f32 1.442695, %v1469_v36  ;;  %v4538_v36 = vld [vmem:[%s5947_s8] ss:$0 sm:$0xff] }
 0x3ee   : > { %4554 = vpow2.f32 %v1470_v37  ;;  %v1332_v37 = vadd.f32 %v4538_v36, %v4985_v12 }
 0x3f1   : > { %v1495_v38 = vpop.permute.xlu2 %1494 }
 0x3f2   : > { %v1500_v39 = vand.u32 %v1495_v38, %v5153_v60  ;;  %v1362_v40 = vpop.xlane.xlu0 %1361 }
 0x3f3   : > { %4556 = vrcp.f32 %v1362_v40  ;;  %v1374_v46 = vand.u32 2147483648, %v1362_v40  ;;  %v1372_v48 = vand.u32 2147483647, %v1362_v40  ;;  %vm1368_vm10 = vweird.f32 %v1362_v40 }
 0x3f4   : > { %v4555_v41 = vpop.eup %4554  ;;  %1509 = vmatpush.bf16.msrb.mxu2 %v1500_v39 }
 0x3f5   : > { %v1472_v42 = vsel %vm1353_vm8, %v4555_v41, 0.0  ;;  %v1375_v50 = vor.u32 1.1754944e-38, %v1374_v46  ;;  %vm1373_vm12 = vcmp.eq.f32.partialorder %v1372_v48, 8.507059e+37 }
 0x3f6   : > { %1473 = vadd.xlane.f32.xlu1 %v1472_v42 }
 0x3f9   : > { %v4557_v43 = vpop.eup %4556  ;;  %v1657_v11 = vpop.permute.xlu2 %1656 }
 0x3fa   : > { %v1364_v44 = vmul.f32 %v4557_v43, %v1362_v40  ;;  %vm1369_vm9 = vweird.f32 %v4557_v43  ;;  %v1662_v17 = vsel %vm1333_vm7, %v1657_v11, 0 }
 0x3fb   : > { %vm1370_vm11 = vmor %vm1368_vm10, %vm1369_vm9 }
 0x3fc   : > { %v1365_v45 = vsub.f32 1.0, %v1364_v44 }
 0x3fe   : > { %v1366_v47 = vmul.f32 %v4557_v43, %v1365_v45 }
 0x400   : > { %v1367_v49 = vadd.f32 %v4557_v43, %v1366_v47 }
 0x401   : > { %v1655_v30 = vpop.permute.xlu2 %1654 }
 0x402   : > { %v1371_v51 = vsel %vm1370_vm11, %v4557_v43, %v1367_v49 }
 0x403   : > { %v1376_v52 = vsel %vm1373_vm12, %v1375_v50, %v1371_v51 }
 0x404   : > { %v1377_v53 = vmul.f32 %v4553_v29, %v1376_v52 }
 0x405   : > { %v1553_v54 = vpop.permute.xlu0 %1552 }
 0x406   : > { %v1558_v55 = vsel %vm1333_vm7, %v1553_v54, 0  ;;  %v1378_v56 = vpack.c.bf16 %v1377_v53, %v1377_v53 }
 0x407   : > { %1567 = vmatpush.bf16.xpose.msra.mxu1 %v1558_v55 }
 0x408   : > { %3710 = vmatmul.msk.bf16.vlgmr.msra.gmra.mxu2 %vm1379_vm13, %v1378_v56 }
 0x40d   : > { %v1551_v57 = vpop.permute.xlu0 %1550 }
 0x40e   : > { %3735 = vmatmul.msk.bf16.vlgmr.msra.gmra.mxu1 %vm1333_vm7, %v1551_v57 }
 0x469   : > { %v1474_v61 = vpop.xlane.xlu1 %1473 }
 0x46a   : > { %4558 = vrcp.f32 %v1474_v61  ;;  %v1486_v2 = vand.u32 2147483648, %v1474_v61  ;;  %v1484_v4 = vand.u32 2147483647, %v1474_v61  ;;  %vm1480_vm15 = vweird.f32 %v1474_v61 }
 0x46c   : > { %v1487_v6 = vor.u32 1.1754944e-38, %v1486_v2  ;;  %vm1485_vm2 = vcmp.eq.f32.partialorder %v1484_v4, 8.507059e+37 }
 0x470   : > { %v4559_v63 = vpop.eup %4558 }
 0x471   : > { %v1476_v0 = vmul.f32 %v4559_v63, %v1474_v61  ;;  %vm1481_vm14 = vweird.f32 %v4559_v63 }
 0x472   : > { %vm1482_vm1 = vmor %vm1480_vm15, %vm1481_vm14 }
 0x473   : > { %v1477_v1 = vsub.f32 1.0, %v1476_v0 }
 0x475   : > { %v1478_v3 = vmul.f32 %v4559_v63, %v1477_v1 }
 0x477   : > { %v1479_v5 = vadd.f32 %v4559_v63, %v1478_v3 }
 0x479   : > { %v1483_v7 = vsel %vm1482_vm1, %v4559_v63, %v1479_v5 }
 0x47a   : > { %v1488_v8 = vsel %vm1485_vm2, %v1487_v6, %v1483_v7 }
 0x47b   : > { %v1489_v9 = vmul.f32 %v4555_v41, %v1488_v8 }
 0x47d   : > { %v1490_v10 = vpack.c.bf16 %v1489_v9, %v1489_v9 }
 0x47f   : > { %3721 = vmatmul.msk.bf16.vlgmr.msrb.gmra.mxu2 %vm1379_vm13, %v1490_v10  ;;  %v4386_v10 = vld [vmem:[%s5946_s7 + $0x38] sm:$0xff] }
 0x48b   : > { %v1399_v13 = vpop.f32.mrf.mxu2  ;;  %v1569_v14 = vpop.f32.mrf.mxu1 }
 0x48c   : > { %v1403_v15 = vpack.c.bf16 %v1399_v13, %v1399_v13  ;;  %v1573_v16 = vsel %vm1353_vm8, %v1569_v14, -inf }
 0x48d   : > { %1574 = vmax.xlane.f32.xlu0 %v1573_v16  ;;  %v4383_v16 = vld [vmem:[%s5946_s7 + $0x20] sm:$0xff] }
 0x48e   : > { %3719 = vmatmul.msk.bf16.vlgmr.msra.gmra.mxu3 %vm1333_vm7, %v1403_v15  ;;  %v4384_v15 = vld [vmem:[%s5946_s7 + $0x28] sm:$0xff] }
 0x48f   : > { %1671 = vmatpush.bf16.xpose.msra.mxu3 %v1662_v17  ;;  %1646 = vmatpush.bf16.msra.mxu2 %v4384_v15  ;;  %v4388_v15 = vld [vmem:[%s5950_s11 + $0x4] sm:$0xf0] }
 0x493   : > { %v1401_v18 = vpop.f32.mrf.mxu2  ;;  %v1571_v19 = vpop.f32.mrf.mxu1  ;;  %1647 = vmatpush.bf16.msra.mxu2 %v4383_v16 }
 0x4a1   : > { %1702 = vrot.lane.b32.xlu0 %v5165_v33, %s5969_s2  ;;  %s5996_s2 = smov 32  }
 0x500   : > { %v1575_v20 = vpop.xlane.xlu0 %1574 }
 0x501   : > { %v1576_v21 = vsub.f32 %v1569_v14, %v1575_v20  ;;  %v4385_v14 = vld [vmem:[%s5946_s7 + $0x30] sm:$0xff] }
 0x502   : > { %v1511_v22 = vpop.f32.mrf.mxu2 }
 0x503   : > { %v1577_v23 = vmul.f32 1.442695, %v1576_v21  ;;  %v1515_v24 = vpack.c.bf16 %v1511_v22, %v1511_v22 }
 0x505   : > { %4560 = vpow2.f32 %v1577_v23  ;;  %3734 = vmatmul.msk.bf16.vlgmr.msrb.gmra.mxu3 %vm1333_vm7, %v1515_v24 }
 0x50a   : > { %v1513_v25 = vpop.f32.mrf.mxu2 }
 0x50b   : > { %v5197_v26 = vpop.eup %4560 }
 0x50c   : > { %v1579_v27 = vsel %vm1353_vm8, %v5197_v26, 0.0 }
 0x50d   : > { %1580 = vadd.xlane.f32.xlu1 %v1579_v27 }
 0x511   : > { %v1432_v28 = vpop.f32.mrf.mxu3 }
 0x512   : > { %v1436_v38 = vadd.f32 %v1432_v28, %v1332_v37  ;;  %v3825_v37 = vld [vmem:[%s5950_s11 + $0x78] sm:$0xf0] }
 0x513   : > { %v1703_v29 = vpop.permute.xlu0 %1702 }
 0x514   : > { %v1708_v32 = vand.u32 %v1703_v29, %v5153_v60 }
 0x515   : > { %3750 = vmatmul.msk.bf16.vlgmr.msra.gmra.mxu3 %vm1333_vm7, %v1655_v30  ;;  %v3823_v30 = vld [vmem:[%s5950_s11 + $0x70] sm:$0xf] }
 0x516   : > { %1717 = vmatpush.bf16.msrb.mxu0 %v1708_v32  ;;  %v4402_v32 = vld [vmem:[%s5950_s11 + $0x74] sm:$0xf0] }
 0x517   : > { %v3824_v36 = vor.u32 %v4402_v32, %v3823_v30  ;;  %v4539_v32 = vld [vmem:[%s5948_s9] ss:$0 sm:$0xff] }
 0x519   : > { %v1434_v35 = vpop.f32.mrf.mxu3  ;;  %1893 = vmatpush.bf16.msrb.mxu2 %v3824_v36 }
 0x51a   : > { %v4401_v35 = vld [vmem:[%s5950_s11 + $0x74] sm:$0xf] }
 0x580   : > { %v1581_v12 = vpop.xlane.xlu1 %1580 }
 0x581   : > { %vm1587_vm9 = vweird.f32 %v1581_v12  ;;  %v1591_v0 = vand.u32 2147483647, %v1581_v12 }
 0x583   : > { %vm1592_vm12 = vcmp.eq.f32.partialorder %v1591_v0, 8.507059e+37  ;;  %v3793_v0 = vld [vmem:[%s5950_s11 + $0x38] sm:$0xf0] }
 0x588   : > { %v1545_v39 = vpop.f32.mrf.mxu3 }
 0x589   : > { %v5207_v40 = vadd.f32 %v1545_v39, %v1436_v38  ;;  %v3828_v38 = vor.u32 %v4401_v35, %v3825_v37  ;;  %v4540_v37 = vld [vmem:[%s5949_s10] ss:$0 sm:$0xff] }
 0x58b   : > { %1906 = vmatpush.bf16.msrb.mxu3 %v3828_v38 }
 0x590   : > { %v1547_v41 = vpop.f32.mrf.mxu3 }
 0x598   : > { %v1673_v42 = vpop.f32.mrf.mxu3 }
 0x599   : > { %v1677_v43 = vsel %vm1353_vm8, %v1673_v42, -inf }
 0x59a   : > { %1678 = vmax.xlane.f32.xlu2 %v1677_v43 }
 0x5a0   : > { %v1675_v44 = vpop.f32.mrf.mxu3 }
 0x5a1   : > { %v3815_v44 = vld [vmem:[%s5950_s11 + $0x60] sm:$0xf] }
 0x60d   : > { %v1679_v45 = vpop.xlane.xlu2 %1678 }
 0x60e   : > { %v1680_v46 = vsub.f32 %v1673_v42, %v1679_v45  ;;  %v4400_v45 = vld [vmem:[%s5950_s11 + $0x64] sm:$0xf0] }
 0x610   : > { %v1681_v47 = vmul.f32 1.442695, %v1680_v46  ;;  %v4399_v46 = vld [vmem:[%s5950_s11 + $0x64] sm:$0xf] }
 0x612   : > { %4562 = vpow2.f32 %v1681_v47  ;;  %v3816_v47 = vor.u32 %v4400_v45, %v3815_v44 }
 0x613   : > { %4564 = vrcp.f32 %v1581_v12 }
 0x614   : > { %1894 = vmatpush.bf16.msrb.mxu2 %v3816_v47 }
 0x618   : > { %v4563_v48 = vpop.eup %4562 }
 0x619   : > { %v1683_v49 = vsel %vm1353_vm8, %v4563_v48, 0.0  ;;  %v4565_v50 = vpop.eup %4564 }
 0x61a   : > { %1684 = vadd.xlane.f32.xlu1 %v1683_v49  ;;  %v1583_v52 = vmul.f32 %v4565_v50, %v1581_v12  ;;  %vm1588_vm4 = vweird.f32 %v4565_v50 }
 0x61b   : > { %vm1589_vm11 = vmor %vm1587_vm9, %vm1588_vm4 }
 0x61c   : > { %v1584_v53 = vsub.f32 1.0, %v1583_v52 }
 0x61e   : > { %v1585_v56 = vmul.f32 %v4565_v50, %v1584_v53  ;;  %v3809_v53 = vld [vmem:[%s5950_s11 + $0x58] sm:$0xf0] }
 0x620   : > { %v1586_v61 = vadd.f32 %v4565_v50, %v1585_v56  ;;  %v4396_v56 = vld [vmem:[%s5950_s11 + $0x44] sm:$0xf0] }
 0x622   : > { %v1590_v3 = vsel %vm1589_vm11, %v4565_v50, %v1586_v61  ;;  %v4398_v50 = vld [vmem:[%s5950_s11 + $0x54] sm:$0xf0]  ;;  %v3791_v61 = vld [vmem:[%s5950_s11 + $0x30] sm:$0xf] }
 0x633   : > { %1598 = vrot.lane.b32.xlu1 %v5165_v33, %s5971_s23  ;;  %v1593_v33 = vand.u32 2147483648, %v1581_v12  ;;  %v3807_v12 = vld [vmem:[%s5950_s11 + $0x50] sm:$0xf] }
 0x634   : > { %v3808_v52 = vor.u32 %v4398_v50, %v3807_v12 }
 0x635   : > { %v1594_v5 = vor.u32 1.1754944e-38, %v1593_v33  ;;  %v4393_v33 = vld [vmem:[%s5950_s11 + $0x34] sm:$0xf] }
 0x636   : > { %1895 = vmatpush.bf16.msrb.mxu2 %v3808_v52 }
 0x637   : > { %v1595_v7 = vsel %vm1592_vm12, %v1594_v5, %v1590_v3  ;;  %v4392_v3 = vld [vmem:[%s5950_s11 + $0x24] sm:$0xf0] }
 0x638   : > { %v1596_v8 = vmul.f32 %v5197_v26, %v1595_v7 }
 0x63a   : > { %v1597_v13 = vpack.c.bf16 %v1596_v8, %v1596_v8  ;;  %v3775_v8 = vld [vmem:[%s5950_s11 + $0x10] sm:$0xf] }
 0x68d   : > { %v1685_v51 = vpop.xlane.xlu1 %1684 }
 0x68e   : > { %4566 = vrcp.f32 %v1685_v51  ;;  %v1697_v58 = vand.u32 2147483648, %v1685_v51  ;;  %v1695_v59 = vand.u32 2147483647, %v1685_v51  ;;  %vm1691_vm5 = vweird.f32 %v1685_v51 }
 0x690   : > { %v1698_v63 = vor.u32 1.1754944e-38, %v1697_v58  ;;  %vm1696_vm10 = vcmp.eq.f32.partialorder %v1695_v59, 8.507059e+37 }
 0x694   : > { %v4567_v54 = vpop.eup %4566 }
 0x695   : > { %v1687_v55 = vmul.f32 %v4567_v54, %v1685_v51  ;;  %vm1692_vm3 = vweird.f32 %v4567_v54  ;;  %v4397_v51 = vld [vmem:[%s5950_s11 + $0x54] sm:$0xf] }
 0x696   : > { %vm1693_vm6 = vmor %vm1691_vm5, %vm1692_vm3 }
 0x697   : > { %v1688_v57 = vsub.f32 1.0, %v1687_v55  ;;  %v3799_v55 = vld [vmem:[%s5950_s11 + $0x40] sm:$0xf] }
 0x698   : > { %v3800_v58 = vor.u32 %v4396_v56, %v3799_v55 }
 0x699   : > { %v1689_v34 = vmul.f32 %v4567_v54, %v1688_v57  ;;  %v4395_v57 = vld [vmem:[%s5950_s11 + $0x44] sm:$0xf] }
 0x69a   : > { %1896 = vmatpush.bf16.msrb.mxu2 %v3800_v58 }
 0x69b   : > { %v1690_v62 = vadd.f32 %v4567_v54, %v1689_v34  ;;  %v3801_v34 = vld [vmem:[%s5950_s11 + $0x48] sm:$0xf0] }
 0x69c   : > { %v3804_v59 = vor.u32 %v4395_v57, %v3801_v34 }
 0x69d   : > { %v1694_v1 = vsel %vm1693_vm6, %v4567_v54, %v1690_v62  ;;  %v3812_v54 = vor.u32 %v4397_v51, %v3809_v53  ;;  %v4394_v62 = vld [vmem:[%s5950_s11 + $0x34] sm:$0xf0]  ;;  %v4408_v53 = vld [vmem:[%s5952_s13 + $0x28] sm:$0xff] }
 0x69e   : > { %v1699_v2 = vsel %vm1696_vm10, %v1698_v63, %v1694_v1  ;;  %v3792_v63 = vor.u32 %v4394_v62, %v3791_v61  ;;  %v3796_v1 = vor.u32 %v4393_v33, %v3793_v0  ;;  %v4407_v61 = vld [vmem:[%s5952_s13 + $0x20] sm:$0xff]  ;;  %v4406_v0 = vld [vmem:[%s5952_s13 + $0x18] sm:$0xff] }
 0x69f   : > { %v1700_v4 = vmul.f32 %v4563_v48, %v1699_v2  ;;  %v3817_v48 = vld [vmem:[%s5950_s11 + $0x68] sm:$0xf0]  ;;  %v3783_v2 = vld [vmem:[%s5950_s11 + $0x20] sm:$0xf] }
 0x6a0   : > { %v3820_v49 = vor.u32 %v4399_v46, %v3817_v48  ;;  %1897 = vmatpush.bf16.msrb.mxu2 %v3792_v63  ;;  %v3784_v5 = vor.u32 %v4392_v3, %v3783_v2  ;;  %v4409_v48 = vld [vmem:[%s5952_s13 + $0x30] sm:$0xff]  ;;  %v4415_v62 = vld [vmem:[%s5952_s13 + $0x60] sm:$0xff] }
 0x6a1   : > { %v1701_v6 = vpack.c.bf16 %v1700_v4, %v1700_v4  ;;  %v4391_v4 = vld [vmem:[%s5950_s11 + $0x24] sm:$0xf]  ;;  %v4405_v2 = vld [vmem:[%s5952_s13 + $0x10] sm:$0xff] }
 0x6a2   : > { %1907 = vmatpush.bf16.msrb.mxu3 %v3820_v49  ;;  %v4417_v49 = vld [vmem:[%s5952_s13 + $0x70] sm:$0xff] }
 0x6a3   : > { %3751 = vmatmul.msk.bf16.vlgmr.msrb.gmra.mxu0 %vm1379_vm13, %v1701_v6  ;;  %v3785_v6 = vld [vmem:[%s5950_s11 + $0x28] sm:$0xf0]  ;;  %v4413_v3 = vld [vmem:[%s5952_s13 + $0x50] sm:$0xff] }
 0x6a4   : > { %v3788_v7 = vor.u32 %v4391_v4, %v3785_v6  ;;  %1898 = vmatpush.bf16.msrb.mxu2 %v3784_v5 }
 0x6a5   : > { %v1599_v9 = vpop.permute.xlu1 %1598 }
 0x6a6   : > { %v1604_v11 = vand.u32 %v1599_v9, %v5153_v60  ;;  %1908 = vmatpush.bf16.msrb.mxu3 %v3812_v54  ;;  %v4390_v9 = vld [vmem:[%s5950_s11 + $0x14] sm:$0xf0]  ;;  %v4416_v54 = vld [vmem:[%s5952_s13 + $0x68] sm:$0xff] }
 0x6a8   : > { %1613 = vmatpush.bf16.msrb.mxu1 %v1604_v11  ;;  %v3776_v11 = vor.u32 %v4390_v9, %v3775_v8  ;;  %v4404_v9 = vld [vmem:[%s5952_s13 + $0x8] sm:$0xff] }
 0x6aa   : > { %1909 = vmatpush.bf16.msrb.mxu3 %v3804_v59  ;;  %1899 = vmatpush.bf16.msrb.mxu2 %v3776_v11 }
 0x6ab   : > { %3736 = vmatmul.msk.bf16.vlgmr.msrb.gmra.mxu1 %vm1379_vm13, %v1597_v13  ;;  %v3777_v13 = vld [vmem:[%s5950_s11 + $0x18] sm:$0xf0] }
 0x6ac   : > { %1750 = vmatpush.bf16.msra.mxu1 %v4386_v10  ;;  %v4389_v10 = vld [vmem:[%s5950_s11 + $0x14] sm:$0xf] }
 0x6ad   : > { %v3780_v16 = vor.u32 %v4389_v10, %v3777_v13  ;;  %v4412_v10 = vld [vmem:[%s5952_s13 + $0x48] sm:$0xff] }
 0x6ae   : > { %1910 = vmatpush.bf16.msrb.mxu3 %v3796_v1  ;;  %v4414_v1 = vld [vmem:[%s5952_s13 + $0x58] sm:$0xff] }
 0x6b0   : > { %1751 = vmatpush.bf16.msra.mxu1 %v4385_v14  ;;  %v3767_v14 = vld [vmem:[%s5950_s11] sm:$0xf] }
 0x6b2   : > { %1911 = vmatpush.bf16.msrb.mxu3 %v3788_v7 }
 0x6b6   : > { %1912 = vmatpush.bf16.msrb.mxu3 %v3780_v16 }
 0x720   : > { %v1719_v17 = vpop.f32.mrf.mxu0 }
 0x721   : > { %v1723_v18 = vpack.c.bf16 %v1719_v17, %v1719_v17  ;;  %v4387_v17 = vld [vmem:[%s5950_s11 + $0x4] sm:$0xf] }
 0x723   : > { %3764 = vmatmul.msk.bf16.vlgmr.msra.gmra.mxu1 %vm1333_vm7, %v1723_v18  ;;  %v3769_v18 = vld [vmem:[%s5950_s11 + $0x8] sm:$0xf0] }
 0x728   : > { %v1615_v19 = vpop.f32.mrf.mxu1  ;;  %v1721_v20 = vpop.f32.mrf.mxu0 }
 0x729   : > { %v1619_v21 = vpack.c.bf16 %v1615_v19, %v1615_v19  ;;  %v3768_v19 = vor.u32 %v4388_v15, %v3767_v14  ;;  %v3772_v20 = vor.u32 %v4387_v17, %v3769_v18 }
 0x72b   : > { %3749 = vmatmul.msk.bf16.vlgmr.msra.gmra.mxu2 %vm1333_vm7, %v1619_v21  ;;  %1913 = vmatpush.bf16.msrb.mxu3 %v3772_v20  ;;  %v4403_v20 = vld [vmem:[%s5952_s13] sm:$0xff] }
 0x72c   : > { %1900 = vmatpush.bf16.msrb.mxu2 %v3768_v19 }
 0x730   : > { %v1617_v22 = vpop.f32.mrf.mxu1 }
 0x7a0   : > { %v1753_v23 = vpop.f32.mrf.mxu1 }
 0x7a8   : > { %v1755_v24 = vpop.f32.mrf.mxu1 }
 0x7ae   : > { %v1649_v25 = vpop.f32.mrf.mxu2 }
 0x7af   : > { %v1653_v26 = vadd.f32 %v1649_v25, %v5207_v40 }
 0x7b1   : > { %v5232_v27 = vadd.f32 %v1753_v23, %v1653_v26 }
 0x7b3   : > { %v1760_v28 = vsel %vm1078_vm0, %v5232_v27, 0.0 }
 0x7b4   : > { %1761 = vadd.xlane.f32.xlu2 %v1760_v28 }
 0x7b6   : > { %v1651_v29 = vpop.f32.mrf.mxu2 }
 0x827   : > { %v1762_v39 = vpop.xlane.xlu2 %1761 }
 0x828   : > { %v1763_v40 = vmul.f32 %v1762_v39, %v5007_v31 }
 0x82a   : > { %v5250_v41 = vsub.f32 %v5232_v27, %v1763_v40 }
 0x82c   : > { %v1765_v42 = vmul.f32 %v5250_v41, %v5250_v41 }
 0x82e   : > { %v1766_v43 = vsel %vm1078_vm0, %v1765_v42, 0.0  ;;  %v1807_v42 = vld [vmem:[%s5951_s12] sm:$0x3] }
 0x82f   : > { %1767 = vadd.xlane.f32.xlu1 %v1766_v43  ;;  %v4410_v43 = vld [vmem:[%s5952_s13 + $0x38] sm:$0xff]  ;;  %v1809_v44 = vperm.slane %v1807_v42, 0  ;;  %v1810_v45 = vperm.slane %v1807_v42, 1 }
 0x830   : > { %2133 = vmatpush.bf16.msra.mxu0 %v4410_v43 }
 0x834   : > { %2134 = vmatpush.bf16.msra.mxu0 %v4409_v48 }
 0x838   : > { %2135 = vmatpush.bf16.msra.mxu0 %v4408_v53 }
 0x83c   : > { %2136 = vmatpush.bf16.msra.mxu0 %v4407_v61 }
 0x840   : > { %2137 = vmatpush.bf16.msra.mxu0 %v4406_v0 }
 0x844   : > { %2138 = vmatpush.bf16.msra.mxu0 %v4405_v2 }
 0x848   : > { %2139 = vmatpush.bf16.msra.mxu0 %v4404_v9 }
 0x84c   : > { %2140 = vmatpush.bf16.msra.mxu0 %v4403_v20  ;;  %v4441_v20 = vld [vmem:[%s5992_s5 + $0x170] sm:$0xf0] }
 0x8a2   : > { %v1768_v21 = vpop.xlane.xlu1 %1767 }
 0x8a3   : > { %v1769_v22 = vmul.f32 %v1768_v21, %v5007_v31  ;;  %v4411_v21 = vld [vmem:[%s5952_s13 + $0x40] sm:$0xff] }
 0x8a5   : > { %v1770_v23 = vadd.f32 1e-06, %v1769_v22 }
 0x8a7   : > { %4568 = vrsqrt.f32 %v1770_v23  ;;  %vm1777_vm15 = vweird.f32 %v1770_v23 }
 0x8ad   : > { %v4569_v24 = vpop.eup %4568 }
 0x8ae   : > { %v1772_v25 = vmul.f32 %v4569_v24, %v1770_v23  ;;  %vm1778_vm14 = vweird.f32 %v4569_v24 }
 0x8af   : > { %vm1779_vm1 = vmor %vm1777_vm15, %vm1778_vm14 }
 0x8b0   : > { %v1773_v26 = vmul.f32 %v4569_v24, %v1772_v25 }
 0x8b2   : > { %v1774_v28 = vmul.f32 0.5, %v1773_v26 }
 0x8b4   : > { %v1775_v29 = vsub.f32 1.5, %v1774_v28 }
 0x8b6   : > { %v1776_v30 = vmul.f32 %v4569_v24, %v1775_v29 }
 0x8b8   : > { %v1780_v35 = vsel %vm1779_vm1, %v4569_v24, %v1776_v30 }
 0x8b9   : > { %v1781_v36 = vmul.f32 %v1780_v35, %v5250_v41  ;;  %v4418_v41 = vld [vmem:[%s5952_s13 + $0x78] sm:$0xff] }
 0x8ba   : > { %2146 = vmatpush.bf16.msrb.mxu1 %v4418_v41 }
 0x8bb   : > { %v1785_v38 = vmul.f32 %v4539_v32, %v1781_v36 }
 0x8bd   : > { %v1789_v39 = vadd.f32 %v4540_v37, %v1785_v38 }
 0x8be   : > { %2147 = vmatpush.bf16.msrb.mxu1 %v4417_v49 }
 0x8bf   : > { %v1806_v40 = vpack.c.bf16 %v1789_v39, %v1789_v39 }
 0x8c1   : > { %1901 = vmatmul.bf16.vlgmr.msrb.gmra.mxu2 %v1806_v40  ;;  %1914 = vmatmul.bf16.vlgmr.msrb.gmra.mxu3 %v1806_v40 }
 0x8c2   : > { %2148 = vmatpush.bf16.msrb.mxu1 %v4416_v54 }
 0x8c6   : > { %2149 = vmatpush.bf16.msrb.mxu1 %v4415_v62 }
 0x8ca   : > { %2150 = vmatpush.bf16.msrb.mxu1 %v4414_v1 }
 0x8ce   : > { %2151 = vmatpush.bf16.msrb.mxu1 %v4413_v3 }
 0x8d2   : > { %2152 = vmatpush.bf16.msrb.mxu1 %v4412_v10 }
 0x8d6   : > { %2153 = vmatpush.bf16.msrb.mxu1 %v4411_v21  ;;  %v4440_v21 = vld [vmem:[%s5992_s5 + $0x16c] sm:$0xf] }
 0x944   : > { %v1902_v46 = vpop.f32.mrf.mxu2  ;;  %v1915_v47 = vpop.f32.mrf.mxu3 }
 0x945   : > { %v5362_v12 = vadd.f32 %v1902_v46, %v1809_v44  ;;  %v5364_v50 = vadd.f32 %v1915_v47, %v1810_v45 }
 0x947   : > { %v5367_v51 = vmul.f32 0.70710677, %v5362_v12  ;;  %v5370_v52 = vmul.f32 0.70710677, %v5364_v50 }
 0x949   : > { %v5379_v55 = vand.u32 2147483647, %v5367_v51  ;;  %v5382_v56 = vand.u32 2147483647, %v5370_v52  ;;  %vm1987_vm12 = vcmp.lt.f32.partialorder %v5367_v51, 0.0  ;;  %vm1988_vm14 = vcmp.lt.f32.partialorder %v5370_v52, 0.0 }
 0x94a   : > { %v4541_v51 = vld [vmem:[%s5953_s14] ss:$0 sm:$0xff] }
 0x94b   : > { %v1923_v57 = vmul.f32 0.3275911, %v5379_v55  ;;  %v1924_v58 = vmul.f32 0.3275911, %v5382_v56  ;;  %v1975_v28 = vsub.f32 0.0, %v5379_v55  ;;  %v1976_v35 = vsub.f32 0.0, %v5382_v56 }
 0x94c   : > { %v1904_v34 = vpop.f32.mrf.mxu2  ;;  %v1917_v59 = vpop.f32.mrf.mxu3 }
 0x94d   : > { %v1925_v33 = vadd.f32 1.0, %v1923_v57  ;;  %v1926_v63 = vadd.f32 1.0, %v1924_v58  ;;  %v1977_v38 = vmul.f32 %v1975_v28, %v5379_v55  ;;  %v1978_v42 = vmul.f32 %v1976_v35, %v5382_v56 }
 0x94f   : > { %4570 = vrcp.f32 %v1925_v33  ;;  %v1938_v11 = vand.u32 2147483648, %v1925_v33  ;;  %v1936_v15 = vand.u32 2147483647, %v1925_v33  ;;  %v1953_v16 = vand.u32 2147483648, %v1926_v63 }
 0x950   : > { %4572 = vrcp.f32 %v1926_v63  ;;  %v1951_v18 = vand.u32 2147483647, %v1926_v63  ;;  %vm1932_vm4 = vweird.f32 %v1925_v33  ;;  %vm1947_vm6 = vweird.f32 %v1926_v63 }
 0x951   : > { %v1939_v22 = vor.u32 1.1754944e-38, %v1938_v11  ;;  %vm1937_vm9 = vcmp.eq.f32.partialorder %v1936_v15, 8.507059e+37  ;;  %v1954_v25 = vor.u32 1.1754944e-38, %v1953_v16  ;;  %v1979_v44 = vmul.f32 1.442695, %v1977_v38 }
 0x952   : > { %vm1952_vm11 = vcmp.eq.f32.partialorder %v1951_v18, 8.507059e+37  ;;  %v1981_v47 = vmul.f32 1.442695, %v1978_v42  ;;  %v4437_v38 = vld [vmem:[%s5992_s5 + $0x154] sm:$0xf] }
 0x953   : > { %4574 = vpow2.f32 %v1979_v44  ;;  %v4014_v42 = vld [vmem:[%s5992_s5 + $0x158] sm:$0xf] }
 0x954   : > { %4576 = vpow2.f32 %v1981_v47  ;;  %v4434_v47 = vld [vmem:[%s5992_s5 + $0x13c] sm:$0xf] }
 0x955   : > { %v4571_v4 = vpop.eup %4570 }
 0x956   : > { %v4573_v5 = vpop.eup %4572  ;;  %v1928_v6 = vmul.f32 %v4571_v4, %v1925_v33  ;;  %vm1933_vm2 = vweird.f32 %v4571_v4 }
 0x957   : > { %v1943_v7 = vmul.f32 %v4573_v5, %v1926_v63  ;;  %vm1948_vm3 = vweird.f32 %v4573_v5  ;;  %vm1934_vm5 = vmor %vm1932_vm4, %vm1933_vm2 }
 0x958   : > { %v1929_v8 = vsub.f32 1.0, %v1928_v6  ;;  %vm1949_vm10 = vmor %vm1947_vm6, %vm1948_vm3 }
 0x959   : > { %v1944_v13 = vsub.f32 1.0, %v1943_v7  ;;  %v4575_v59 = vpop.eup %4574  ;;  %v1994_v7 = vmul.f32 0.5, %v5364_v50 }
 0x95a   : > { %v1930_v14 = vmul.f32 %v4571_v4, %v1929_v8  ;;  %v4577_v62 = vpop.eup %4576 }
 0x95b   : > { %v1945_v17 = vmul.f32 %v4573_v5, %v1944_v13 }
 0x95c   : > { %v1931_v19 = vadd.f32 %v4571_v4, %v1930_v14 }
 0x95d   : > { %v1946_v23 = vadd.f32 %v4573_v5, %v1945_v17 }
 0x95e   : > { %v1935_v24 = vsel %vm1934_vm5, %v4571_v4, %v1931_v19  ;;  %v1993_v4 = vmul.f32 0.5, %v5362_v12  ;;  %v4018_v19 = vld [vmem:[%s5992_s5 + $0x168] sm:$0xf] }
 0x95f   : > { %v1940_v26 = vsel %vm1937_vm9, %v1939_v22, %v1935_v24  ;;  %v1950_v29 = vsel %vm1949_vm10, %v4573_v5, %v1946_v23  ;;  %v4020_v22 = vld [vmem:[%s5992_s5 + $0x174] sm:$0xf0]  ;;  %v4026_v23 = vld [vmem:[%s5992_s5 + $0x170] sm:$0xf]  ;;  %v4442_v24 = vld [vmem:[%s5992_s5 + $0x178] sm:$0xf0] }
 0x960   : > { %v1957_v30 = vmul.f32 1.0614054, %v1940_v26  ;;  %v1955_v32 = vsel %vm1952_vm11, %v1954_v25, %v1950_v29  ;;  %v4023_v25 = vor.u32 %v4440_v21, %v4020_v22  ;;  %v3948_v21 = vld [vmem:[%s5992_s5 + $0xe4] sm:$0xf0]  ;;  %v4424_v22 = vld [vmem:[%s5992_s5 + $0xe8] sm:$0xf0] }
 0x961   : > { %v1958_v36 = vmul.f32 1.0614054, %v1955_v32 }
 0x962   : > { %v3829_v37 = vadd.f32 -1.4531521, %v1957_v30  ;;  %2378 = vmatpush.bf16.msra.mxu3 %v4023_v25  ;;  %v3934_v25 = vld [vmem:[%s5992_s5 + $0xc0] sm:$0xf] }
 0x963   : > { %v3830_v39 = vadd.f32 -1.4531521, %v1958_v36  ;;  %v4006_v36 = vld [vmem:[%s5992_s5 + $0x150] sm:$0xf] }
 0x964   : > { %v1961_v40 = vmul.f32 %v3829_v37, %v1940_v26  ;;  %v4438_v37 = vld [vmem:[%s5992_s5 + $0x158] sm:$0xf0] }
 0x965   : > { %v1962_v43 = vmul.f32 %v3830_v39, %v1955_v32  ;;  %v4007_v39 = vor.u32 %v4438_v37, %v4006_v36  ;;  %v4421_v36 = vld [vmem:[%s5992_s5 + $0xd0] sm:$0xf0] }
 0x966   : > { %v1963_v41 = vadd.f32 1.4214138, %v1961_v40  ;;  %v4008_v40 = vld [vmem:[%s5992_s5 + $0x15c] sm:$0xf0] }
 0x967   : > { %v1964_v45 = vadd.f32 1.4214138, %v1962_v43  ;;  %v4439_v43 = vld [vmem:[%s5992_s5 + $0x160] sm:$0xf0] }
 0x968   : > { %v1965_v46 = vmul.f32 %v1963_v41, %v1940_v26  ;;  %v4011_v41 = vor.u32 %v4437_v38, %v4008_v40  ;;  %v4015_v44 = vor.u32 %v4439_v43, %v4014_v42 }
 0x969   : > { %v1966_v48 = vmul.f32 %v1964_v45, %v1955_v32  ;;  %v3994_v45 = vld [vmem:[%s5992_s5 + $0x138] sm:$0xf] }
 0x96a   : > { %v3831_v49 = vadd.f32 -0.28449672, %v1965_v46  ;;  %2379 = vmatpush.bf16.msra.mxu3 %v4011_v41  ;;  %v4435_v46 = vld [vmem:[%s5992_s5 + $0x140] sm:$0xf0] }
 0x96b   : > { %v3832_v53 = vadd.f32 -0.28449672, %v1966_v48  ;;  %v3995_v48 = vor.u32 %v4435_v46, %v3994_v45 }
 0x96c   : > { %v1969_v54 = vmul.f32 %v3831_v49, %v1940_v26  ;;  %v3996_v49 = vld [vmem:[%s5992_s5 + $0x144] sm:$0xf0] }
 0x96d   : > { %v1970_v57 = vmul.f32 %v3832_v53, %v1955_v32  ;;  %v4002_v53 = vld [vmem:[%s5992_s5 + $0x140] sm:$0xf] }
 0x96e   : > { %v1971_v58 = vadd.f32 0.2548296, %v1969_v54  ;;  %v4436_v54 = vld [vmem:[%s5992_s5 + $0x148] sm:$0xf0] }
 0x96f   : > { %v1972_v34 = vadd.f32 0.2548296, %v1970_v57  ;;  %v3999_v57 = vor.u32 %v4434_v47, %v3996_v49 }
 0x970   : > { %v1973_v55 = vmul.f32 %v1971_v58, %v1940_v26  ;;  %v4027_v26 = vor.u32 %v4442_v24, %v4026_v23  ;;  %v4003_v58 = vor.u32 %v4436_v54, %v4002_v53  ;;  %v4543_v54 = vld [vmem:[%s5994_s4 + $0x1] ss:$0 sm:$0xff]  ;;  %s3361_s4 = sshll.u32 %s3357_s25, 4  ;;  %s3362_s4 = int_to_ptr.hbm [resolvable:$true] %s3361_s4 }
 0x971   : > { %v1974_v61 = vmul.f32 %v1972_v34, %v1955_v32  ;;  %2380 = vmatpush.bf16.msra.mxu3 %v3999_v57  ;;  %v3982_v34 = vld [vmem:[%s5992_s5 + $0x120] sm:$0xf]  ;;  %s4622_s21 = sshra.s32 %s3362_s4, 4  ;;  %s4623_s21 = int_to_ptr.hbm [resolvable:$true] %s4622_s21 }
 0x972   : > { %v1983_v56 = vmul.f32 %v4575_v59, %v1973_v55  ;;  %2391 = vmatpush.bf16.msrb.mxu0 %v4027_v26  ;;  %v4432_v55 = vld [vmem:[%s5992_s5 + $0x128] sm:$0xf0]  ;;  %v4431_v59 = vld [vmem:[%s5992_s5 + $0x124] sm:$0xf]  ;;  %p4629_p0 = scmp.lt.s32.totalorder %s4623_s21, %s5958_s19 }
 0x973   : > { %v1984_v33 = vmul.f32 %v4577_v62, %v1974_v61  ;;  %v3983_v61 = vor.u32 %v4432_v55, %v3982_v34  ;;  %v3984_v62 = vld [vmem:[%s5992_s5 + $0x12c] sm:$0xf0]  ;;  %v4420_v26 = vld [vmem:[%s5992_s5 + $0xc8] sm:$0xf0]  ;;  %v3931_v55 = vld [vmem:[%s5945_s6 + $0x3] sm:$0x7] }
 0x974   : > { %v1985_v63 = vsub.f32 1.0, %v1983_v56  ;;  %v3990_v56 = vld [vmem:[%s5992_s5 + $0x128] sm:$0xf] }
 0x975   : > { %v1986_v0 = vsub.f32 1.0, %v1984_v33  ;;  %v4433_v33 = vld [vmem:[%s5992_s5 + $0x130] sm:$0xf0] }
 0x976   : > { %v1989_v1 = vsub.f32 0.0, %v1985_v63  ;;  %2392 = vmatpush.bf16.msrb.mxu0 %v4015_v44 }
 0x977   : > { %v1990_v2 = vsub.f32 0.0, %v1986_v0 }
 0x978   : > { %v1991_v3 = vsel %vm1987_vm12, %v1989_v1, %v1985_v63  ;;  %v3987_v63 = vor.u32 %v4431_v59, %v3984_v62  ;;  %v3970_v1 = vld [vmem:[%s5992_s5 + $0x108] sm:$0xf]  ;;  %v2233_v59 = vperm.slane %v3931_v55, 2 }
 0x979   : > { %v1995_v5 = vadd.f32 1.0, %v1991_v3  ;;  %v1992_v6 = vsel %vm1988_vm14, %v1990_v2, %v1986_v0  ;;  %v3991_v0 = vor.u32 %v4433_v33, %v3990_v56  ;;  %v4429_v2 = vld [vmem:[%s5992_s5 + $0x110] sm:$0xf0]  ;;  %v4428_v3 = vld [vmem:[%s5992_s5 + $0x10c] sm:$0xf]  ;;  %v2231_v56 = vperm.slane %v3931_v55, 0 }
 0x97a   : > { %v1996_v8 = vadd.f32 1.0, %v1992_v6  ;;  %2393 = vmatpush.bf16.msrb.mxu0 %v4003_v58  ;;  %2381 = vmatpush.bf16.msra.mxu3 %v3987_v63  ;;  %v3978_v6 = vld [vmem:[%s5992_s5 + $0x110] sm:$0xf]  ;;  %v2232_v33 = vperm.slane %v3931_v55, 1  ;;  %v4446_v55 = vld [vmem:[%s5946_s7 + $0x58] sm:$0xff] }
 0x97b   : > { %v1997_v9 = vmul.f32 %v1995_v5, %v1993_v4  ;;  %v3971_v4 = vor.u32 %v4429_v2, %v3970_v1  ;;  %v3972_v5 = vld [vmem:[%s5992_s5 + $0x114] sm:$0xf0] }
 0x97c   : > { %v1998_v10 = vmul.f32 %v1996_v8, %v1994_v7  ;;  %v4430_v7 = vld [vmem:[%s5992_s5 + $0x118] sm:$0xf0]  ;;  %v3975_v8 = vor.u32 %v4428_v3, %v3972_v5 }
 0x97d   : > { %v2031_v11 = vpack.c.bf16 %v1997_v9, %v1997_v9  ;;  %v3979_v9 = vor.u32 %v4430_v7, %v3978_v6 }
 0x97e   : > { %v2032_v13 = vpack.c.bf16 %v1998_v10, %v1998_v10  ;;  %2394 = vmatpush.bf16.msrb.mxu0 %v3991_v0  ;;  %2382 = vmatpush.bf16.msra.mxu3 %v3975_v8  ;;  %v3958_v10 = vld [vmem:[%s5992_s5 + $0xf0] sm:$0xf] }
 0x97f   : > { %2141 = vmatmul.bf16.vlgmr.msra.gmra.mxu0 %v2031_v11  ;;  %v4426_v11 = vld [vmem:[%s5992_s5 + $0xf8] sm:$0xf0] }
 0x980   : > { %2154 = vmatmul.bf16.vlgmr.msrb.gmra.mxu1 %v2032_v13  ;;  %v4425_v13 = vld [vmem:[%s5992_s5 + $0xf4] sm:$0xf] }
 0x982   : > { %2395 = vmatpush.bf16.msrb.mxu0 %v3979_v9 }
 0x9fc   : > { %v2142_v14 = vpop.f32.mrf.mxu0 }
 0x9fd   : > { %v2143_v15 = vadd.f32 %v4541_v51, %v2142_v14  ;;  %v2155_v52 = vpop.f32.mrf.mxu1  ;;  %v3959_v51 = vor.u32 %v4426_v11, %v3958_v10  ;;  %v3960_v14 = vld [vmem:[%s5992_s5 + $0xfc] sm:$0xf0] }
 0x9ff   : > { %v2156_v16 = vadd.f32 %v2155_v52, %v2143_v15  ;;  %v3966_v15 = vld [vmem:[%s5992_s5 + $0xf8] sm:$0xf]  ;;  %v4427_v52 = vld [vmem:[%s5992_s5 + $0x100] sm:$0xf0] }
 0xa01   : > { %v5428_v12 = vadd.f32 %v2156_v16, %v5232_v27  ;;  %v4019_v27 = vor.u32 %v4441_v20, %v4018_v19  ;;  %v3963_v16 = vor.u32 %v4425_v13, %v3960_v14  ;;  %v4422_v19 = vld [vmem:[%s5992_s5 + $0xdc] sm:$0xf] }
 0xa02   : > { %v3951_v23 = vor.u32 %v4422_v19, %v3948_v21  ;;  %v4444_v19 = vld [vmem:[%s5946_s7 + $0x48] sm:$0xff] }
 0xa03   : > { %v2164_v50 = vsel %vm1078_vm0, %v5428_v12, 0.0  ;;  %2365 = vmatpush.bf16.msra.mxu2 %v4019_v27  ;;  %2383 = vmatpush.bf16.msra.mxu3 %v3963_v16  ;;  %v3954_v27 = vld [vmem:[%s5992_s5 + $0xe0] sm:$0xf] }
 0xa04   : > { %v2144_v17 = vpop.f32.mrf.mxu0  ;;  %2165 = vadd.xlane.f32.xlu2 %v2164_v50  ;;  %v3967_v50 = vor.u32 %v4427_v52, %v3966_v15  ;;  %v3955_v24 = vor.u32 %v4424_v22, %v3954_v27 }
 0xa05   : > { %v2157_v18 = vpop.f32.mrf.mxu1  ;;  %v3946_v17 = vld [vmem:[%s5992_s5 + $0xd8] sm:$0xf] }
 0xa06   : > { %2396 = vmatpush.bf16.msrb.mxu0 %v3967_v50  ;;  %v4423_v18 = vld [vmem:[%s5992_s5 + $0xe0] sm:$0xf0] }
 0xa07   : > { %2366 = vmatpush.bf16.msra.mxu2 %v4007_v39  ;;  %v3947_v20 = vor.u32 %v4423_v18, %v3946_v17  ;;  %2384 = vmatpush.bf16.msra.mxu3 %v3951_v23 }
 0xa0a   : > { %2397 = vmatpush.bf16.msrb.mxu0 %v3955_v24 }
 0xa0b   : > { %2367 = vmatpush.bf16.msra.mxu2 %v3995_v48  ;;  %v4542_v48 = vld [vmem:[%s5993_s27 + $0x1] ss:$0 sm:$0xff] }
 0xa0f   : > { %2368 = vmatpush.bf16.msra.mxu2 %v3983_v61 }
 0xa13   : > { %2369 = vmatpush.bf16.msra.mxu2 %v3971_v4 }
 0xa17   : > { %2370 = vmatpush.bf16.msra.mxu2 %v3959_v51 }
 0xa1b   : > { %2371 = vmatpush.bf16.msra.mxu2 %v3947_v20  ;;  %v4443_v20 = vld [vmem:[%s5946_s7 + $0x40] sm:$0xff] }
 0xa77   : > { %v2166_v28 = vpop.xlane.xlu2 %2165 }
 0xa78   : > { %v2167_v29 = vmul.f32 %v2166_v28, %v5007_v31  ;;  %v4419_v28 = vld [vmem:[%s5992_s5 + $0xc4] sm:$0xf] }
 0xa7a   : > { %v5452_v30 = vsub.f32 %v5428_v12, %v2167_v29  ;;  %v3935_v29 = vor.u32 %v4420_v26, %v3934_v25 }
 0xa7c   : > { %v2169_v32 = vmul.f32 %v5452_v30, %v5452_v30  ;;  %2372 = vmatpush.bf16.msra.mxu2 %v3935_v29 }
 0xa7e   : > { %v2170_v35 = vsel %vm1078_vm0, %v2169_v32, 0.0  ;;  %v3936_v32 = vld [vmem:[%s5992_s5 + $0xcc] sm:$0xf0] }
 0xa7f   : > { %2171 = vadd.xlane.f32.xlu2 %v2170_v35  ;;  %v3942_v35 = vld [vmem:[%s5992_s5 + $0xc8] sm:$0xf]  ;;  %v3939_v37 = vor.u32 %v4419_v28, %v3936_v32  ;;  %s4624_s5 = scalar_lea.hbm %s4623_s21, 1 }
 0xa80   : > { %v3943_v38 = vor.u32 %v4421_v36, %v3942_v35  ;;  %2504 = vmatpush.bf16.msrb.mxu2 %v4444_v19  ;;  %p4625_p11 = scmp.ne.s32.totalorder %s4623_s21, %s4624_s5  ;;  %p4630_p1 = scmp.lt.s32.totalorder %s4628_s26, %s4624_s5 }
 0xa81   : > { %2385 = vmatpush.bf16.msra.mxu3 %v3939_v37 }
 0xa82   : > { %2398 = vmatpush.bf16.msrb.mxu0 %v3943_v38  ;;  %p4626_p12 = pnand %p4625_p11, %p4815_p5  ;;  %p4631_p2 = por %p4630_p1, %p4629_p0 }
 0xa84   : > { %2505 = vmatpush.bf16.msrb.mxu2 %v4443_v20  ;;  %p4627_p13 = pneg %p4626_p12 }
 0xa86   : > { %p4632_p3 = pnand %p4631_p2, %p4627_p13 }
 0xaf2   : > { %v2172_v39 = vpop.xlane.xlu2 %2171 }
 0xaf3   : > { %v2173_v40 = vmul.f32 %v2172_v39, %v5007_v31 }
 0xaf5   : > { %v2174_v42 = vadd.f32 1e-06, %v2173_v40 }
 0xaf7   : > { %4578 = vrsqrt.f32 %v2174_v42  ;;  %vm2181_vm1 = vweird.f32 %v2174_v42 }
 0xafd   : > { %v4579_v43 = vpop.eup %4578 }
 0xafe   : > { %v2176_v41 = vmul.f32 %v4579_v43, %v2174_v42  ;;  %vm2182_vm15 = vweird.f32 %v4579_v43 }
 0xaff   : > { %vm2183_vm2 = vmor %vm2181_vm1, %vm2182_vm15 }
 0xb00   : > { %v2177_v44 = vmul.f32 %v4579_v43, %v2176_v41 }
 0xb02   : > { %v2178_v45 = vmul.f32 0.5, %v2177_v44 }
 0xb04   : > { %v2179_v46 = vsub.f32 1.5, %v2178_v45 }
 0xb06   : > { %v2180_v47 = vmul.f32 %v4579_v43, %v2179_v46 }
 0xb08   : > { %v2184_v49 = vsel %vm2183_vm2, %v4579_v43, %v2180_v47 }
 0xb09   : > { %v2185_v53 = vmul.f32 %v2184_v49, %v5452_v30 }
 0xb0b   : > { %v2189_v57 = vmul.f32 %v4542_v48, %v2185_v53 }
 0xb0d   : > { %v2193_v58 = vadd.f32 %v4543_v54, %v2189_v57 }
 0xb0f   : > { %v2227_v34 = vpack.c.bf16 %v2193_v58, %v2193_v58 }
 0xb11   : > { %2373 = vmatmul.bf16.vlgmr.msra.gmra.mxu2 %v2227_v34  ;;  %2386 = vmatmul.bf16.vlgmr.msra.gmra.mxu3 %v2227_v34 }
 0xb12   : > { %2399 = vmatmul.bf16.vlgmr.msrb.gmra.mxu0 %v2227_v34 }
 0xb8f   : > { %v2400_v61 = vpop.f32.mrf.mxu0 }
 0xb90   : > { %v2401_v62 = vadd.f32 %v2400_v61, %v2233_v59  ;;  %v4445_v61 = vld [vmem:[%s5946_s7 + $0x50] sm:$0xff] }
 0xb92   : > { %v5594_v0 = vpack.c.bf16 %v2401_v62, %v2401_v62 }
 0xb94   : > { %v2374_v30 = vpop.f32.mrf.mxu2  ;;  %v2387_v63 = vpop.f32.mrf.mxu3  ;;  %v2462_v6 = vand.u32 %v5594_v0, %v5153_v60  ;;  %v2567_v58 = vunpack.c.l.b16 %v5594_v0 }
 0xb95   : > { %v2375_v1 = vadd.f32 %v2374_v30, %v2231_v56  ;;  %v2388_v2 = vadd.f32 %v2387_v63, %v2232_v33 }
 0xb96   : > { %v5624_v34 = vpack.c.b16 %v2567_v58, %v2567_v58 }
 0xb97   : > { %v2404_v3 = vmul.f32 0.17677669, %v2375_v1  ;;  %v2406_v4 = vpack.c.bf16 %v2388_v2, %v2388_v2  ;;  %v2402_v5 = vpop.f32.mrf.mxu0 }
 0xb99   : > { %v2405_v7 = vpack.c.bf16 %v2404_v3, %v2404_v3  ;;  %v2418_v8 = vsel %vm1333_vm7, %v2406_v4, 0  ;;  %v2518_v9 = vunpack.c.l.b16 %v2406_v4 }
 0xb9a   : > { %2427 = vmatpush.bf16.xpose.msra.mxu1 %v2418_v8 }
 0xb9b   : > { %v2513_v10 = vunpack.c.l.b16 %v2405_v7  ;;  %v5599_v11 = vpack.c.b16 %v2518_v9, %v2518_v9 }
 0xb9c   : > { %v2376_v13 = vpop.f32.mrf.mxu2  ;;  %v2389_v51 = vpop.f32.mrf.mxu3 }
 0xb9d   : > { %2520 = vrot.lane.b32.xlu0 %v5599_v11, %s4674_s3  ;;  %v2514_v14 = vpack.c.b16 %v2513_v10, %v2513_v10 }
 0xb9f   : > { %2515 = vrot.lane.b32.xlu2 %v2514_v14, %s4674_s3 }
 0xba1   : > { %4029 = vmatmul.msk.bf16.vlgmr.msra.gmra.mxu1 %vm1333_vm7, %v2405_v7 }
 0xba2   : > { %2471 = vmatpush.bf16.msrb.mxu1 %v2462_v6 }
 0xba6   : > { %2617 = vmatpush.bf16.msra.mxu1 %v4446_v55 }
 0xbaa   : > { %2618 = vmatpush.bf16.msra.mxu1 %v4445_v61 }
 0xbf9   : > { %v2516_v16 = vpop.permute.xlu2 %2515 }
 0xc0f   : > { %v2521_v15 = vpop.permute.xlu0 %2520 }
 0xc10   : > { %v2526_v52 = vsel %vm1333_vm7, %v2521_v15, 0 }
 0xc11   : > { %2535 = vmatpush.bf16.xpose.msrb.mxu3 %v2526_v52 }
 0xc18   : > { %4044 = vmatmul.msk.bf16.vlgmr.msrb.gmra.mxu3 %vm1333_vm7, %v2516_v16 }
 0xc1e   : > { %v2429_v50 = vpop.f32.mrf.mxu1 }
 0xc1f   : > { %v2433_v17 = vsel %vm1353_vm8, %v2429_v50, -inf }
 0xc20   : > { %2434 = vmax.xlane.f32.xlu0 %v2433_v17 }
 0xc26   : > { %v2431_v18 = vpop.f32.mrf.mxu1 }
 0xc34   : > { %2627 = vrot.lane.b32.xlu0 %v5599_v11, %s5995_s0 }
 0xc3c   : > { %2625 = vrot.lane.b32.xlu0 %v2514_v14, %s5995_s0 }
 0xc93   : > { %v2435_v21 = vpop.xlane.xlu0 %2434 }
 0xc94   : > { %v2436_v27 = vsub.f32 %v2429_v50, %v2435_v21 }
 0xc96   : > { %v2437_v22 = vmul.f32 1.442695, %v2436_v27  ;;  %v4544_v27 = vld [vmem:[%s5947_s8 + $0x1] ss:$0 sm:$0xff] }
 0xc98   : > { %4580 = vpow2.f32 %v2437_v22  ;;  %v2413_v22 = vadd.f32 %v4544_v27, %v5428_v12 }
 0xc9b   : > { %v2537_v23 = vpop.f32.mrf.mxu3 }
 0xc9c   : > { %v2541_v24 = vsel %vm1353_vm8, %v2537_v23, -inf }
 0xc9d   : > { %2542 = vmax.xlane.f32.xlu1 %v2541_v24 }
 0xc9e   : > { %v4581_v25 = vpop.eup %4580 }
 0xc9f   : > { %v2439_v26 = vsel %vm1353_vm8, %v4581_v25, 0.0 }
 0xca0   : > { %2440 = vadd.xlane.f32.xlu2 %v2439_v26 }
 0xca3   : > { %v2539_v28 = vpop.f32.mrf.mxu3 }
 0xca6   : > { %v2628_v29 = vpop.permute.xlu0 %2627 }
 0xca7   : > { %v2633_v32 = vsel %vm1333_vm7, %v2628_v29, 0 }
 0xca8   : > { %2642 = vmatpush.bf16.xpose.msra.mxu2 %v2633_v32 }
 0xcb8   : > { %2729 = vrot.lane.b32.xlu2 %v2514_v14, %s5996_s2  ;;  %v2626_v14 = vpop.permute.xlu0 %2625 }
 0xd10   : > { %v2543_v35 = vpop.xlane.xlu1 %2542 }
 0xd11   : > { %v2544_v36 = vsub.f32 %v2537_v23, %v2543_v35 }
 0xd13   : > { %v2545_v37 = vmul.f32 1.442695, %v2544_v36  ;;  %v2441_v38 = vpop.xlane.xlu2 %2440 }
 0xd14   : > { %4582 = vrcp.f32 %v2441_v38  ;;  %v2453_v44 = vand.u32 2147483648, %v2441_v38  ;;  %v2451_v46 = vand.u32 2147483647, %v2441_v38  ;;  %vm2447_vm4 = vweird.f32 %v2441_v38 }
 0xd15   : > { %4584 = vpow2.f32 %v2545_v37 }
 0xd16   : > { %v2454_v48 = vor.u32 1.1754944e-38, %v2453_v44  ;;  %vm2452_vm6 = vcmp.eq.f32.partialorder %v2451_v46, 8.507059e+37 }
 0xd1a   : > { %v4583_v39 = vpop.eup %4582 }
 0xd1b   : > { %v4585_v40 = vpop.eup %4584  ;;  %v2443_v42 = vmul.f32 %v4583_v39, %v2441_v38  ;;  %vm2448_vm3 = vweird.f32 %v4583_v39  ;;  %v2730_v19 = vpop.permute.xlu2 %2729 }
 0xd1c   : > { %v2547_v43 = vsel %vm1353_vm8, %v4585_v40, 0.0  ;;  %vm2449_vm5 = vmor %vm2447_vm4, %vm2448_vm3 }
 0xd1d   : > { %v2444_v41 = vsub.f32 1.0, %v2443_v42  ;;  %2548 = vadd.xlane.f32.xlu1 %v2547_v43 }
 0xd1f   : > { %v2445_v45 = vmul.f32 %v4583_v39, %v2444_v41 }
 0xd21   : > { %v2446_v47 = vadd.f32 %v4583_v39, %v2445_v45 }
 0xd23   : > { %v2450_v49 = vsel %vm2449_vm5, %v4583_v39, %v2446_v47 }
 0xd24   : > { %v2455_v53 = vsel %vm2452_vm6, %v2454_v48, %v2450_v49 }
 0xd25   : > { %v2456_v54 = vmul.f32 %v4581_v25, %v2455_v53 }
 0xd27   : > { %v2457_v57 = vpack.c.bf16 %v2456_v54, %v2456_v54 }
 0xd29   : > { %4030 = vmatmul.msk.bf16.vlgmr.msrb.gmra.mxu1 %vm1379_vm13, %v2457_v57 }
 0xd36   : > { %2569 = vrot.lane.b32.xlu1 %v5624_v34, %s4674_s3 }
 0xd3e   : > { %2731 = vrot.lane.b32.xlu1 %v5599_v11, %s5996_s2 }
 0xd90   : > { %v2549_v59 = vpop.xlane.xlu1 %2548 }
 0xd91   : > { %4586 = vrcp.f32 %v2549_v59  ;;  %v2561_v0 = vand.u32 2147483648, %v2549_v59  ;;  %vm2555_vm10 = vweird.f32 %v2549_v59  ;;  %v2559_v1 = vand.u32 2147483647, %v2549_v59 }
 0xd93   : > { %v2562_v3 = vor.u32 1.1754944e-38, %v2561_v0  ;;  %vm2560_vm12 = vcmp.eq.f32.partialorder %v2559_v1, 8.507059e+37 }
 0xd97   : > { %v4587_v62 = vpop.eup %4586 }
 0xd98   : > { %v2551_v56 = vmul.f32 %v4587_v62, %v2549_v59  ;;  %vm2556_vm9 = vweird.f32 %v4587_v62 }
 0xd99   : > { %vm2557_vm11 = vmor %vm2555_vm10, %vm2556_vm9 }
 0xd9a   : > { %v2552_v33 = vsub.f32 1.0, %v2551_v56 }
 0xd9c   : > { %v2553_v30 = vmul.f32 %v4587_v62, %v2552_v33 }
 0xd9e   : > { %v2554_v63 = vadd.f32 %v4587_v62, %v2553_v30  ;;  %v4448_v30 = vld [vmem:[%s5946_s7 + $0x68] sm:$0xff] }
 0xda0   : > { %v2558_v2 = vsel %vm2557_vm11, %v4587_v62, %v2554_v63 }
 0xda1   : > { %v2563_v4 = vsel %vm2560_vm12, %v2562_v3, %v2558_v2  ;;  %v4447_v2 = vld [vmem:[%s5946_s7 + $0x60] sm:$0xff] }
 0xda2   : > { %v2564_v7 = vmul.f32 %v4585_v40, %v2563_v4 }
 0xda4   : > { %v2565_v10 = vpack.c.bf16 %v2564_v7, %v2564_v7 }
 0xda6   : > { %v2473_v5 = vpop.f32.mrf.mxu1 }
 0xda7   : > { %v2477_v6 = vpack.c.bf16 %v2473_v5, %v2473_v5 }
 0xda8   : > { %v2570_v8 = vpop.permute.xlu1 %2569 }
 0xda9   : > { %v2575_v9 = vand.u32 %v2570_v8, %v5153_v60  ;;  %4043 = vmatmul.msk.bf16.vlgmr.msrb.gmra.mxu2 %vm1333_vm7, %v2477_v6 }
 0xdab   : > { %2584 = vmatpush.bf16.msra.mxu0 %v2575_v9 }
 0xdae   : > { %v2475_v11 = vpop.f32.mrf.mxu1  ;;  %4045 = vmatmul.msk.bf16.vlgmr.msra.gmra.mxu0 %vm1379_vm13, %v2565_v10  ;;  %v4450_v10 = vld [vmem:[%s5946_s7 + $0x78] sm:$0xff] }
 0xdaf   : > { %2721 = vmatpush.bf16.msrb.mxu0 %v4448_v30  ;;  %v4136_v30 = vld [vmem:[%s5950_s11 + $0xb8] sm:$0xf0] }
 0xdb0   : > { %v2732_v13 = vpop.permute.xlu1 %2731 }
 0xdb1   : > { %v2737_v51 = vsel %vm1333_vm7, %v2732_v13, 0 }
 0xdb2   : > { %2746 = vmatpush.bf16.xpose.msrb.mxu1 %v2737_v51 }
 0xdb3   : > { %2722 = vmatpush.bf16.msrb.mxu0 %v4447_v2  ;;  %v4455_v2 = vld [vmem:[%s5950_s11 + $0xa4] sm:$0xf] }
 0xdb9   : > { %4059 = vmatmul.msk.bf16.vlgmr.msra.gmra.mxu2 %vm1333_vm7, %v2626_v14 }
 0xe2b   : > { %v2586_v15 = vpop.f32.mrf.mxu0 }
 0xe2c   : > { %v2590_v52 = vpack.c.bf16 %v2586_v15, %v2586_v15  ;;  %v2507_v16 = vpop.f32.mrf.mxu2 }
 0xe2d   : > { %v2511_v23 = vadd.f32 %v2507_v16, %v2413_v22 }
 0xe2e   : > { %4058 = vmatmul.msk.bf16.vlgmr.msra.gmra.mxu1 %vm1333_vm7, %v2590_v52  ;;  %v4449_v52 = vld [vmem:[%s5946_s7 + $0x70] sm:$0xff] }
 0xe33   : > { %v2588_v50 = vpop.f32.mrf.mxu0 }
 0xe34   : > { %v2509_v17 = vpop.f32.mrf.mxu2 }
 0xe3c   : > { %v2644_v18 = vpop.f32.mrf.mxu2 }
 0xe3d   : > { %v2648_v20 = vsel %vm1353_vm8, %v2644_v18, -inf }
 0xe3e   : > { %4074 = vmatmul.msk.bf16.vlgmr.msrb.gmra.mxu1 %vm1333_vm7, %v2730_v19  ;;  %2649 = vmax.xlane.f32.xlu0 %v2648_v20 }
 0xe44   : > { %v2646_v21 = vpop.f32.mrf.mxu2 }
 0xe52   : > { %2777 = vrot.lane.b32.xlu0 %v5624_v34, %s5996_s2 }
 0xeab   : > { %v2620_v24 = vpop.f32.mrf.mxu1 }
 0xeac   : > { %v5650_v25 = vadd.f32 %v2620_v24, %v2511_v23  ;;  %v4166_v24 = vld [vmem:[%s5950_s11 + $0xf0] sm:$0xf] }
 0xeb1   : > { %v2650_v26 = vpop.xlane.xlu0 %2649 }
 0xeb2   : > { %v2651_v28 = vsub.f32 %v2644_v18, %v2650_v26  ;;  %v4466_v26 = vld [vmem:[%s5950_s11 + $0xf4] sm:$0xf0] }
 0xeb3   : > { %v2622_v29 = vpop.f32.mrf.mxu1 }
 0xeb4   : > { %v2652_v32 = vmul.f32 1.442695, %v2651_v28  ;;  %v4167_v28 = vor.u32 %v4466_v26, %v4166_v24  ;;  %v4168_v29 = vld [vmem:[%s5950_s11 + $0xf8] sm:$0xf0]  ;;  %v4545_v24 = vld [vmem:[%s5948_s9 + $0x1] ss:$0 sm:$0xff] }
 0xeb6   : > { %4588 = vpow2.f32 %v2652_v32  ;;  %2972 = vmatpush.bf16.msra.mxu0 %v4167_v28  ;;  %v4546_v28 = vld [vmem:[%s5949_s10 + $0x1] ss:$0 sm:$0xff] }
 0xebb   : > { %v2748_v35 = vpop.f32.mrf.mxu1 }
 0xebc   : > { %v2752_v36 = vsel %vm1353_vm8, %v2748_v35, -inf  ;;  %v4589_v37 = vpop.eup %4588 }
 0xebd   : > { %2753 = vmax.xlane.f32.xlu1 %v2752_v36  ;;  %v2654_v40 = vsel %vm1353_vm8, %v4589_v37, 0.0 }
 0xec3   : > { %v2750_v38 = vpop.f32.mrf.mxu1 }
 0xec4   : > { %v2778_v39 = vpop.permute.xlu0 %2777 }
 0xec5   : > { %v2783_v12 = vand.u32 %v2778_v39, %v5153_v60  ;;  %2655 = vadd.xlane.f32.xlu1 %v2654_v40  ;;  %v4158_v40 = vld [vmem:[%s5950_s11 + $0xe0] sm:$0xf] }
 0xec7   : > { %2792 = vmatpush.bf16.msrb.mxu2 %v2783_v12  ;;  %v4464_v12 = vld [vmem:[%s5950_s11 + $0xe4] sm:$0xf0] }
 0xede   : > { %2673 = vrot.lane.b32.xlu1 %v5624_v34, %s5995_s0  ;;  %s593_s0 = sand.u32 1, %s4662_s30  }
 0xedf   : > { %s594_s22 = scalar_lea.vmem [#allocation2], %s593_s0  ;;  %s3349_s3 = scalar_lea.sflag [#allocation3], %s593_s0 }
 0xee0   : > { %s3359_s20 = sshll.u32 %s594_s22, 4  ;;  %s3360_s20 = int_to_ptr.vmem [resolvable:$true] %s3359_s20 }
 0xf30   : > { %v2754_v42 = vpop.xlane.xlu1 %2753 }
 0xf31   : > { %v2755_v43 = vsub.f32 %v2748_v35, %v2754_v42  ;;  %v4463_v42 = vld [vmem:[%s5950_s11 + $0xe4] sm:$0xf] }
 0xf33   : > { %v2756_v41 = vmul.f32 1.442695, %v2755_v43  ;;  %v4159_v43 = vor.u32 %v4464_v12, %v4158_v40 }
 0xf35   : > { %4590 = vpow2.f32 %v2756_v41  ;;  %v4160_v41 = vld [vmem:[%s5950_s11 + $0xe8] sm:$0xf0]  ;;  %2973 = vmatpush.bf16.msra.mxu0 %v4159_v43  ;;  %v4473_v43 = vld [vmem:[%s5952_s13 + $0xb0] sm:$0xff] }
 0xf38   : > { %v2656_v44 = vpop.xlane.xlu1 %2655 }
 0xf39   : > { %4592 = vrcp.f32 %v2656_v44  ;;  %v2668_v57 = vand.u32 2147483648, %v2656_v44  ;;  %vm2662_vm15 = vweird.f32 %v2656_v44  ;;  %v2666_v58 = vand.u32 2147483647, %v2656_v44 }
 0xf3b   : > { %v4591_v45 = vpop.eup %4590  ;;  %v2669_v55 = vor.u32 1.1754944e-38, %v2668_v57  ;;  %vm2667_vm2 = vcmp.eq.f32.partialorder %v2666_v58, 8.507059e+37  ;;  %v4460_v57 = vld [vmem:[%s5950_s11 + $0xc4] sm:$0xf0]  ;;  %v4459_v58 = vld [vmem:[%s5950_s11 + $0xc4] sm:$0xf] }
 0xf3c   : > { %v2758_v46 = vsel %vm1353_vm8, %v4591_v45, 0.0 }
 0xf3d   : > { %2759 = vadd.xlane.f32.xlu2 %v2758_v46  ;;  %v4462_v46 = vld [vmem:[%s5950_s11 + $0xd4] sm:$0xf0] }
 0xf3f   : > { %v4593_v47 = vpop.eup %4592 }
 0xf40   : > { %v2658_v48 = vmul.f32 %v4593_v47, %v2656_v44  ;;  %vm2663_vm14 = vweird.f32 %v4593_v47  ;;  %v4163_v44 = vor.u32 %v4463_v42, %v4160_v41  ;;  %v4481_v41 = vld [vmem:[%s5952_s13 + $0xf0] sm:$0xff] }
 0xf41   : > { %vm2664_vm1 = vmor %vm2662_vm15, %vm2663_vm14 }
 0xf42   : > { %v2659_v49 = vsub.f32 1.0, %v2658_v48 }
 0xf44   : > { %v2660_v53 = vmul.f32 %v4593_v47, %v2659_v49  ;;  %v4152_v49 = vld [vmem:[%s5950_s11 + $0xd8] sm:$0xf0] }
 0xf46   : > { %v2661_v54 = vadd.f32 %v4593_v47, %v2660_v53 }
 0xf48   : > { %v2665_v34 = vsel %vm2664_vm1, %v4593_v47, %v2661_v54  ;;  %v4461_v47 = vld [vmem:[%s5950_s11 + $0xd4] sm:$0xf]  ;;  %v4142_v54 = vld [vmem:[%s5950_s11 + $0xc0] sm:$0xf] }
 0xf49   : > { %v2670_v59 = vsel %vm2667_vm2, %v2669_v55, %v2665_v34  ;;  %v4155_v53 = vor.u32 %v4461_v47, %v4152_v49  ;;  %v4143_v34 = vor.u32 %v4460_v57, %v4142_v54  ;;  %v4144_v55 = vld [vmem:[%s5950_s11 + $0xc8] sm:$0xf0] }
 0xf4a   : > { %v2671_v61 = vmul.f32 %v4589_v37, %v2670_v59  ;;  %v4147_v59 = vor.u32 %v4459_v58, %v4144_v55  ;;  %v4480_v49 = vld [vmem:[%s5952_s13 + $0xe8] sm:$0xff] }
 0xf4c   : > { %v2672_v33 = vpack.c.bf16 %v2671_v61, %v2671_v61  ;;  %v4134_v61 = vld [vmem:[%s5950_s11 + $0xb0] sm:$0xf] }
 0xf50   : > { %v2674_v62 = vpop.permute.xlu1 %2673 }
 0xf51   : > { %v2679_v56 = vand.u32 %v2674_v62, %v5153_v60  ;;  %v4458_v62 = vld [vmem:[%s5950_s11 + $0xb4] sm:$0xf0] }
 0xf53   : > { %2688 = vmatpush.bf16.msra.mxu3 %v2679_v56  ;;  %v4457_v56 = vld [vmem:[%s5950_s11 + $0xb4] sm:$0xf] }
 0xf56   : > { %4060 = vmatmul.msk.bf16.vlgmr.msra.gmra.mxu3 %vm1379_vm13, %v2672_v33  ;;  %v4135_v33 = vor.u32 %v4458_v62, %v4134_v61  ;;  %v4479_v61 = vld [vmem:[%s5952_s13 + $0xe0] sm:$0xff] }
 0xf57   : > { %2825 = vmatpush.bf16.msrb.mxu3 %v4450_v10  ;;  %v4110_v10 = vld [vmem:[%s5950_s11 + $0x80] sm:$0xf] }
 0xf5b   : > { %2826 = vmatpush.bf16.msrb.mxu3 %v4449_v52 }
 0xfb0   : > { %v2760_v63 = vpop.xlane.xlu2 %2759 }
 0xfb1   : > { %4594 = vrcp.f32 %v2760_v63  ;;  %v2772_v4 = vand.u32 2147483648, %v2760_v63  ;;  %v2770_v5 = vand.u32 2147483647, %v2760_v63  ;;  %vm2766_vm3 = vweird.f32 %v2760_v63 }
 0xfb3   : > { %v2773_v7 = vor.u32 1.1754944e-38, %v2772_v4  ;;  %vm2771_vm5 = vcmp.eq.f32.partialorder %v2770_v5, 8.507059e+37  ;;  %v4128_v4 = vld [vmem:[%s5950_s11 + $0xa8] sm:$0xf0]  ;;  %v4118_v5 = vld [vmem:[%s5950_s11 + $0x90] sm:$0xf] }
 0xfb7   : > { %v4595_v0 = vpop.eup %4594 }
 0xfb8   : > { %v2762_v1 = vmul.f32 %v4595_v0, %v2760_v63  ;;  %vm2767_vm8 = vweird.f32 %v4595_v0  ;;  %v4139_v63 = vor.u32 %v4457_v56, %v4136_v30  ;;  %v4478_v30 = vld [vmem:[%s5952_s13 + $0xd8] sm:$0xff] }
 0xfb9   : > { %vm2768_vm4 = vmor %vm2766_vm3, %vm2767_vm8  ;;  %vm3243_vm3 = vcmask 1040384  }
 0xfba   : > { %v2763_v3 = vsub.f32 1.0, %v2762_v1  ;;  %v4456_v1 = vld [vmem:[%s5950_s11 + $0xa4] sm:$0xf0] }
 0xfbc   : > { %v2764_v60 = vmul.f32 %v4595_v0, %v2763_v3 }
 0xfbe   : > { %v2765_v6 = vadd.f32 %v4595_v0, %v2764_v60  ;;  %v4131_v60 = vor.u32 %v4455_v2, %v4128_v4 }
 0xfc0   : > { %v2769_v8 = vsel %vm2768_vm4, %v4595_v0, %v2765_v6  ;;  %v4126_v0 = vld [vmem:[%s5950_s11 + $0xa0] sm:$0xf]  ;;  %v4454_v6 = vld [vmem:[%s5950_s11 + $0x94] sm:$0xf0] }
 0xfc1   : > { %v2774_v9 = vsel %vm2771_vm5, %v2773_v7, %v2769_v8  ;;  %v4127_v3 = vor.u32 %v4456_v1, %v4126_v0  ;;  %v4453_v7 = vld [vmem:[%s5950_s11 + $0x94] sm:$0xf]  ;;  %v4119_v8 = vor.u32 %v4454_v6, %v4118_v5  ;;  %v4468_v5 = vld [vmem:[%s5952_s13 + $0x88] sm:$0xff] }
 0xfc2   : > { %v2775_v11 = vmul.f32 %v4591_v45, %v2774_v9  ;;  %v4150_v45 = vld [vmem:[%s5950_s11 + $0xd0] sm:$0xf]  ;;  %v4120_v9 = vld [vmem:[%s5950_s11 + $0x98] sm:$0xf0]  ;;  %v4476_v6 = vld [vmem:[%s5952_s13 + $0xc8] sm:$0xff] }
 0xfc3   : > { %v4151_v48 = vor.u32 %v4462_v46, %v4150_v45  ;;  %v4477_v0 = vld [vmem:[%s5952_s13 + $0xd0] sm:$0xff] }
 0xfc4   : > { %v2776_v13 = vpack.c.bf16 %v2775_v11, %v2775_v11  ;;  %v4452_v11 = vld [vmem:[%s5950_s11 + $0x84] sm:$0xf0] }
 0xfc5   : > { %2974 = vmatpush.bf16.msra.mxu0 %v4151_v48  ;;  %v4472_v48 = vld [vmem:[%s5952_s13 + $0xa8] sm:$0xff] }
 0xfc6   : > { %4075 = vmatmul.msk.bf16.vlgmr.msrb.gmra.mxu2 %vm1379_vm13, %v2776_v13  ;;  %v4123_v13 = vor.u32 %v4453_v7, %v4120_v9 }
 0xfc9   : > { %2975 = vmatpush.bf16.msra.mxu0 %v4143_v34 }
 0xfcd   : > { %2976 = vmatpush.bf16.msra.mxu0 %v4135_v33  ;;  %v4470_v33 = vld [vmem:[%s5952_s13 + $0x98] sm:$0xff] }
 0xfd1   : > { %2977 = vmatpush.bf16.msra.mxu0 %v4127_v3 }
 0xfd5   : > { %2978 = vmatpush.bf16.msra.mxu0 %v4119_v8 }
 0xfd9   : > { %v2690_v51 = vpop.f32.mrf.mxu3 }
 0xfda   : > { %v2694_v14 = vpack.c.bf16 %v2690_v51, %v2690_v51  ;;  %v4451_v51 = vld [vmem:[%s5950_s11 + $0x84] sm:$0xf] }
 0xfdc   : > { %4073 = vmatmul.msk.bf16.vlgmr.msrb.gmra.mxu0 %vm1333_vm7, %v2694_v14  ;;  %v4112_v14 = vld [vmem:[%s5950_s11 + $0x88] sm:$0xf0] }
 0xfdd   : > { %v4115_v52 = vor.u32 %v4451_v51, %v4112_v14 }
 0xfe1   : > { %v2692_v15 = vpop.f32.mrf.mxu3 }
 0xfe2   : > { %v4111_v15 = vor.u32 %v4452_v11, %v4110_v10 }
 0xfe4   : > { %2979 = vmatpush.bf16.msra.mxu0 %v4111_v15  ;;  %v4467_v15 = vld [vmem:[%s5952_s13 + $0x80] sm:$0xff] }
0x1049   : > { %v2794_v16 = vpop.f32.mrf.mxu2 }
0x104a   : > { %v2798_v50 = vpack.c.bf16 %v2794_v16, %v2794_v16 }
0x104c   : > { %4088 = vmatmul.msk.bf16.vlgmr.msrb.gmra.mxu3 %vm1333_vm7, %v2798_v50 }
0x1051   : > { %v2796_v17 = vpop.f32.mrf.mxu2 }
0x1059   : > { %v2724_v18 = vpop.f32.mrf.mxu0 }
0x105a   : > { %v2728_v19 = vadd.f32 %v2724_v18, %v5650_v25  ;;  %v4465_v25 = vld [vmem:[%s5950_s11 + $0xf4] sm:$0xf] }
0x105b   : > { %v4171_v32 = vor.u32 %v4465_v25, %v4168_v29 }
0x105d   : > { %2985 = vmatpush.bf16.msra.mxu1 %v4171_v32 }
0x1061   : > { %v2726_v20 = vpop.f32.mrf.mxu0  ;;  %2986 = vmatpush.bf16.msra.mxu1 %v4163_v44 }
0x1065   : > { %2987 = vmatpush.bf16.msra.mxu1 %v4155_v53 }
0x1069   : > { %2988 = vmatpush.bf16.msra.mxu1 %v4147_v59  ;;  %v4471_v59 = vld [vmem:[%s5952_s13 + $0xa0] sm:$0xff] }
0x106d   : > { %2989 = vmatpush.bf16.msra.mxu1 %v4139_v63  ;;  %v4469_v63 = vld [vmem:[%s5952_s13 + $0x90] sm:$0xff] }
0x1071   : > { %2990 = vmatpush.bf16.msra.mxu1 %v4131_v60 }
0x1075   : > { %2991 = vmatpush.bf16.msra.mxu1 %v4123_v13 }
0x1079   : > { %2992 = vmatpush.bf16.msra.mxu1 %v4115_v52  ;;  %v4475_v52 = vld [vmem:[%s5952_s13 + $0xc0] sm:$0xff] }
0x10cf   : > { %v2828_v21 = vpop.f32.mrf.mxu3 }
0x10d0   : > { %v5676_v27 = vadd.f32 %v2828_v21, %v2728_v19 }
0x10d2   : > { %v2837_v22 = vsel %vm1078_vm0, %v5676_v27, 0.0 }
0x10d3   : > { %2838 = vadd.xlane.f32.xlu2 %v2837_v22 }
0x10d7   : > { %v2830_v23 = vpop.f32.mrf.mxu3 }
0x1146   : > { %v2839_v35 = vpop.xlane.xlu2 %2838 }
0x1147   : > { %v2840_v36 = vmul.f32 %v2839_v35, %v5007_v31 }
0x1149   : > { %v5694_v37 = vsub.f32 %v5676_v27, %v2840_v36  ;;  %v4107_v36 = vld [vmem:[%s5951_s12 + $0x2] sm:$0x3] }
0x114a   : > { %v2889_v40 = vperm.slane %v4107_v36, 1 }
0x114b   : > { %v2842_v38 = vmul.f32 %v5694_v37, %v5694_v37 }
0x114d   : > { %v2843_v39 = vsel %vm1078_vm0, %v2842_v38, 0.0  ;;  %v4474_v38 = vld [vmem:[%s5952_s13 + $0xb8] sm:$0xff] }
0x114e   : > { %2844 = vadd.xlane.f32.xlu0 %v2843_v39  ;;  %v2888_v39 = vperm.slane %v4107_v36, 0  ;;  %3214 = vmatpush.bf16.msra.mxu2 %v4474_v38 }
0x1152   : > { %3215 = vmatpush.bf16.msra.mxu2 %v4473_v43 }
0x1156   : > { %3216 = vmatpush.bf16.msra.mxu2 %v4472_v48 }
0x115a   : > { %3217 = vmatpush.bf16.msra.mxu2 %v4471_v59 }
0x115e   : > { %3218 = vmatpush.bf16.msra.mxu2 %v4470_v33 }
0x1162   : > { %3219 = vmatpush.bf16.msra.mxu2 %v4469_v63 }
0x1166   : > { %3220 = vmatpush.bf16.msra.mxu2 %v4468_v5 }
0x116a   : > { %3221 = vmatpush.bf16.msra.mxu2 %v4467_v15 }
0x11c1   : > { %v2845_v16 = vpop.xlane.xlu0 %2844 }
0x11c2   : > { %v2846_v50 = vmul.f32 %v2845_v16, %v5007_v31 }
0x11c4   : > { %v2847_v17 = vadd.f32 1e-06, %v2846_v50 }
0x11c6   : > { %4596 = vrsqrt.f32 %v2847_v17  ;;  %vm2854_vm7 = vweird.f32 %v2847_v17 }
0x11cc   : > { %v4597_v18 = vpop.eup %4596 }
0x11cd   : > { %v2849_v19 = vmul.f32 %v4597_v18, %v2847_v17  ;;  %vm2855_vm0 = vweird.f32 %v4597_v18 }
0x11ce   : > { %vm2856_vm13 = vmor %vm2854_vm7, %vm2855_vm0 }
0x11cf   : > { %v2850_v20 = vmul.f32 %v4597_v18, %v2849_v19 }
0x11d1   : > { %v2851_v21 = vmul.f32 0.5, %v2850_v20 }
0x11d3   : > { %v2852_v22 = vsub.f32 1.5, %v2851_v21 }
0x11d5   : > { %v2853_v23 = vmul.f32 %v4597_v18, %v2852_v22 }
0x11d7   : > { %v2857_v26 = vsel %vm2856_vm13, %v4597_v18, %v2853_v23 }
0x11d8   : > { %v2858_v25 = vmul.f32 %v2857_v26, %v5694_v37  ;;  %v4482_v37 = vld [vmem:[%s5952_s13 + $0xf8] sm:$0xff] }
0x11d9   : > { %3227 = vmatpush.bf16.msra.mxu3 %v4482_v37 }
0x11da   : > { %v2862_v29 = vmul.f32 %v4545_v24, %v2858_v25 }
0x11dc   : > { %v2866_v32 = vadd.f32 %v4546_v28, %v2862_v29 }
0x11dd   : > { %3228 = vmatpush.bf16.msra.mxu3 %v4481_v41 }
0x11de   : > { %v2884_v35 = vpack.c.bf16 %v2866_v32, %v2866_v32 }
0x11e0   : > { %2980 = vmatmul.bf16.vlgmr.msra.gmra.mxu0 %v2884_v35  ;;  %2993 = vmatmul.bf16.vlgmr.msra.gmra.mxu1 %v2884_v35 }
0x11e1   : > { %3229 = vmatpush.bf16.msra.mxu3 %v4480_v49 }
0x11e5   : > { %3230 = vmatpush.bf16.msra.mxu3 %v4479_v61 }
0x11e9   : > { %3231 = vmatpush.bf16.msra.mxu3 %v4478_v30 }
0x11ed   : > { %3232 = vmatpush.bf16.msra.mxu3 %v4477_v0 }
0x11f1   : > { %3233 = vmatpush.bf16.msra.mxu3 %v4476_v6 }
0x11f5   : > { %3234 = vmatpush.bf16.msra.mxu3 %v4475_v52 }
0x125d   : > { %v2981_v12 = vpop.f32.mrf.mxu0  ;;  %v2994_v42 = vpop.f32.mrf.mxu1 }
0x125e   : > { %v5806_v44 = vadd.f32 %v2981_v12, %v2888_v39  ;;  %v5808_v45 = vadd.f32 %v2994_v42, %v2889_v40 }
0x1260   : > { %v5811_v46 = vmul.f32 0.70710677, %v5806_v44  ;;  %v5814_v47 = vmul.f32 0.70710677, %v5808_v45  ;;  %v3072_v0 = vmul.f32 0.5, %v5806_v44 }
0x1262   : > { %v5823_v53 = vand.u32 2147483647, %v5811_v46  ;;  %v5826_v54 = vand.u32 2147483647, %v5814_v47  ;;  %vm3066_vm2 = vcmp.lt.f32.partialorder %v5811_v46, 0.0  ;;  %vm3067_vm8 = vcmp.lt.f32.partialorder %v5814_v47, 0.0 }
0x1263   : > { %v4547_v46 = vld [vmem:[%s5953_s14 + $0x1] ss:$0 sm:$0xff] }
0x1264   : > { %v3002_v57 = vmul.f32 0.3275911, %v5823_v53  ;;  %v3003_v58 = vmul.f32 0.3275911, %v5826_v54  ;;  %v3054_v20 = vsub.f32 0.0, %v5823_v53  ;;  %v3055_v24 = vsub.f32 0.0, %v5826_v54 }
0x1265   : > { %v2983_v34 = vpop.f32.mrf.mxu0  ;;  %v2996_v55 = vpop.f32.mrf.mxu1 }
0x1266   : > { %v3004_v62 = vadd.f32 1.0, %v3002_v57  ;;  %v3005_v56 = vadd.f32 1.0, %v3003_v58  ;;  %v3056_v28 = vmul.f32 %v3054_v20, %v5823_v53  ;;  %v3057_v35 = vmul.f32 %v3055_v24, %v5826_v54  ;;  %v4485_v20 = vld [vmem:[%s5956_s17 + $0x10] sm:$0xff] }
0x1268   : > { %4598 = vrcp.f32 %v3004_v62  ;;  %v3017_v7 = vand.u32 2147483648, %v3004_v62  ;;  %v3015_v10 = vand.u32 2147483647, %v3004_v62  ;;  %v3032_v11 = vand.u32 2147483648, %v3005_v56 }
0x1269   : > { %4600 = vrcp.f32 %v3005_v56  ;;  %v3030_v51 = vand.u32 2147483647, %v3005_v56  ;;  %vm3011_vm10 = vweird.f32 %v3004_v62  ;;  %vm3026_vm12 = vweird.f32 %v3005_v56 }
0x126a   : > { %v3018_v16 = vor.u32 1.1754944e-38, %v3017_v7  ;;  %vm3016_vm14 = vcmp.eq.f32.partialorder %v3015_v10, 8.507059e+37  ;;  %v3033_v18 = vor.u32 1.1754944e-38, %v3032_v11  ;;  %v3058_v37 = vmul.f32 1.442695, %v3056_v28 }
0x126b   : > { %vm3031_vm1 = vcmp.eq.f32.partialorder %v3030_v51, 8.507059e+37  ;;  %v3060_v12 = vmul.f32 1.442695, %v3057_v35  ;;  %v4490_v51 = vld [vmem:[%s5956_s17 + $0x38] sm:$0xff] }
0x126c   : > { %4602 = vpow2.f32 %v3058_v37  ;;  %3334 = vmatpush.bf16.msrb.mxu0 %v4490_v51  ;;  %v3241_v37 = vld [vmem:[%s5954_s15] sm:$0x1] }
0x126d   : > { %4604 = vpow2.f32 %v3060_v12 }
0x126e   : > { %v4599_v1 = vpop.eup %4598 }
0x126f   : > { %v4601_v2 = vpop.eup %4600  ;;  %v3007_v3 = vmul.f32 %v4599_v1, %v3004_v62  ;;  %vm3012_vm6 = vweird.f32 %v4599_v1 }
0x1270   : > { %v3022_v4 = vmul.f32 %v4601_v2, %v3005_v56  ;;  %vm3027_vm9 = vweird.f32 %v4601_v2  ;;  %vm3013_vm11 = vmor %vm3011_vm10, %vm3012_vm6 }
0x1271   : > { %v3008_v60 = vsub.f32 1.0, %v3007_v3  ;;  %vm3028_vm15 = vmor %vm3026_vm12, %vm3027_vm9  ;;  %v3073_v3 = vmul.f32 0.5, %v5808_v45 }
0x1272   : > { %v3023_v8 = vsub.f32 1.0, %v3022_v4  ;;  %v4603_v34 = vpop.eup %4602 }
0x1273   : > { %v3009_v9 = vmul.f32 %v4599_v1, %v3008_v60  ;;  %v4605_v59 = vpop.eup %4604 }
0x1274   : > { %v3024_v13 = vmul.f32 %v4601_v2, %v3023_v8 }
0x1275   : > { %v3010_v14 = vadd.f32 %v4599_v1, %v3009_v9 }
0x1276   : > { %v3025_v50 = vadd.f32 %v4601_v2, %v3024_v13 }
0x1277   : > { %v3014_v17 = vsel %vm3013_vm11, %v4599_v1, %v3010_v14 }
0x1278   : > { %v3019_v19 = vsel %vm3016_vm14, %v3018_v16, %v3014_v17  ;;  %v3029_v21 = vsel %vm3028_vm15, %v4601_v2, %v3025_v50  ;;  %v4488_v17 = vld [vmem:[%s5956_s17 + $0x28] sm:$0xff] }
0x1279   : > { %v3036_v22 = vmul.f32 1.0614054, %v3019_v19  ;;  %v3034_v23 = vsel %vm3031_vm1, %v3033_v18, %v3029_v21  ;;  %v4487_v18 = vld [vmem:[%s5956_s17 + $0x20] sm:$0xff]  ;;  %v4484_v21 = vld [vmem:[%s5956_s17 + $0x8] sm:$0xff] }
0x127a   : > { %v3037_v26 = vmul.f32 1.0614054, %v3034_v23 }
0x127b   : > { %v4172_v25 = vadd.f32 -1.4531521, %v3036_v22  ;;  %v4483_v22 = vld [vmem:[%s5956_s17] sm:$0xff] }
0x127c   : > { %v4173_v29 = vadd.f32 -1.4531521, %v3037_v26 }
0x127d   : > { %v3040_v32 = vmul.f32 %v4172_v25, %v3019_v19 }
0x127e   : > { %v3041_v36 = vmul.f32 %v4173_v29, %v3034_v23 }
0x127f   : > { %v3042_v38 = vadd.f32 1.4214138, %v3040_v32 }
0x1280   : > { %v3043_v39 = vadd.f32 1.4214138, %v3041_v36 }
0x1281   : > { %v3044_v40 = vmul.f32 %v3042_v38, %v3019_v19 }
0x1282   : > { %v3045_v42 = vmul.f32 %v3043_v39, %v3034_v23 }
0x1283   : > { %v4174_v43 = vadd.f32 -0.28449672, %v3044_v40 }
0x1284   : > { %v4175_v41 = vadd.f32 -0.28449672, %v3045_v42 }
0x1285   : > { %v3048_v48 = vmul.f32 %v4174_v43, %v3019_v19  ;;  %v3285_v43 = vld [vmem:[%s5998_s24] sm:$0x1] }
0x1286   : > { %v3049_v49 = vmul.f32 %v4175_v41, %v3034_v23 }
0x1287   : > { %v3050_v57 = vadd.f32 0.2548296, %v3048_v48 }
0x1288   : > { %v3051_v58 = vadd.f32 0.2548296, %v3049_v49 }
0x1289   : > { %v3052_v53 = vmul.f32 %v3050_v57, %v3019_v19  ;;  %v4486_v19 = vld [vmem:[%s5956_s17 + $0x18] sm:$0xff] }
0x128a   : > { %v3053_v55 = vmul.f32 %v3051_v58, %v3034_v23 }
0x128b   : > { %v3062_v54 = vmul.f32 %v4603_v34, %v3052_v53 }
0x128c   : > { %v3063_v61 = vmul.f32 %v4605_v59, %v3053_v55 }
0x128d   : > { %v3064_v62 = vsub.f32 1.0, %v3062_v54 }
0x128e   : > { %v3065_v56 = vsub.f32 1.0, %v3063_v61 }
0x128f   : > { %v3068_v33 = vsub.f32 0.0, %v3064_v62 }
0x1290   : > { %v3069_v30 = vsub.f32 0.0, %v3065_v56 }
0x1291   : > { %v3070_v63 = vsel %vm3066_vm2, %v3068_v33, %v3064_v62 }
0x1292   : > { %v3074_v1 = vadd.f32 1.0, %v3070_v63  ;;  %v3071_v2 = vsel %vm3067_vm8, %v3069_v30, %v3065_v56 }
0x1293   : > { %v3075_v4 = vadd.f32 1.0, %v3071_v2 }
0x1294   : > { %v3076_v60 = vmul.f32 %v3074_v1, %v3072_v0 }
0x1295   : > { %v3077_v5 = vmul.f32 %v3075_v4, %v3073_v3 }
0x1296   : > { %v3111_v6 = vpack.c.bf16 %v3076_v60, %v3076_v60 }
0x1297   : > { %v3112_v7 = vpack.c.bf16 %v3077_v5, %v3077_v5 }
0x1298   : > { %3222 = vmatmul.bf16.vlgmr.msra.gmra.mxu2 %v3111_v6 }
0x1299   : > { %3235 = vmatmul.bf16.vlgmr.msra.gmra.mxu3 %v3112_v7 }
0x131b   : > { %v3223_v8 = vpop.f32.mrf.mxu2 }
0x131c   : > { %v3224_v9 = vadd.f32 %v4547_v46, %v3223_v8  ;;  %v3236_v47 = vpop.f32.mrf.mxu3 }
0x131e   : > { %v3237_v10 = vadd.f32 %v3236_v47, %v3224_v9 }
0x1320   : > { %v3240_v44 = vadd.f32 %v3237_v10, %v5676_v27  ;;  %v4489_v27 = vld [vmem:[%s5956_s17 + $0x30] sm:$0xff] }
0x1321   : > { %3335 = vmatpush.bf16.msrb.mxu0 %v4489_v27 }
0x1322   : > { %v3244_v11 = vsel %vm3243_vm3, %v3240_v44, 0.0 }
0x1323   : > { %v3225_v45 = vpop.f32.mrf.mxu2  ;;  %3245 = vadd.xlane.f32.xlu2 %v3244_v11 }
0x1324   : > { %v3238_v13 = vpop.f32.mrf.mxu3 }
0x1325   : > { %3336 = vmatpush.bf16.msrb.mxu0 %v4488_v17 }
0x1329   : > { %3337 = vmatpush.bf16.msrb.mxu0 %v4487_v18 }
0x132d   : > { %3338 = vmatpush.bf16.msrb.mxu0 %v4486_v19 }
0x1331   : > { %3339 = vmatpush.bf16.msrb.mxu0 %v4485_v20 }
0x1335   : > { %3340 = vmatpush.bf16.msrb.mxu0 %v4484_v21 }
0x1339   : > { %3341 = vmatpush.bf16.msrb.mxu0 %v4483_v22 }
0x1396   : > { %v3246_v14 = vpop.xlane.xlu2 %3245 }
0x1397   : > { %v3247_v15 = vmul.f32 %v3246_v14, %v5007_v31 }
0x1399   : > { %v3248_v52 = vsub.f32 %v3240_v44, %v3247_v15 }
0x139b   : > { %v3249_v16 = vmul.f32 %v3248_v52, %v3248_v52 }
0x139d   : > { %v3250_v50 = vsel %vm3243_vm3, %v3249_v16, 0.0 }
0x139e   : > { %3251 = vadd.xlane.f32.xlu1 %v3250_v50 }
0x1411   : > { %v3252_v23 = vpop.xlane.xlu1 %3251 }
0x1412   : > { %v3253_v24 = vmul.f32 %v3252_v23, %v5007_v31  ;;  %v3242_v31 = vld [vmem:[%s5955_s16] sm:$0x1] }
0x1414   : > { %v3254_v26 = vadd.f32 1e-06, %v3253_v24 }
0x1416   : > { %4606 = vrsqrt.f32 %v3254_v26  ;;  %vm3261_vm5 = vweird.f32 %v3254_v26 }
0x141c   : > { %v4607_v25 = vpop.eup %4606 }
0x141d   : > { %v3256_v28 = vmul.f32 %v4607_v25, %v3254_v26  ;;  %vm3262_vm4 = vweird.f32 %v4607_v25 }
0x141e   : > { %vm3263_vm0 = vmor %vm3261_vm5, %vm3262_vm4 }
0x141f   : > { %v3257_v29 = vmul.f32 %v4607_v25, %v3256_v28 }
0x1421   : > { %v3258_v32 = vmul.f32 0.5, %v3257_v29 }
0x1423   : > { %v3259_v35 = vsub.f32 1.5, %v3258_v32 }
0x1425   : > { %v3260_v36 = vmul.f32 %v4607_v25, %v3259_v35 }
0x1427   : > { %v3264_v38 = vsel %vm3263_vm0, %v4607_v25, %v3260_v36 }
0x1428   : > { %v3265_v39 = vmul.f32 %v3264_v38, %v3248_v52 }
0x142a   : > { %v3266_v40 = vmul.f32 %v3265_v39, %v3241_v37 }
0x142c   : > { %v3267_v12 = vadd.f32 %v3266_v40, %v3242_v31 }
0x142e   : > { %v3284_v42 = vpack.c.bf16 %v3267_v12, %v3267_v12 }
0x1430   : > { %3342 = vmatmul.bf16.vlgmr.msrb.gmra.mxu0 %v3284_v42 }
0x14ad   : > { %v3343_v41 = vpop.f32.mrf.mxu0 }
0x14ae   : > { %v3344_v48 = vadd.f32 %v3343_v41, %v3285_v43 }
0x14b0   : > { %3347 = vst [vmem:[%s594_s22] sm:$0x1] %v3344_v48 }
0x14b1   : > { %4635 = shalt.err (!%p4632_p3)
}
0x14b2   : > { %4492 = dma.vmem_to_hbm [thread:$0]  (%p4815_p5), %s3360_s20, 16, %s3362_s4, %s3349_s3  }
0x14b5   : > { %v3345_v49 = vpop.f32.mrf.mxu0 }
0x14b6 PF: > { %s5999_s0 = sld [smem:[#allocation7_spill]] }
0x14b7   : > { %s6000_s25 = sld [smem:[#allocation5_spill]] }
0x14bc   : > { %p4498_p4 = scmp.ge.s32.totalorder %s5999_s0, 2 }
0x14bd   : > { %s3373_s22 = sand.u32 1, %s6000_s25  }
0x14be   : > { %p4495_p7 = pnand %p4498_p4, %p4819_p6  ;;  %s3374_s1 = scalar_lea.sflag [#allocation3], %s3373_s22 }
0x14c0   : > { %p4496_p8 = pneg %p4495_p7 }
0x14c2   : > { %4653 = dma.done.wait (%p4496_p8), %s3374_s1, 16  }
0x14c3   : > { %4655 = vsyncadd (%p4496_p8), %s3374_s1, 4294967280  ;;  %s6002_s21 = sld [smem:[#allocation8_spill]]  ;;  %s6005_s0 = smov %s4662_s30 }
0x14c4   : > { %s6003_s5 = sld [smem:[#allocation6_spill]] }
0x14c5   : > { %s6004_s20 = sld [smem:[#allocation9_spill]] }
0x14c9   : > { %p29_p9 = scmp.ge.s32.totalorder %s6002_s21, 4  }
0x14ca   : > { %s6006_s30 = smov %s6003_s5 }
0x14cb   :  { %31 = sbr.rel (!%p29_p9) target bundleno = 11 (0xb), region = 149 }
0x14d0   :  { %3379 = vsyncpa [#allocation3], 1 }
0x14d1   :  { %3381 = vsyncpa [#allocation3 + $0x1], 1 }

</bundles_post_ra>
